<compile_context>
chip_gen: v7x
topology: tpu7x:2x2x1
jax: 0.10.0
libtpu: 0.0.40
codegen_flags: <defaults>
</compile_context>

<pallas_src>
import jax
import jax.numpy as jnp
from jax import lax
from jax.experimental import pallas as pl
from jax.experimental.pallas import tpu as pltpu


# Sequences up to this length are fully unrolled at trace time inside the
# kernel (best latency: no loop-carry / scheduling boundaries on the serial
# chain).  Longer sequences fall back to a blocked fori_loop.
_FULL_UNROLL_LIMIT = 256
_BLOCK_UNROLL = 8


def _rnn_kernel(x_ref, w_ih_ref, w_hh_ref, b_ref, h0_ref, h_out_ref, pre_ref):
    """Sequential Elman-RNN recurrence, final hidden state only.

    x_ref    : VMEM (seq, 1)  f32   -- per-step scalar inputs (column vector)
    w_ih_ref : VMEM (1, H)    f32   -- W_ih^T (input feature size is 1)
    w_hh_ref : VMEM (H, H)    bf16  -- W_hh^T (MXU operand precision)
    b_ref    : VMEM (1, H)    f32   -- b_ih + b_hh
    h0_ref   : VMEM (1, H)    f32   -- initial hidden state
    h_out_ref: VMEM (1, H)    f32   -- final hidden state
    pre_ref  : VMEM (seq, H)  f32   -- scratch: precomputed input term
    """
    seq = x_ref.shape[0]

    # Prologue (vectorized, off the serial chain):
    #   pre_in[t, :] = x[t] * W_ih^T + (b_ih + b_hh)
    pre_ref[...] = x_ref[...] * w_ih_ref[...] + b_ref[...]

    # Loop-invariant recurrent weight, loaded once (bf16, 8 vregs for H=128).
    w_hh = w_hh_ref[...]                       # (H, H) bf16

    h = h0_ref[...]                            # (1, H) f32, carried in vregs

    def step_static(t, h):
        # t is a Python int -> static slice, no dynamic address math.
        z = jnp.dot(h.astype(jnp.bfloat16), w_hh,
                    preferred_element_type=jnp.float32)
        return jnp.tanh(pre_ref[pl.ds(t, 1), :] + z)

    if seq <= _FULL_UNROLL_LIMIT:
        # Full trace-time unroll: the whole serial chain is visible to the
        # scheduler; every pre-row load hides under the previous step's
        # MXU + tanh latency.
        for t in range(seq):
            h = step_static(t, h)
    else:
        # Blocked fallback for long sequences: one aligned (UNROLL, H) load
        # per block, static row select inside the unrolled block body.
        n_blocks = seq // _BLOCK_UNROLL
        rem = seq - n_blocks * _BLOCK_UNROLL

        def block_body(i, h):
            t0 = pl.multiple_of(i * _BLOCK_UNROLL, _BLOCK_UNROLL)
            pre_blk = pre_ref[pl.ds(t0, _BLOCK_UNROLL), :]   # one aligned vld
            for j in range(_BLOCK_UNROLL):                   # trace-time unroll
                z = jnp.dot(h.astype(jnp.bfloat16), w_hh,
                            preferred_element_type=jnp.float32)
                h = jnp.tanh(pre_blk[j:j + 1, :] + z)
            return h

        if n_blocks > 0:
            h = lax.fori_loop(0, n_blocks, block_body, h)
        for j in range(rem):                                  # static remainder
            h = step_static(n_blocks * _BLOCK_UNROLL + j, h)

    h_out_ref[...] = h


def simple_rnn_forward(x, w_ih, w_hh, b_ih, b_hh, h0):
    """Pallas wrapper matching torch simple_rnn.forward.

    x    : (1, input_size) f32
    w_ih : (H, 1) f32      w_hh : (H, H) f32
    b_ih : (H,)  f32       b_hh : (H,)  f32
    h0   : (depth=1, 1, H) f32
    returns (1, 1, H) f32
    """
    seq = x.shape[1]
    H = w_hh.shape[0]

    x_col = x.reshape(seq, 1).astype(jnp.float32)             # (seq, 1)
    w_ih_row = w_ih.reshape(1, H).astype(jnp.float32)         # W_ih^T (input=1)
    w_hh_t = jnp.transpose(w_hh).astype(jnp.bfloat16)         # (H, H) bf16 MXU operand
    b = (b_ih + b_hh).reshape(1, H).astype(jnp.float32)
    h0_row = h0.reshape(1, H).astype(jnp.float32)

    h_final = pl.pallas_call(
        _rnn_kernel,
        out_shape=jax.ShapeDtypeStruct((1, H), jnp.float32),
        in_specs=[
            pl.BlockSpec(memory_space=pltpu.MemorySpace.VMEM),   # x (seq, 1)
            pl.BlockSpec(memory_space=pltpu.MemorySpace.VMEM),   # w_ih^T
            pl.BlockSpec(memory_space=pltpu.MemorySpace.VMEM),   # w_hh^T (bf16)
            pl.BlockSpec(memory_space=pltpu.MemorySpace.VMEM),   # bias
            pl.BlockSpec(memory_space=pltpu.MemorySpace.VMEM),   # h0
        ],
        out_specs=pl.BlockSpec(memory_space=pltpu.MemorySpace.VMEM),
        scratch_shapes=[pltpu.VMEM((seq, H), jnp.float32)],       # pre_in
    )(x_col, w_ih_row, w_hh_t, b, h0_row)

    return h_final.reshape(1, 1, H)                            # (depth, 1, H)


def _reference_forward(x, w_ih, w_hh, b_ih, b_hh, h0, dot_dtype=jnp.float32):
    """Pure-JAX reference of the same recurrence.

    dot_dtype=bf16 mirrors the kernel's MXU operand precision (tight check);
    dot_dtype=f32 is the exact PyTorch-equivalent math (loose check).
    """
    seq = x.shape[1]
    H = w_hh.shape[0]
    x_seq = x.reshape(seq)
    h = h0.reshape(1, H).astype(jnp.float32)
    w_hh_t = jnp.transpose(w_hh).astype(dot_dtype)
    w_ih_row = w_ih.reshape(1, H)

    def step(h, x_t):
        z = jnp.dot(h.astype(dot_dtype), w_hh_t,
                    preferred_element_type=jnp.float32)
        pre = x_t * w_ih_row + b_ih + b_hh + z
        return jnp.tanh(pre), None

    h, _ = lax.scan(step, h, x_seq)
    return h.reshape(1, 1, H)


if __name__ == "__main__":
    # Small shapes consistent with the module (input_size=seq, hidden, depth=1).
    INPUT_SIZE = 64
    HIDDEN = 128
    DEPTH = 1

    key = jax.random.PRNGKey(0)
    kx, kh, kwi, kwh, kbi, kbh = jax.random.split(key, 6)

    x = jax.random.normal(kx, (1, INPUT_SIZE), dtype=jnp.float32)
    h0 = jax.random.normal(kh, (DEPTH, 1, HIDDEN), dtype=jnp.float32)

    # Deterministic parameter init (uniform, like torch's default scale 1/sqrt(H)).
    scale = 1.0 / jnp.sqrt(jnp.float32(HIDDEN))
    w_ih = jax.random.uniform(kwi, (HIDDEN, 1), jnp.float32, -scale, scale)
    w_hh = jax.random.uniform(kwh, (HIDDEN, HIDDEN), jnp.float32, -scale, scale)
    b_ih = jax.random.uniform(kbi, (HIDDEN,), jnp.float32, -scale, scale)
    b_hh = jax.random.uniform(kbh, (HIDDEN,), jnp.float32, -scale, scale)

    out = simple_rnn_forward(x, w_ih, w_hh, b_ih, b_hh, h0)
    out = jax.block_until_ready(out)
    assert out.shape == (DEPTH, 1, HIDDEN)

    # Tight check vs. a reference that uses the same bf16 MXU-operand precision.
    ref_matched = _reference_forward(x, w_ih, w_hh, b_ih, b_hh, h0,
                                     dot_dtype=jnp.bfloat16)
    assert jnp.allclose(out, ref_matched, atol=2e-3, rtol=2e-3), \
        "mismatch vs matched-precision reference"

    # Loose check vs. the full-f32 (PyTorch-equivalent) reference; tolerance
    # relaxed because the kernel intentionally uses bf16 matmul operands.
    ref_f32 = _reference_forward(x, w_ih, w_hh, b_ih, b_hh, h0,
                                 dot_dtype=jnp.float32)
    assert jnp.allclose(out, ref_f32, atol=5e-2, rtol=5e-2), \
        "mismatch vs f32 reference"

    print("KERNEL_OK")
</pallas_src>

<mosaic_0001>
module attributes {stable_mosaic.version = 11 : i64} {
  func.func @_rnn_kernel(%arg0: memref<64x1xf32, #tpu.memory_space<vmem>>, %arg1: memref<1x128xf32, #tpu.memory_space<vmem>>, %arg2: memref<128x128xbf16, #tpu.memory_space<vmem>>, %arg3: memref<1x128xf32, #tpu.memory_space<vmem>>, %arg4: memref<1x128xf32, #tpu.memory_space<vmem>>, %arg5: memref<1x128xf32, #tpu.memory_space<vmem>>, %arg6: memref<64x128xf32, #tpu.memory_space<vmem>>) attributes {dimension_semantics = [], scalar_prefetch = 0 : i64, scratch_operands = 1 : i64, tpu.core_type = #tpu.core_type<tc>} {
    %c0 = arith.constant 0 : index
    %c0_0 = arith.constant 0 : index
    %0 = vector.load %arg0[%c0, %c0_0] : memref<64x1xf32, #tpu.memory_space<vmem>>, vector<64x1xf32>
    %c0_1 = arith.constant 0 : index
    %c0_2 = arith.constant 0 : index
    %1 = vector.load %arg1[%c0_1, %c0_2] : memref<1x128xf32, #tpu.memory_space<vmem>>, vector<1x128xf32>
    %2 = vector.broadcast %0 : vector<64x1xf32> to vector<64x128xf32>
    %3 = vector.broadcast %1 : vector<1x128xf32> to vector<64x128xf32>
    %4 = arith.mulf %2, %3 : vector<64x128xf32>
    %c0_3 = arith.constant 0 : index
    %c0_4 = arith.constant 0 : index
    %5 = vector.load %arg3[%c0_3, %c0_4] : memref<1x128xf32, #tpu.memory_space<vmem>>, vector<1x128xf32>
    %6 = vector.broadcast %5 : vector<1x128xf32> to vector<64x128xf32>
    %7 = arith.addf %4, %6 : vector<64x128xf32>
    %c0_5 = arith.constant 0 : index
    %c0_6 = arith.constant 0 : index
    %8 = vector.load %arg6[%c0_5, %c0_6] : memref<64x128xf32, #tpu.memory_space<vmem>>, vector<64x128xf32>
    tpu.vector_store %arg6[%c0_5, %c0_6], %7 {strides = array<i32>} : memref<64x128xf32, #tpu.memory_space<vmem>>, vector<64x128xf32>,
    %c0_7 = arith.constant 0 : index
    %c0_8 = arith.constant 0 : index
    %9 = vector.load %arg2[%c0_7, %c0_8] : memref<128x128xbf16, #tpu.memory_space<vmem>>, vector<128x128xbf16>
    %c0_9 = arith.constant 0 : index
    %c0_10 = arith.constant 0 : index
    %10 = vector.load %arg4[%c0_9, %c0_10] : memref<1x128xf32, #tpu.memory_space<vmem>>, vector<1x128xf32>
    %11 = arith.truncf %10 : vector<1x128xf32> to vector<1x128xbf16>
    %cst = arith.constant dense<0.000000e+00> : vector<1x128xf32>
    %12 = tpu.matmul %11, %9, %cst {dimension_numbers = #tpu.dot_dimension_numbers<[1], [0], [0], [1], [0, 0, 1, 1], [], []>} : vector<1x128xbf16>, vector<128x128xbf16>, vector<1x128xf32> -> vector<1x128xf32>
    %c0_11 = arith.constant 0 : index
    %c0_12 = arith.constant 0 : index
    %13 = vector.load %arg6[%c0_11, %c0_12] : memref<64x128xf32, #tpu.memory_space<vmem>>, vector<1x128xf32>
    %14 = arith.addf %13, %12 : vector<1x128xf32>
    %15 = math.tanh %14 : vector<1x128xf32>
    %16 = arith.truncf %15 : vector<1x128xf32> to vector<1x128xbf16>
    %cst_13 = arith.constant dense<0.000000e+00> : vector<1x128xf32>
    %17 = tpu.matmul %16, %9, %cst_13 {dimension_numbers = #tpu.dot_dimension_numbers<[1], [0], [0], [1], [0, 0, 1, 1], [], []>} : vector<1x128xbf16>, vector<128x128xbf16>, vector<1x128xf32> -> vector<1x128xf32>
    %c1 = arith.constant 1 : index
    %c0_14 = arith.constant 0 : index
    %18 = vector.load %arg6[%c1, %c0_14] : memref<64x128xf32, #tpu.memory_space<vmem>>, vector<1x128xf32>
    %19 = arith.addf %18, %17 : vector<1x128xf32>
    %20 = math.tanh %19 : vector<1x128xf32>
    %21 = arith.truncf %20 : vector<1x128xf32> to vector<1x128xbf16>
    %cst_15 = arith.constant dense<0.000000e+00> : vector<1x128xf32>
    %22 = tpu.matmul %21, %9, %cst_15 {dimension_numbers = #tpu.dot_dimension_numbers<[1], [0], [0], [1], [0, 0, 1, 1], [], []>} : vector<1x128xbf16>, vector<128x128xbf16>, vector<1x128xf32> -> vector<1x128xf32>
    %c2 = arith.constant 2 : index
    %c0_16 = arith.constant 0 : index
    %23 = vector.load %arg6[%c2, %c0_16] : memref<64x128xf32, #tpu.memory_space<vmem>>, vector<1x128xf32>
    %24 = arith.addf %23, %22 : vector<1x128xf32>
    %25 = math.tanh %24 : vector<1x128xf32>
    %26 = arith.truncf %25 : vector<1x128xf32> to vector<1x128xbf16>
    %cst_17 = arith.constant dense<0.000000e+00> : vector<1x128xf32>
    %27 = tpu.matmul %26, %9, %cst_17 {dimension_numbers = #tpu.dot_dimension_numbers<[1], [0], [0], [1], [0, 0, 1, 1], [], []>} : vector<1x128xbf16>, vector<128x128xbf16>, vector<1x128xf32> -> vector<1x128xf32>
    %c3 = arith.constant 3 : index
    %c0_18 = arith.constant 0 : index
    %28 = vector.load %arg6[%c3, %c0_18] : memref<64x128xf32, #tpu.memory_space<vmem>>, vector<1x128xf32>
    %29 = arith.addf %28, %27 : vector<1x128xf32>
    %30 = math.tanh %29 : vector<1x128xf32>
    %31 = arith.truncf %30 : vector<1x128xf32> to vector<1x128xbf16>
    %cst_19 = arith.constant dense<0.000000e+00> : vector<1x128xf32>
    %32 = tpu.matmul %31, %9, %cst_19 {dimension_numbers = #tpu.dot_dimension_numbers<[1], [0], [0], [1], [0, 0, 1, 1], [], []>} : vector<1x128xbf16>, vector<128x128xbf16>, vector<1x128xf32> -> vector<1x128xf32>
    %c4 = arith.constant 4 : index
    %c0_20 = arith.constant 0 : index
    %33 = vector.load %arg6[%c4, %c0_20] : memref<64x128xf32, #tpu.memory_space<vmem>>, vector<1x128xf32>
    %34 = arith.addf %33, %32 : vector<1x128xf32>
    %35 = math.tanh %34 : vector<1x128xf32>
    %36 = arith.truncf %35 : vector<1x128xf32> to vector<1x128xbf16>
    %cst_21 = arith.constant dense<0.000000e+00> : vector<1x128xf32>
    %37 = tpu.matmul %36, %9, %cst_21 {dimension_numbers = #tpu.dot_dimension_numbers<[1], [0], [0], [1], [0, 0, 1, 1], [], []>} : vector<1x128xbf16>, vector<128x128xbf16>, vector<1x128xf32> -> vector<1x128xf32>
    %c5 = arith.constant 5 : index
    %c0_22 = arith.constant 0 : index
    %38 = vector.load %arg6[%c5, %c0_22] : memref<64x128xf32, #tpu.memory_space<vmem>>, vector<1x128xf32>
    %39 = arith.addf %38, %37 : vector<1x128xf32>
    %40 = math.tanh %39 : vector<1x128xf32>
    %41 = arith.truncf %40 : vector<1x128xf32> to vector<1x128xbf16>
    %cst_23 = arith.constant dense<0.000000e+00> : vector<1x128xf32>
    %42 = tpu.matmul %41, %9, %cst_23 {dimension_numbers = #tpu.dot_dimension_numbers<[1], [0], [0], [1], [0, 0, 1, 1], [], []>} : vector<1x128xbf16>, vector<128x128xbf16>, vector<1x128xf32> -> vector<1x128xf32>
    %c6 = arith.constant 6 : index
    %c0_24 = arith.constant 0 : index
    %43 = vector.load %arg6[%c6, %c0_24] : memref<64x128xf32, #tpu.memory_space<vmem>>, vector<1x128xf32>
    %44 = arith.addf %43, %42 : vector<1x128xf32>
    %45 = math.tanh %44 : vector<1x128xf32>
    %46 = arith.truncf %45 : vector<1x128xf32> to vector<1x128xbf16>
    %cst_25 = arith.constant dense<0.000000e+00> : vector<1x128xf32>
    %47 = tpu.matmul %46, %9, %cst_25 {dimension_numbers = #tpu.dot_dimension_numbers<[1], [0], [0], [1], [0, 0, 1, 1], [], []>} : vector<1x128xbf16>, vector<128x128xbf16>, vector<1x128xf32> -> vector<1x128xf32>
    %c7 = arith.constant 7 : index
    %c0_26 = arith.constant 0 : index
    %48 = vector.load %arg6[%c7, %c0_26] : memref<64x128xf32, #tpu.memory_space<vmem>>, vector<1x128xf32>
    %49 = arith.addf %48, %47 : vector<1x128xf32>
    %50 = math.tanh %49 : vector<1x128xf32>
    %51 = arith.truncf %50 : vector<1x128xf32> to vector<1x128xbf16>
    %cst_27 = arith.constant dense<0.000000e+00> : vector<1x128xf32>
    %52 = tpu.matmul %51, %9, %cst_27 {dimension_numbers = #tpu.dot_dimension_numbers<[1], [0], [0], [1], [0, 0, 1, 1], [], []>} : vector<1x128xbf16>, vector<128x128xbf16>, vector<1x128xf32> -> vector<1x128xf32>
    %c8 = arith.constant 8 : index
    %c0_28 = arith.constant 0 : index
    %53 = vector.load %arg6[%c8, %c0_28] : memref<64x128xf32, #tpu.memory_space<vmem>>, vector<1x128xf32>
    %54 = arith.addf %53, %52 : vector<1x128xf32>
    %55 = math.tanh %54 : vector<1x128xf32>
    %56 = arith.truncf %55 : vector<1x128xf32> to vector<1x128xbf16>
    %cst_29 = arith.constant dense<0.000000e+00> : vector<1x128xf32>
    %57 = tpu.matmul %56, %9, %cst_29 {dimension_numbers = #tpu.dot_dimension_numbers<[1], [0], [0], [1], [0, 0, 1, 1], [], []>} : vector<1x128xbf16>, vector<128x128xbf16>, vector<1x128xf32> -> vector<1x128xf32>
    %c9 = arith.constant 9 : index
    %c0_30 = arith.constant 0 : index
    %58 = vector.load %arg6[%c9, %c0_30] : memref<64x128xf32, #tpu.memory_space<vmem>>, vector<1x128xf32>
    %59 = arith.addf %58, %57 : vector<1x128xf32>
    %60 = math.tanh %59 : vector<1x128xf32>
    %61 = arith.truncf %60 : vector<1x128xf32> to vector<1x128xbf16>
    %cst_31 = arith.constant dense<0.000000e+00> : vector<1x128xf32>
    %62 = tpu.matmul %61, %9, %cst_31 {dimension_numbers = #tpu.dot_dimension_numbers<[1], [0], [0], [1], [0, 0, 1, 1], [], []>} : vector<1x128xbf16>, vector<128x128xbf16>, vector<1x128xf32> -> vector<1x128xf32>
    %c10 = arith.constant 10 : index
    %c0_32 = arith.constant 0 : index
    %63 = vector.load %arg6[%c10, %c0_32] : memref<64x128xf32, #tpu.memory_space<vmem>>, vector<1x128xf32>
    %64 = arith.addf %63, %62 : vector<1x128xf32>
    %65 = math.tanh %64 : vector<1x128xf32>
    %66 = arith.truncf %65 : vector<1x128xf32> to vector<1x128xbf16>
    %cst_33 = arith.constant dense<0.000000e+00> : vector<1x128xf32>
    %67 = tpu.matmul %66, %9, %cst_33 {dimension_numbers = #tpu.dot_dimension_numbers<[1], [0], [0], [1], [0, 0, 1, 1], [], []>} : vector<1x128xbf16>, vector<128x128xbf16>, vector<1x128xf32> -> vector<1x128xf32>
    %c11 = arith.constant 11 : index
    %c0_34 = arith.constant 0 : index
    %68 = vector.load %arg6[%c11, %c0_34] : memref<64x128xf32, #tpu.memory_space<vmem>>, vector<1x128xf32>
    %69 = arith.addf %68, %67 : vector<1x128xf32>
    %70 = math.tanh %69 : vector<1x128xf32>
    %71 = arith.truncf %70 : vector<1x128xf32> to vector<1x128xbf16>
    %cst_35 = arith.constant dense<0.000000e+00> : vector<1x128xf32>
    %72 = tpu.matmul %71, %9, %cst_35 {dimension_numbers = #tpu.dot_dimension_numbers<[1], [0], [0], [1], [0, 0, 1, 1], [], []>} : vector<1x128xbf16>, vector<128x128xbf16>, vector<1x128xf32> -> vector<1x128xf32>
    %c12 = arith.constant 12 : index
    %c0_36 = arith.constant 0 : index
    %73 = vector.load %arg6[%c12, %c0_36] : memref<64x128xf32, #tpu.memory_space<vmem>>, vector<1x128xf32>
    %74 = arith.addf %73, %72 : vector<1x128xf32>
    %75 = math.tanh %74 : vector<1x128xf32>
    %76 = arith.truncf %75 : vector<1x128xf32> to vector<1x128xbf16>
    %cst_37 = arith.constant dense<0.000000e+00> : vector<1x128xf32>
    %77 = tpu.matmul %76, %9, %cst_37 {dimension_numbers = #tpu.dot_dimension_numbers<[1], [0], [0], [1], [0, 0, 1, 1], [], []>} : vector<1x128xbf16>, vector<128x128xbf16>, vector<1x128xf32> -> vector<1x128xf32>
    %c13 = arith.constant 13 : index
    %c0_38 = arith.constant 0 : index
    %78 = vector.load %arg6[%c13, %c0_38] : memref<64x128xf32, #tpu.memory_space<vmem>>, vector<1x128xf32>
    %79 = arith.addf %78, %77 : vector<1x128xf32>
    %80 = math.tanh %79 : vector<1x128xf32>
    %81 = arith.truncf %80 : vector<1x128xf32> to vector<1x128xbf16>
    %cst_39 = arith.constant dense<0.000000e+00> : vector<1x128xf32>
    %82 = tpu.matmul %81, %9, %cst_39 {dimension_numbers = #tpu.dot_dimension_numbers<[1], [0], [0], [1], [0, 0, 1, 1], [], []>} : vector<1x128xbf16>, vector<128x128xbf16>, vector<1x128xf32> -> vector<1x128xf32>
    %c14 = arith.constant 14 : index
    %c0_40 = arith.constant 0 : index
    %83 = vector.load %arg6[%c14, %c0_40] : memref<64x128xf32, #tpu.memory_space<vmem>>, vector<1x128xf32>
    %84 = arith.addf %83, %82 : vector<1x128xf32>
    %85 = math.tanh %84 : vector<1x128xf32>
    %86 = arith.truncf %85 : vector<1x128xf32> to vector<1x128xbf16>
    %cst_41 = arith.constant dense<0.000000e+00> : vector<1x128xf32>
    %87 = tpu.matmul %86, %9, %cst_41 {dimension_numbers = #tpu.dot_dimension_numbers<[1], [0], [0], [1], [0, 0, 1, 1], [], []>} : vector<1x128xbf16>, vector<128x128xbf16>, vector<1x128xf32> -> vector<1x128xf32>
    %c15 = arith.constant 15 : index
    %c0_42 = arith.constant 0 : index
    %88 = vector.load %arg6[%c15, %c0_42] : memref<64x128xf32, #tpu.memory_space<vmem>>, vector<1x128xf32>
    %89 = arith.addf %88, %87 : vector<1x128xf32>
    %90 = math.tanh %89 : vector<1x128xf32>
    %91 = arith.truncf %90 : vector<1x128xf32> to vector<1x128xbf16>
    %cst_43 = arith.constant dense<0.000000e+00> : vector<1x128xf32>
    %92 = tpu.matmul %91, %9, %cst_43 {dimension_numbers = #tpu.dot_dimension_numbers<[1], [0], [0], [1], [0, 0, 1, 1], [], []>} : vector<1x128xbf16>, vector<128x128xbf16>, vector<1x128xf32> -> vector<1x128xf32>
    %c16 = arith.constant 16 : index
    %c0_44 = arith.constant 0 : index
    %93 = vector.load %arg6[%c16, %c0_44] : memref<64x128xf32, #tpu.memory_space<vmem>>, vector<1x128xf32>
    %94 = arith.addf %93, %92 : vector<1x128xf32>
    %95 = math.tanh %94 : vector<1x128xf32>
    %96 = arith.truncf %95 : vector<1x128xf32> to vector<1x128xbf16>
    %cst_45 = arith.constant dense<0.000000e+00> : vector<1x128xf32>
    %97 = tpu.matmul %96, %9, %cst_45 {dimension_numbers = #tpu.dot_dimension_numbers<[1], [0], [0], [1], [0, 0, 1, 1], [], []>} : vector<1x128xbf16>, vector<128x128xbf16>, vector<1x128xf32> -> vector<1x128xf32>
    %c17 = arith.constant 17 : index
    %c0_46 = arith.constant 0 : index
    %98 = vector.load %arg6[%c17, %c0_46] : memref<64x128xf32, #tpu.memory_space<vmem>>, vector<1x128xf32>
    %99 = arith.addf %98, %97 : vector<1x128xf32>
    %100 = math.tanh %99 : vector<1x128xf32>
    %101 = arith.truncf %100 : vector<1x128xf32> to vector<1x128xbf16>
    %cst_47 = arith.constant dense<0.000000e+00> : vector<1x128xf32>
    %102 = tpu.matmul %101, %9, %cst_47 {dimension_numbers = #tpu.dot_dimension_numbers<[1], [0], [0], [1], [0, 0, 1, 1], [], []>} : vector<1x128xbf16>, vector<128x128xbf16>, vector<1x128xf32> -> vector<1x128xf32>
    %c18 = arith.constant 18 : index
    %c0_48 = arith.constant 0 : index
    %103 = vector.load %arg6[%c18, %c0_48] : memref<64x128xf32, #tpu.memory_space<vmem>>, vector<1x128xf32>
    %104 = arith.addf %103, %102 : vector<1x128xf32>
    %105 = math.tanh %104 : vector<1x128xf32>
    %106 = arith.truncf %105 : vector<1x128xf32> to vector<1x128xbf16>
    %cst_49 = arith.constant dense<0.000000e+00> : vector<1x128xf32>
    %107 = tpu.matmul %106, %9, %cst_49 {dimension_numbers = #tpu.dot_dimension_numbers<[1], [0], [0], [1], [0, 0, 1, 1], [], []>} : vector<1x128xbf16>, vector<128x128xbf16>, vector<1x128xf32> -> vector<1x128xf32>
    %c19 = arith.constant 19 : index
    %c0_50 = arith.constant 0 : index
    %108 = vector.load %arg6[%c19, %c0_50] : memref<64x128xf32, #tpu.memory_space<vmem>>, vector<1x128xf32>
    %109 = arith.addf %108, %107 : vector<1x128xf32>
    %110 = math.tanh %109 : vector<1x128xf32>
    %111 = arith.truncf %110 : vector<1x128xf32> to vector<1x128xbf16>
    %cst_51 = arith.constant dense<0.000000e+00> : vector<1x128xf32>
    %112 = tpu.matmul %111, %9, %cst_51 {dimension_numbers = #tpu.dot_dimension_numbers<[1], [0], [0], [1], [0, 0, 1, 1], [], []>} : vector<1x128xbf16>, vector<128x128xbf16>, vector<1x128xf32> -> vector<1x128xf32>
    %c20 = arith.constant 20 : index
    %c0_52 = arith.constant 0 : index
    %113 = vector.load %arg6[%c20, %c0_52] : memref<64x128xf32, #tpu.memory_space<vmem>>, vector<1x128xf32>
    %114 = arith.addf %113, %112 : vector<1x128xf32>
    %115 = math.tanh %114 : vector<1x128xf32>
    %116 = arith.truncf %115 : vector<1x128xf32> to vector<1x128xbf16>
    %cst_53 = arith.constant dense<0.000000e+00> : vector<1x128xf32>
    %117 = tpu.matmul %116, %9, %cst_53 {dimension_numbers = #tpu.dot_dimension_numbers<[1], [0], [0], [1], [0, 0, 1, 1], [], []>} : vector<1x128xbf16>, vector<128x128xbf16>, vector<1x128xf32> -> vector<1x128xf32>
    %c21 = arith.constant 21 : index
    %c0_54 = arith.constant 0 : index
    %118 = vector.load %arg6[%c21, %c0_54] : memref<64x128xf32, #tpu.memory_space<vmem>>, vector<1x128xf32>
    %119 = arith.addf %118, %117 : vector<1x128xf32>
    %120 = math.tanh %119 : vector<1x128xf32>
    %121 = arith.truncf %120 : vector<1x128xf32> to vector<1x128xbf16>
    %cst_55 = arith.constant dense<0.000000e+00> : vector<1x128xf32>
    %122 = tpu.matmul %121, %9, %cst_55 {dimension_numbers = #tpu.dot_dimension_numbers<[1], [0], [0], [1], [0, 0, 1, 1], [], []>} : vector<1x128xbf16>, vector<128x128xbf16>, vector<1x128xf32> -> vector<1x128xf32>
    %c22 = arith.constant 22 : index
    %c0_56 = arith.constant 0 : index
    %123 = vector.load %arg6[%c22, %c0_56] : memref<64x128xf32, #tpu.memory_space<vmem>>, vector<1x128xf32>
    %124 = arith.addf %123, %122 : vector<1x128xf32>
    %125 = math.tanh %124 : vector<1x128xf32>
    %126 = arith.truncf %125 : vector<1x128xf32> to vector<1x128xbf16>
    %cst_57 = arith.constant dense<0.000000e+00> : vector<1x128xf32>
    %127 = tpu.matmul %126, %9, %cst_57 {dimension_numbers = #tpu.dot_dimension_numbers<[1], [0], [0], [1], [0, 0, 1, 1], [], []>} : vector<1x128xbf16>, vector<128x128xbf16>, vector<1x128xf32> -> vector<1x128xf32>
    %c23 = arith.constant 23 : index
    %c0_58 = arith.constant 0 : index
    %128 = vector.load %arg6[%c23, %c0_58] : memref<64x128xf32, #tpu.memory_space<vmem>>, vector<1x128xf32>
    %129 = arith.addf %128, %127 : vector<1x128xf32>
    %130 = math.tanh %129 : vector<1x128xf32>
    %131 = arith.truncf %130 : vector<1x128xf32> to vector<1x128xbf16>
    %cst_59 = arith.constant dense<0.000000e+00> : vector<1x128xf32>
    %132 = tpu.matmul %131, %9, %cst_59 {dimension_numbers = #tpu.dot_dimension_numbers<[1], [0], [0], [1], [0, 0, 1, 1], [], []>} : vector<1x128xbf16>, vector<128x128xbf16>, vector<1x128xf32> -> vector<1x128xf32>
    %c24 = arith.constant 24 : index
    %c0_60 = arith.constant 0 : index
    %133 = vector.load %arg6[%c24, %c0_60] : memref<64x128xf32, #tpu.memory_space<vmem>>, vector<1x128xf32>
    %134 = arith.addf %133, %132 : vector<1x128xf32>
    %135 = math.tanh %134 : vector<1x128xf32>
    %136 = arith.truncf %135 : vector<1x128xf32> to vector<1x128xbf16>
    %cst_61 = arith.constant dense<0.000000e+00> : vector<1x128xf32>
    %137 = tpu.matmul %136, %9, %cst_61 {dimension_numbers = #tpu.dot_dimension_numbers<[1], [0], [0], [1], [0, 0, 1, 1], [], []>} : vector<1x128xbf16>, vector<128x128xbf16>, vector<1x128xf32> -> vector<1x128xf32>
    %c25 = arith.constant 25 : index
    %c0_62 = arith.constant 0 : index
    %138 = vector.load %arg6[%c25, %c0_62] : memref<64x128xf32, #tpu.memory_space<vmem>>, vector<1x128xf32>
    %139 = arith.addf %138, %137 : vector<1x128xf32>
    %140 = math.tanh %139 : vector<1x128xf32>
    %141 = arith.truncf %140 : vector<1x128xf32> to vector<1x128xbf16>
    %cst_63 = arith.constant dense<0.000000e+00> : vector<1x128xf32>
    %142 = tpu.matmul %141, %9, %cst_63 {dimension_numbers = #tpu.dot_dimension_numbers<[1], [0], [0], [1], [0, 0, 1, 1], [], []>} : vector<1x128xbf16>, vector<128x128xbf16>, vector<1x128xf32> -> vector<1x128xf32>
    %c26 = arith.constant 26 : index
    %c0_64 = arith.constant 0 : index
    %143 = vector.load %arg6[%c26, %c0_64] : memref<64x128xf32, #tpu.memory_space<vmem>>, vector<1x128xf32>
    %144 = arith.addf %143, %142 : vector<1x128xf32>
    %145 = math.tanh %144 : vector<1x128xf32>
    %146 = arith.truncf %145 : vector<1x128xf32> to vector<1x128xbf16>
    %cst_65 = arith.constant dense<0.000000e+00> : vector<1x128xf32>
    %147 = tpu.matmul %146, %9, %cst_65 {dimension_numbers = #tpu.dot_dimension_numbers<[1], [0], [0], [1], [0, 0, 1, 1], [], []>} : vector<1x128xbf16>, vector<128x128xbf16>, vector<1x128xf32> -> vector<1x128xf32>
    %c27 = arith.constant 27 : index
    %c0_66 = arith.constant 0 : index
    %148 = vector.load %arg6[%c27, %c0_66] : memref<64x128xf32, #tpu.memory_space<vmem>>, vector<1x128xf32>
    %149 = arith.addf %148, %147 : vector<1x128xf32>
    %150 = math.tanh %149 : vector<1x128xf32>
    %151 = arith.truncf %150 : vector<1x128xf32> to vector<1x128xbf16>
    %cst_67 = arith.constant dense<0.000000e+00> : vector<1x128xf32>
    %152 = tpu.matmul %151, %9, %cst_67 {dimension_numbers = #tpu.dot_dimension_numbers<[1], [0], [0], [1], [0, 0, 1, 1], [], []>} : vector<1x128xbf16>, vector<128x128xbf16>, vector<1x128xf32> -> vector<1x128xf32>
    %c28 = arith.constant 28 : index
    %c0_68 = arith.constant 0 : index
    %153 = vector.load %arg6[%c28, %c0_68] : memref<64x128xf32, #tpu.memory_space<vmem>>, vector<1x128xf32>
    %154 = arith.addf %153, %152 : vector<1x128xf32>
    %155 = math.tanh %154 : vector<1x128xf32>
    %156 = arith.truncf %155 : vector<1x128xf32> to vector<1x128xbf16>
    %cst_69 = arith.constant dense<0.000000e+00> : vector<1x128xf32>
    %157 = tpu.matmul %156, %9, %cst_69 {dimension_numbers = #tpu.dot_dimension_numbers<[1], [0], [0], [1], [0, 0, 1, 1], [], []>} : vector<1x128xbf16>, vector<128x128xbf16>, vector<1x128xf32> -> vector<1x128xf32>
    %c29 = arith.constant 29 : index
    %c0_70 = arith.constant 0 : index
    %158 = vector.load %arg6[%c29, %c0_70] : memref<64x128xf32, #tpu.memory_space<vmem>>, vector<1x128xf32>
    %159 = arith.addf %158, %157 : vector<1x128xf32>
    %160 = math.tanh %159 : vector<1x128xf32>
    %161 = arith.truncf %160 : vector<1x128xf32> to vector<1x128xbf16>
    %cst_71 = arith.constant dense<0.000000e+00> : vector<1x128xf32>
    %162 = tpu.matmul %161, %9, %cst_71 {dimension_numbers = #tpu.dot_dimension_numbers<[1], [0], [0], [1], [0, 0, 1, 1], [], []>} : vector<1x128xbf16>, vector<128x128xbf16>, vector<1x128xf32> -> vector<1x128xf32>
    %c30 = arith.constant 30 : index
    %c0_72 = arith.constant 0 : index
    %163 = vector.load %arg6[%c30, %c0_72] : memref<64x128xf32, #tpu.memory_space<vmem>>, vector<1x128xf32>
    %164 = arith.addf %163, %162 : vector<1x128xf32>
    %165 = math.tanh %164 : vector<1x128xf32>
    %166 = arith.truncf %165 : vector<1x128xf32> to vector<1x128xbf16>
    %cst_73 = arith.constant dense<0.000000e+00> : vector<1x128xf32>
    %167 = tpu.matmul %166, %9, %cst_73 {dimension_numbers = #tpu.dot_dimension_numbers<[1], [0], [0], [1], [0, 0, 1, 1], [], []>} : vector<1x128xbf16>, vector<128x128xbf16>, vector<1x128xf32> -> vector<1x128xf32>
    %c31 = arith.constant 31 : index
    %c0_74 = arith.constant 0 : index
    %168 = vector.load %arg6[%c31, %c0_74] : memref<64x128xf32, #tpu.memory_space<vmem>>, vector<1x128xf32>
    %169 = arith.addf %168, %167 : vector<1x128xf32>
    %170 = math.tanh %169 : vector<1x128xf32>
    %171 = arith.truncf %170 : vector<1x128xf32> to vector<1x128xbf16>
    %cst_75 = arith.constant dense<0.000000e+00> : vector<1x128xf32>
    %172 = tpu.matmul %171, %9, %cst_75 {dimension_numbers = #tpu.dot_dimension_numbers<[1], [0], [0], [1], [0, 0, 1, 1], [], []>} : vector<1x128xbf16>, vector<128x128xbf16>, vector<1x128xf32> -> vector<1x128xf32>
    %c32 = arith.constant 32 : index
    %c0_76 = arith.constant 0 : index
    %173 = vector.load %arg6[%c32, %c0_76] : memref<64x128xf32, #tpu.memory_space<vmem>>, vector<1x128xf32>
    %174 = arith.addf %173, %172 : vector<1x128xf32>
    %175 = math.tanh %174 : vector<1x128xf32>
    %176 = arith.truncf %175 : vector<1x128xf32> to vector<1x128xbf16>
    %cst_77 = arith.constant dense<0.000000e+00> : vector<1x128xf32>
    %177 = tpu.matmul %176, %9, %cst_77 {dimension_numbers = #tpu.dot_dimension_numbers<[1], [0], [0], [1], [0, 0, 1, 1], [], []>} : vector<1x128xbf16>, vector<128x128xbf16>, vector<1x128xf32> -> vector<1x128xf32>
    %c33 = arith.constant 33 : index
    %c0_78 = arith.constant 0 : index
    %178 = vector.load %arg6[%c33, %c0_78] : memref<64x128xf32, #tpu.memory_space<vmem>>, vector<1x128xf32>
    %179 = arith.addf %178, %177 : vector<1x128xf32>
    %180 = math.tanh %179 : vector<1x128xf32>
    %181 = arith.truncf %180 : vector<1x128xf32> to vector<1x128xbf16>
    %cst_79 = arith.constant dense<0.000000e+00> : vector<1x128xf32>
    %182 = tpu.matmul %181, %9, %cst_79 {dimension_numbers = #tpu.dot_dimension_numbers<[1], [0], [0], [1], [0, 0, 1, 1], [], []>} : vector<1x128xbf16>, vector<128x128xbf16>, vector<1x128xf32> -> vector<1x128xf32>
    %c34 = arith.constant 34 : index
    %c0_80 = arith.constant 0 : index
    %183 = vector.load %arg6[%c34, %c0_80] : memref<64x128xf32, #tpu.memory_space<vmem>>, vector<1x128xf32>
    %184 = arith.addf %183, %182 : vector<1x128xf32>
    %185 = math.tanh %184 : vector<1x128xf32>
    %186 = arith.truncf %185 : vector<1x128xf32> to vector<1x128xbf16>
    %cst_81 = arith.constant dense<0.000000e+00> : vector<1x128xf32>
    %187 = tpu.matmul %186, %9, %cst_81 {dimension_numbers = #tpu.dot_dimension_numbers<[1], [0], [0], [1], [0, 0, 1, 1], [], []>} : vector<1x128xbf16>, vector<128x128xbf16>, vector<1x128xf32> -> vector<1x128xf32>
    %c35 = arith.constant 35 : index
    %c0_82 = arith.constant 0 : index
    %188 = vector.load %arg6[%c35, %c0_82] : memref<64x128xf32, #tpu.memory_space<vmem>>, vector<1x128xf32>
    %189 = arith.addf %188, %187 : vector<1x128xf32>
    %190 = math.tanh %189 : vector<1x128xf32>
    %191 = arith.truncf %190 : vector<1x128xf32> to vector<1x128xbf16>
    %cst_83 = arith.constant dense<0.000000e+00> : vector<1x128xf32>
    %192 = tpu.matmul %191, %9, %cst_83 {dimension_numbers = #tpu.dot_dimension_numbers<[1], [0], [0], [1], [0, 0, 1, 1], [], []>} : vector<1x128xbf16>, vector<128x128xbf16>, vector<1x128xf32> -> vector<1x128xf32>
    %c36 = arith.constant 36 : index
    %c0_84 = arith.constant 0 : index
    %193 = vector.load %arg6[%c36, %c0_84] : memref<64x128xf32, #tpu.memory_space<vmem>>, vector<1x128xf32>
    %194 = arith.addf %193, %192 : vector<1x128xf32>
    %195 = math.tanh %194 : vector<1x128xf32>
    %196 = arith.truncf %195 : vector<1x128xf32> to vector<1x128xbf16>
    %cst_85 = arith.constant dense<0.000000e+00> : vector<1x128xf32>
    %197 = tpu.matmul %196, %9, %cst_85 {dimension_numbers = #tpu.dot_dimension_numbers<[1], [0], [0], [1], [0, 0, 1, 1], [], []>} : vector<1x128xbf16>, vector<128x128xbf16>, vector<1x128xf32> -> vector<1x128xf32>
    %c37 = arith.constant 37 : index
    %c0_86 = arith.constant 0 : index
    %198 = vector.load %arg6[%c37, %c0_86] : memref<64x128xf32, #tpu.memory_space<vmem>>, vector<1x128xf32>
    %199 = arith.addf %198, %197 : vector<1x128xf32>
    %200 = math.tanh %199 : vector<1x128xf32>
    %201 = arith.truncf %200 : vector<1x128xf32> to vector<1x128xbf16>
    %cst_87 = arith.constant dense<0.000000e+00> : vector<1x128xf32>
    %202 = tpu.matmul %201, %9, %cst_87 {dimension_numbers = #tpu.dot_dimension_numbers<[1], [0], [0], [1], [0, 0, 1, 1], [], []>} : vector<1x128xbf16>, vector<128x128xbf16>, vector<1x128xf32> -> vector<1x128xf32>
    %c38 = arith.constant 38 : index
    %c0_88 = arith.constant 0 : index
    %203 = vector.load %arg6[%c38, %c0_88] : memref<64x128xf32, #tpu.memory_space<vmem>>, vector<1x128xf32>
    %204 = arith.addf %203, %202 : vector<1x128xf32>
    %205 = math.tanh %204 : vector<1x128xf32>
    %206 = arith.truncf %205 : vector<1x128xf32> to vector<1x128xbf16>
    %cst_89 = arith.constant dense<0.000000e+00> : vector<1x128xf32>
    %207 = tpu.matmul %206, %9, %cst_89 {dimension_numbers = #tpu.dot_dimension_numbers<[1], [0], [0], [1], [0, 0, 1, 1], [], []>} : vector<1x128xbf16>, vector<128x128xbf16>, vector<1x128xf32> -> vector<1x128xf32>
    %c39 = arith.constant 39 : index
    %c0_90 = arith.constant 0 : index
    %208 = vector.load %arg6[%c39, %c0_90] : memref<64x128xf32, #tpu.memory_space<vmem>>, vector<1x128xf32>
    %209 = arith.addf %208, %207 : vector<1x128xf32>
    %210 = math.tanh %209 : vector<1x128xf32>
    %211 = arith.truncf %210 : vector<1x128xf32> to vector<1x128xbf16>
    %cst_91 = arith.constant dense<0.000000e+00> : vector<1x128xf32>
    %212 = tpu.matmul %211, %9, %cst_91 {dimension_numbers = #tpu.dot_dimension_numbers<[1], [0], [0], [1], [0, 0, 1, 1], [], []>} : vector<1x128xbf16>, vector<128x128xbf16>, vector<1x128xf32> -> vector<1x128xf32>
    %c40 = arith.constant 40 : index
    %c0_92 = arith.constant 0 : index
    %213 = vector.load %arg6[%c40, %c0_92] : memref<64x128xf32, #tpu.memory_space<vmem>>, vector<1x128xf32>
    %214 = arith.addf %213, %212 : vector<1x128xf32>
    %215 = math.tanh %214 : vector<1x128xf32>
    %216 = arith.truncf %215 : vector<1x128xf32> to vector<1x128xbf16>
    %cst_93 = arith.constant dense<0.000000e+00> : vector<1x128xf32>
    %217 = tpu.matmul %216, %9, %cst_93 {dimension_numbers = #tpu.dot_dimension_numbers<[1], [0], [0], [1], [0, 0, 1, 1], [], []>} : vector<1x128xbf16>, vector<128x128xbf16>, vector<1x128xf32> -> vector<1x128xf32>
    %c41 = arith.constant 41 : index
    %c0_94 = arith.constant 0 : index
    %218 = vector.load %arg6[%c41, %c0_94] : memref<64x128xf32, #tpu.memory_space<vmem>>, vector<1x128xf32>
    %219 = arith.addf %218, %217 : vector<1x128xf32>
    %220 = math.tanh %219 : vector<1x128xf32>
    %221 = arith.truncf %220 : vector<1x128xf32> to vector<1x128xbf16>
    %cst_95 = arith.constant dense<0.000000e+00> : vector<1x128xf32>
    %222 = tpu.matmul %221, %9, %cst_95 {dimension_numbers = #tpu.dot_dimension_numbers<[1], [0], [0], [1], [0, 0, 1, 1], [], []>} : vector<1x128xbf16>, vector<128x128xbf16>, vector<1x128xf32> -> vector<1x128xf32>
    %c42 = arith.constant 42 : index
    %c0_96 = arith.constant 0 : index
    %223 = vector.load %arg6[%c42, %c0_96] : memref<64x128xf32, #tpu.memory_space<vmem>>, vector<1x128xf32>
    %224 = arith.addf %223, %222 : vector<1x128xf32>
    %225 = math.tanh %224 : vector<1x128xf32>
    %226 = arith.truncf %225 : vector<1x128xf32> to vector<1x128xbf16>
    %cst_97 = arith.constant dense<0.000000e+00> : vector<1x128xf32>
    %227 = tpu.matmul %226, %9, %cst_97 {dimension_numbers = #tpu.dot_dimension_numbers<[1], [0], [0], [1], [0, 0, 1, 1], [], []>} : vector<1x128xbf16>, vector<128x128xbf16>, vector<1x128xf32> -> vector<1x128xf32>
    %c43 = arith.constant 43 : index
    %c0_98 = arith.constant 0 : index
    %228 = vector.load %arg6[%c43, %c0_98] : memref<64x128xf32, #tpu.memory_space<vmem>>, vector<1x128xf32>
    %229 = arith.addf %228, %227 : vector<1x128xf32>
    %230 = math.tanh %229 : vector<1x128xf32>
    %231 = arith.truncf %230 : vector<1x128xf32> to vector<1x128xbf16>
    %cst_99 = arith.constant dense<0.000000e+00> : vector<1x128xf32>
    %232 = tpu.matmul %231, %9, %cst_99 {dimension_numbers = #tpu.dot_dimension_numbers<[1], [0], [0], [1], [0, 0, 1, 1], [], []>} : vector<1x128xbf16>, vector<128x128xbf16>, vector<1x128xf32> -> vector<1x128xf32>
    %c44 = arith.constant 44 : index
    %c0_100 = arith.constant 0 : index
    %233 = vector.load %arg6[%c44, %c0_100] : memref<64x128xf32, #tpu.memory_space<vmem>>, vector<1x128xf32>
    %234 = arith.addf %233, %232 : vector<1x128xf32>
    %235 = math.tanh %234 : vector<1x128xf32>
    %236 = arith.truncf %235 : vector<1x128xf32> to vector<1x128xbf16>
    %cst_101 = arith.constant dense<0.000000e+00> : vector<1x128xf32>
    %237 = tpu.matmul %236, %9, %cst_101 {dimension_numbers = #tpu.dot_dimension_numbers<[1], [0], [0], [1], [0, 0, 1, 1], [], []>} : vector<1x128xbf16>, vector<128x128xbf16>, vector<1x128xf32> -> vector<1x128xf32>
    %c45 = arith.constant 45 : index
    %c0_102 = arith.constant 0 : index
    %238 = vector.load %arg6[%c45, %c0_102] : memref<64x128xf32, #tpu.memory_space<vmem>>, vector<1x128xf32>
    %239 = arith.addf %238, %237 : vector<1x128xf32>
    %240 = math.tanh %239 : vector<1x128xf32>
    %241 = arith.truncf %240 : vector<1x128xf32> to vector<1x128xbf16>
    %cst_103 = arith.constant dense<0.000000e+00> : vector<1x128xf32>
    %242 = tpu.matmul %241, %9, %cst_103 {dimension_numbers = #tpu.dot_dimension_numbers<[1], [0], [0], [1], [0, 0, 1, 1], [], []>} : vector<1x128xbf16>, vector<128x128xbf16>, vector<1x128xf32> -> vector<1x128xf32>
    %c46 = arith.constant 46 : index
    %c0_104 = arith.constant 0 : index
    %243 = vector.load %arg6[%c46, %c0_104] : memref<64x128xf32, #tpu.memory_space<vmem>>, vector<1x128xf32>
    %244 = arith.addf %243, %242 : vector<1x128xf32>
    %245 = math.tanh %244 : vector<1x128xf32>
    %246 = arith.truncf %245 : vector<1x128xf32> to vector<1x128xbf16>
    %cst_105 = arith.constant dense<0.000000e+00> : vector<1x128xf32>
    %247 = tpu.matmul %246, %9, %cst_105 {dimension_numbers = #tpu.dot_dimension_numbers<[1], [0], [0], [1], [0, 0, 1, 1], [], []>} : vector<1x128xbf16>, vector<128x128xbf16>, vector<1x128xf32> -> vector<1x128xf32>
    %c47 = arith.constant 47 : index
    %c0_106 = arith.constant 0 : index
    %248 = vector.load %arg6[%c47, %c0_106] : memref<64x128xf32, #tpu.memory_space<vmem>>, vector<1x128xf32>
    %249 = arith.addf %248, %247 : vector<1x128xf32>
    %250 = math.tanh %249 : vector<1x128xf32>
    %251 = arith.truncf %250 : vector<1x128xf32> to vector<1x128xbf16>
    %cst_107 = arith.constant dense<0.000000e+00> : vector<1x128xf32>
    %252 = tpu.matmul %251, %9, %cst_107 {dimension_numbers = #tpu.dot_dimension_numbers<[1], [0], [0], [1], [0, 0, 1, 1], [], []>} : vector<1x128xbf16>, vector<128x128xbf16>, vector<1x128xf32> -> vector<1x128xf32>
    %c48 = arith.constant 48 : index
    %c0_108 = arith.constant 0 : index
    %253 = vector.load %arg6[%c48, %c0_108] : memref<64x128xf32, #tpu.memory_space<vmem>>, vector<1x128xf32>
    %254 = arith.addf %253, %252 : vector<1x128xf32>
    %255 = math.tanh %254 : vector<1x128xf32>
    %256 = arith.truncf %255 : vector<1x128xf32> to vector<1x128xbf16>
    %cst_109 = arith.constant dense<0.000000e+00> : vector<1x128xf32>
    %257 = tpu.matmul %256, %9, %cst_109 {dimension_numbers = #tpu.dot_dimension_numbers<[1], [0], [0], [1], [0, 0, 1, 1], [], []>} : vector<1x128xbf16>, vector<128x128xbf16>, vector<1x128xf32> -> vector<1x128xf32>
    %c49 = arith.constant 49 : index
    %c0_110 = arith.constant 0 : index
    %258 = vector.load %arg6[%c49, %c0_110] : memref<64x128xf32, #tpu.memory_space<vmem>>, vector<1x128xf32>
    %259 = arith.addf %258, %257 : vector<1x128xf32>
    %260 = math.tanh %259 : vector<1x128xf32>
    %261 = arith.truncf %260 : vector<1x128xf32> to vector<1x128xbf16>
    %cst_111 = arith.constant dense<0.000000e+00> : vector<1x128xf32>
    %262 = tpu.matmul %261, %9, %cst_111 {dimension_numbers = #tpu.dot_dimension_numbers<[1], [0], [0], [1], [0, 0, 1, 1], [], []>} : vector<1x128xbf16>, vector<128x128xbf16>, vector<1x128xf32> -> vector<1x128xf32>
    %c50 = arith.constant 50 : index
    %c0_112 = arith.constant 0 : index
    %263 = vector.load %arg6[%c50, %c0_112] : memref<64x128xf32, #tpu.memory_space<vmem>>, vector<1x128xf32>
    %264 = arith.addf %263, %262 : vector<1x128xf32>
    %265 = math.tanh %264 : vector<1x128xf32>
    %266 = arith.truncf %265 : vector<1x128xf32> to vector<1x128xbf16>
    %cst_113 = arith.constant dense<0.000000e+00> : vector<1x128xf32>
    %267 = tpu.matmul %266, %9, %cst_113 {dimension_numbers = #tpu.dot_dimension_numbers<[1], [0], [0], [1], [0, 0, 1, 1], [], []>} : vector<1x128xbf16>, vector<128x128xbf16>, vector<1x128xf32> -> vector<1x128xf32>
    %c51 = arith.constant 51 : index
    %c0_114 = arith.constant 0 : index
    %268 = vector.load %arg6[%c51, %c0_114] : memref<64x128xf32, #tpu.memory_space<vmem>>, vector<1x128xf32>
    %269 = arith.addf %268, %267 : vector<1x128xf32>
    %270 = math.tanh %269 : vector<1x128xf32>
    %271 = arith.truncf %270 : vector<1x128xf32> to vector<1x128xbf16>
    %cst_115 = arith.constant dense<0.000000e+00> : vector<1x128xf32>
    %272 = tpu.matmul %271, %9, %cst_115 {dimension_numbers = #tpu.dot_dimension_numbers<[1], [0], [0], [1], [0, 0, 1, 1], [], []>} : vector<1x128xbf16>, vector<128x128xbf16>, vector<1x128xf32> -> vector<1x128xf32>
    %c52 = arith.constant 52 : index
    %c0_116 = arith.constant 0 : index
    %273 = vector.load %arg6[%c52, %c0_116] : memref<64x128xf32, #tpu.memory_space<vmem>>, vector<1x128xf32>
    %274 = arith.addf %273, %272 : vector<1x128xf32>
    %275 = math.tanh %274 : vector<1x128xf32>
    %276 = arith.truncf %275 : vector<1x128xf32> to vector<1x128xbf16>
    %cst_117 = arith.constant dense<0.000000e+00> : vector<1x128xf32>
    %277 = tpu.matmul %276, %9, %cst_117 {dimension_numbers = #tpu.dot_dimension_numbers<[1], [0], [0], [1], [0, 0, 1, 1], [], []>} : vector<1x128xbf16>, vector<128x128xbf16>, vector<1x128xf32> -> vector<1x128xf32>
    %c53 = arith.constant 53 : index
    %c0_118 = arith.constant 0 : index
    %278 = vector.load %arg6[%c53, %c0_118] : memref<64x128xf32, #tpu.memory_space<vmem>>, vector<1x128xf32>
    %279 = arith.addf %278, %277 : vector<1x128xf32>
    %280 = math.tanh %279 : vector<1x128xf32>
    %281 = arith.truncf %280 : vector<1x128xf32> to vector<1x128xbf16>
    %cst_119 = arith.constant dense<0.000000e+00> : vector<1x128xf32>
    %282 = tpu.matmul %281, %9, %cst_119 {dimension_numbers = #tpu.dot_dimension_numbers<[1], [0], [0], [1], [0, 0, 1, 1], [], []>} : vector<1x128xbf16>, vector<128x128xbf16>, vector<1x128xf32> -> vector<1x128xf32>
    %c54 = arith.constant 54 : index
    %c0_120 = arith.constant 0 : index
    %283 = vector.load %arg6[%c54, %c0_120] : memref<64x128xf32, #tpu.memory_space<vmem>>, vector<1x128xf32>
    %284 = arith.addf %283, %282 : vector<1x128xf32>
    %285 = math.tanh %284 : vector<1x128xf32>
    %286 = arith.truncf %285 : vector<1x128xf32> to vector<1x128xbf16>
    %cst_121 = arith.constant dense<0.000000e+00> : vector<1x128xf32>
    %287 = tpu.matmul %286, %9, %cst_121 {dimension_numbers = #tpu.dot_dimension_numbers<[1], [0], [0], [1], [0, 0, 1, 1], [], []>} : vector<1x128xbf16>, vector<128x128xbf16>, vector<1x128xf32> -> vector<1x128xf32>
    %c55 = arith.constant 55 : index
    %c0_122 = arith.constant 0 : index
    %288 = vector.load %arg6[%c55, %c0_122] : memref<64x128xf32, #tpu.memory_space<vmem>>, vector<1x128xf32>
    %289 = arith.addf %288, %287 : vector<1x128xf32>
    %290 = math.tanh %289 : vector<1x128xf32>
    %291 = arith.truncf %290 : vector<1x128xf32> to vector<1x128xbf16>
    %cst_123 = arith.constant dense<0.000000e+00> : vector<1x128xf32>
    %292 = tpu.matmul %291, %9, %cst_123 {dimension_numbers = #tpu.dot_dimension_numbers<[1], [0], [0], [1], [0, 0, 1, 1], [], []>} : vector<1x128xbf16>, vector<128x128xbf16>, vector<1x128xf32> -> vector<1x128xf32>
    %c56 = arith.constant 56 : index
    %c0_124 = arith.constant 0 : index
    %293 = vector.load %arg6[%c56, %c0_124] : memref<64x128xf32, #tpu.memory_space<vmem>>, vector<1x128xf32>
    %294 = arith.addf %293, %292 : vector<1x128xf32>
    %295 = math.tanh %294 : vector<1x128xf32>
    %296 = arith.truncf %295 : vector<1x128xf32> to vector<1x128xbf16>
    %cst_125 = arith.constant dense<0.000000e+00> : vector<1x128xf32>
    %297 = tpu.matmul %296, %9, %cst_125 {dimension_numbers = #tpu.dot_dimension_numbers<[1], [0], [0], [1], [0, 0, 1, 1], [], []>} : vector<1x128xbf16>, vector<128x128xbf16>, vector<1x128xf32> -> vector<1x128xf32>
    %c57 = arith.constant 57 : index
    %c0_126 = arith.constant 0 : index
    %298 = vector.load %arg6[%c57, %c0_126] : memref<64x128xf32, #tpu.memory_space<vmem>>, vector<1x128xf32>
    %299 = arith.addf %298, %297 : vector<1x128xf32>
    %300 = math.tanh %299 : vector<1x128xf32>
    %301 = arith.truncf %300 : vector<1x128xf32> to vector<1x128xbf16>
    %cst_127 = arith.constant dense<0.000000e+00> : vector<1x128xf32>
    %302 = tpu.matmul %301, %9, %cst_127 {dimension_numbers = #tpu.dot_dimension_numbers<[1], [0], [0], [1], [0, 0, 1, 1], [], []>} : vector<1x128xbf16>, vector<128x128xbf16>, vector<1x128xf32> -> vector<1x128xf32>
    %c58 = arith.constant 58 : index
    %c0_128 = arith.constant 0 : index
    %303 = vector.load %arg6[%c58, %c0_128] : memref<64x128xf32, #tpu.memory_space<vmem>>, vector<1x128xf32>
    %304 = arith.addf %303, %302 : vector<1x128xf32>
    %305 = math.tanh %304 : vector<1x128xf32>
    %306 = arith.truncf %305 : vector<1x128xf32> to vector<1x128xbf16>
    %cst_129 = arith.constant dense<0.000000e+00> : vector<1x128xf32>
    %307 = tpu.matmul %306, %9, %cst_129 {dimension_numbers = #tpu.dot_dimension_numbers<[1], [0], [0], [1], [0, 0, 1, 1], [], []>} : vector<1x128xbf16>, vector<128x128xbf16>, vector<1x128xf32> -> vector<1x128xf32>
    %c59 = arith.constant 59 : index
    %c0_130 = arith.constant 0 : index
    %308 = vector.load %arg6[%c59, %c0_130] : memref<64x128xf32, #tpu.memory_space<vmem>>, vector<1x128xf32>
    %309 = arith.addf %308, %307 : vector<1x128xf32>
    %310 = math.tanh %309 : vector<1x128xf32>
    %311 = arith.truncf %310 : vector<1x128xf32> to vector<1x128xbf16>
    %cst_131 = arith.constant dense<0.000000e+00> : vector<1x128xf32>
    %312 = tpu.matmul %311, %9, %cst_131 {dimension_numbers = #tpu.dot_dimension_numbers<[1], [0], [0], [1], [0, 0, 1, 1], [], []>} : vector<1x128xbf16>, vector<128x128xbf16>, vector<1x128xf32> -> vector<1x128xf32>
    %c60 = arith.constant 60 : index
    %c0_132 = arith.constant 0 : index
    %313 = vector.load %arg6[%c60, %c0_132] : memref<64x128xf32, #tpu.memory_space<vmem>>, vector<1x128xf32>
    %314 = arith.addf %313, %312 : vector<1x128xf32>
    %315 = math.tanh %314 : vector<1x128xf32>
    %316 = arith.truncf %315 : vector<1x128xf32> to vector<1x128xbf16>
    %cst_133 = arith.constant dense<0.000000e+00> : vector<1x128xf32>
    %317 = tpu.matmul %316, %9, %cst_133 {dimension_numbers = #tpu.dot_dimension_numbers<[1], [0], [0], [1], [0, 0, 1, 1], [], []>} : vector<1x128xbf16>, vector<128x128xbf16>, vector<1x128xf32> -> vector<1x128xf32>
    %c61 = arith.constant 61 : index
    %c0_134 = arith.constant 0 : index
    %318 = vector.load %arg6[%c61, %c0_134] : memref<64x128xf32, #tpu.memory_space<vmem>>, vector<1x128xf32>
    %319 = arith.addf %318, %317 : vector<1x128xf32>
    %320 = math.tanh %319 : vector<1x128xf32>
    %321 = arith.truncf %320 : vector<1x128xf32> to vector<1x128xbf16>
    %cst_135 = arith.constant dense<0.000000e+00> : vector<1x128xf32>
    %322 = tpu.matmul %321, %9, %cst_135 {dimension_numbers = #tpu.dot_dimension_numbers<[1], [0], [0], [1], [0, 0, 1, 1], [], []>} : vector<1x128xbf16>, vector<128x128xbf16>, vector<1x128xf32> -> vector<1x128xf32>
    %c62 = arith.constant 62 : index
    %c0_136 = arith.constant 0 : index
    %323 = vector.load %arg6[%c62, %c0_136] : memref<64x128xf32, #tpu.memory_space<vmem>>, vector<1x128xf32>
    %324 = arith.addf %323, %322 : vector<1x128xf32>
    %325 = math.tanh %324 : vector<1x128xf32>
    %326 = arith.truncf %325 : vector<1x128xf32> to vector<1x128xbf16>
    %cst_137 = arith.constant dense<0.000000e+00> : vector<1x128xf32>
    %327 = tpu.matmul %326, %9, %cst_137 {dimension_numbers = #tpu.dot_dimension_numbers<[1], [0], [0], [1], [0, 0, 1, 1], [], []>} : vector<1x128xbf16>, vector<128x128xbf16>, vector<1x128xf32> -> vector<1x128xf32>
    %c63 = arith.constant 63 : index
    %c0_138 = arith.constant 0 : index
    %328 = vector.load %arg6[%c63, %c0_138] : memref<64x128xf32, #tpu.memory_space<vmem>>, vector<1x128xf32>
    %329 = arith.addf %328, %327 : vector<1x128xf32>
    %330 = math.tanh %329 : vector<1x128xf32>
    %c0_139 = arith.constant 0 : index
    %c0_140 = arith.constant 0 : index
    %331 = vector.load %arg5[%c0_139, %c0_140] : memref<1x128xf32, #tpu.memory_space<vmem>>, vector<1x128xf32>
    tpu.vector_store %arg5[%c0_139, %c0_140], %330 {strides = array<i32>} : memref<1x128xf32, #tpu.memory_space<vmem>>, vector<1x128xf32>,
    return
  }
}

</mosaic_0001>

<bundles_post_ra>
// kernel: tpu_custom_call.1
= control target key start
LH: loop header
LB: loop body
LE: loop exit
PB: predicated region body
PF: predicated region fallthrough
CT: control target
= control target key end

     0   :  { %v5060_v1 = vmov 0.0   ;;  %vm5061_vm0 = vmmov 0   ;;  %v5062_v3 = vmov 0   ;;  %s6471_s0 = inlined_call_operand.vmem [shape: f32[64,1], index: 0, kind: input, shape index: {}]   ;;  %s6472_s1 = inlined_call_operand.vmem [shape: f32[1,128], index: 1, kind: input, shape index: {}]   ;;  %s6473_s2 = inlined_call_operand.vmem [shape: bf16[128,128], index: 2, kind: input, shape index: {}]   ;;  %s6474_s3 = inlined_call_operand.vmem [shape: f32[1,128], index: 3, kind: input, shape index: {}]   ;;  %s6475_s4 = inlined_call_operand.vmem [shape: f32[1,128], index: 4, kind: input, shape index: {}]   ;;  %s6476_s5 = inlined_call_operand.hbm [shape: f32[1,128], index: 5, kind: output, shape index: {}]  }
   0x1   :  { %v5097_v0 = vld [vmem:[%s6473_s2] sm:$0xff]   ;;  %3590 = vmatprep.subr.bf16.mxu0 %v5060_v1  ;;  %3610 = vmatprep.subr.bf16.mxu1 %v5060_v1  ;;  %v5105_v2 = vld [vmem:[%s6473_s2 + $0x8] sm:$0xff]   ;;  %v5118_v4 = vld [vmem:[%s6473_s2 + $0x10] sm:$0xff]  }
   0x2   :  { %3591 = vmatpush3.bf16.msra.mxu0 %v5097_v0  ;;  %3606 = vmatprep.mubr.msk.bf16.mxu0 %vm5061_vm0, %v5060_v1  ;;  %v22_v5 = vld [vmem:[%s6471_s0] sm:$0xff]  ;;  %v5130_v6 = vld [vmem:[%s6473_s2 + $0x18] sm:$0xff]   ;;  %v23_v7 = vld [vmem:[%s6471_s0 + $0x8] sm:$0xff] }
   0x3   :  { %3592 = vmatprep.subr.bf16.mxu0 %v5060_v1  ;;  %4874 = vset.pattern.permute.xlu0 %v5062_v3 }
   0x4   :  { %3611 = vmatpush3.bf16.msra.mxu1 %v5097_v0  ;;  %3626 = vmatprep.mubr.msk.bf16.mxu1 %vm5061_vm0, %v5060_v1 }
   0x5   :  { %3612 = vmatprep.subr.bf16.mxu1 %v5060_v1  ;;  %4875 = vset.pattern.permute.xlu1 %v5062_v3 }
   0x6   :  { %3593 = vmatpush3.bf16.msra.mxu0 %v5105_v2  ;;  %33 = vperm.xlu0 %4874, %v22_v5  }
   0x7   :  { %3594 = vmatprep.subr.bf16.mxu0 %v5060_v1 }
   0x8   :  { %3613 = vmatpush3.bf16.msra.mxu1 %v5105_v2 }
   0x9   :  { %3614 = vmatprep.subr.bf16.mxu1 %v5060_v1 }
   0xa   :  { %3595 = vmatpush3.bf16.msra.mxu0 %v5118_v4 }
   0xb   :  { %10 = vsyncpa [#allocation4], 0  ;;  %3596 = vmatprep.subr.bf16.mxu0 %v5060_v1  ;;  %38 = vperm.xlu0 %4874, %v23_v7   ;;  %v5142_v8 = vld [vmem:[%s6473_s2 + $0x20] sm:$0xff]   ;;  %v5154_v10 = vld [vmem:[%s6473_s2 + $0x28] sm:$0xff]  }
   0xc   :  { %3615 = vmatpush3.bf16.msra.mxu1 %v5118_v4  ;;  %v26_v9 = vld [vmem:[%s6471_s0 + $0x20] sm:$0xff]  ;;  %v28_v11 = vld [vmem:[%s6471_s0 + $0x30] sm:$0xff]  ;;  %v5175_v13 = vld [vmem:[%s6473_s2 + $0x38] sm:$0xff]  }
   0xd   :  { %3616 = vmatprep.subr.bf16.mxu1 %v5060_v1  ;;  %v5166_v12 = vld [vmem:[%s6473_s2 + $0x30] sm:$0xff]   ;;  %v124_v14 = vld [vmem:[%s6475_s4] sm:$0x1] }
   0xe   :  { %3597 = vmatpush3.bf16.msra.mxu0 %v5130_v6  ;;  %v125_v15 = vpack.c.bf16 %v124_v14, %v124_v14  ;;  %v5208_v16 = vld [vmem:[%s6472_s1] ss:$0 sm:$0xff] }
   0xf   :  { %3598 = vmatprep.subr.bf16.mxu0 %v5060_v1  ;;  %53 = vperm.xlu0 %4874, %v26_v9   ;;  %v5213_v17 = vld [vmem:[%s6474_s3] ss:$0 sm:$0xff] }
  0x10   :  { %3617 = vmatpush3.bf16.msra.mxu1 %v5130_v6 }
  0x11   :  { %3618 = vmatprep.subr.bf16.mxu1 %v5060_v1 }
  0x12   :  { %3599 = vmatpush3.bf16.msra.mxu0 %v5142_v8 }
  0x13   :  { %3600 = vmatprep.subr.bf16.mxu0 %v5060_v1  ;;  %63 = vperm.xlu0 %4874, %v28_v11  }
  0x14   :  { %3619 = vmatpush3.bf16.msra.mxu1 %v5142_v8 }
  0x15   :  { %3620 = vmatprep.subr.bf16.mxu1 %v5060_v1 }
  0x16   :  { %3601 = vmatpush3.bf16.msra.mxu0 %v5154_v10 }
  0x17   :  { %3602 = vmatprep.subr.bf16.mxu0 %v5060_v1 }
  0x18   :  { %3621 = vmatpush3.bf16.msra.mxu1 %v5154_v10 }
  0x19   :  { %3622 = vmatprep.subr.bf16.mxu1 %v5060_v1 }
  0x1a   :  { %3603 = vmatpush3.bf16.msra.mxu0 %v5166_v12 }
  0x1b   :  { %3604 = vmatprep.subr.bf16.mxu0 %v5060_v1 }
  0x1c   :  { %3623 = vmatpush3.bf16.msra.mxu1 %v5166_v12 }
  0x1d   :  { %3624 = vmatprep.subr.bf16.mxu1 %v5060_v1 }
  0x1e   :  { %3605 = vmatpush3.bf16.msra.mxu0 %v5175_v13 }
  0x1f   :  { %3630 = vmatprep.subr.bf16.mxu0 %v5060_v1 }
  0x20   :  { %3625 = vmatpush3.bf16.msra.mxu1 %v5175_v13 }
  0x21   :  { %3607 = vmatmul.mubr.bf16.vlgmr.msra.gmra.mrb[0].mxu0 %v125_v15  ;;  %3650 = vmatprep.subr.bf16.mxu1 %v5060_v1 }
  0x22   :  { %3631 = vmatpush3.bf16.msra.mxu0 %v5097_v0  ;;  %3646 = vmatprep.mubr.msk.bf16.mxu0 %vm5061_vm0, %v5060_v1 }
  0x23   :  { %3632 = vmatprep.subr.bf16.mxu0 %v5060_v1 }
  0x26   :  { %3633 = vmatpush3.bf16.msra.mxu0 %v5105_v2 }
  0x27   :  { %3634 = vmatprep.subr.bf16.mxu0 %v5060_v1 }
  0x2a   :  { %3635 = vmatpush3.bf16.msra.mxu0 %v5118_v4 }
  0x2b   :  { %3636 = vmatprep.subr.bf16.mxu0 %v5060_v1 }
  0x2e   :  { %3637 = vmatpush3.bf16.msra.mxu0 %v5130_v6 }
  0x2f   :  { %3638 = vmatprep.subr.bf16.mxu0 %v5060_v1 }
  0x32   :  { %3639 = vmatpush3.bf16.msra.mxu0 %v5142_v8 }
  0x33   :  { %3640 = vmatprep.subr.bf16.mxu0 %v5060_v1 }
  0x36   :  { %3641 = vmatpush3.bf16.msra.mxu0 %v5154_v10 }
  0x37   :  { %3642 = vmatprep.subr.bf16.mxu0 %v5060_v1 }
  0x3a   :  { %3643 = vmatpush3.bf16.msra.mxu0 %v5166_v12 }
  0x3b   :  { %3644 = vmatprep.subr.bf16.mxu0 %v5060_v1 }
  0x3e   :  { %3645 = vmatpush3.bf16.msra.mxu0 %v5175_v13 }
  0x3f   :  { %3670 = vmatprep.subr.bf16.mxu0 %v5060_v1 }
  0x85   :  { %v34_v18 = vpop.permute.xlu0 %33 }
  0x86   :  { %v77_v19 = vmul.f32 %v5208_v16, %v34_v18 }
  0x88   :  { %v92_v20 = vadd.f32 %v5213_v17, %v77_v19 }
  0x8a   :  { %v39_v21 = vpop.permute.xlu0 %38  ;;  %100 = vst [vmem:[#allocation2] sm:$0xff] %v92_v20 }
  0x8b   :  { %v78_v22 = vmul.f32 %v5208_v16, %v39_v21 }
  0x8d   :  { %v93_v23 = vadd.f32 %v5213_v17, %v78_v22 }
  0x8e   :  { %v54_v24 = vpop.permute.xlu0 %53 }
  0x8f   :  { %101 = vst [vmem:[#allocation2 + $0x8] sm:$0xff] %v93_v23  ;;  %v81_v25 = vmul.f32 %v5208_v16, %v54_v24 }
  0x91   :  { %v96_v26 = vadd.f32 %v5213_v17, %v81_v25  ;;  %v214_v30 = vld [vmem:[#allocation2] sm:$0x1]  ;;  %v258_v39 = vld [vmem:[#allocation2 + $0x1] sm:$0x1]  ;;  %v302_v47 = vld [vmem:[#allocation2 + $0x2] sm:$0x1] }
  0x92   :  { %v64_v27 = vpop.permute.xlu0 %63  ;;  %v346_v55 = vld [vmem:[#allocation2 + $0x3] sm:$0x1]  ;;  %v390_v63 = vld [vmem:[#allocation2 + $0x4] sm:$0x1]  ;;  %v434_v18 = vld [vmem:[#allocation2 + $0x5] sm:$0x1] }
  0x93   :  { %104 = vst [vmem:[#allocation2 + $0x20] sm:$0xff] %v96_v26  ;;  %v83_v28 = vmul.f32 %v5208_v16, %v64_v27  ;;  %v478_v26 = vld [vmem:[#allocation2 + $0x6] sm:$0x1] }
  0x95   :  { %v98_v29 = vadd.f32 %v5213_v17, %v83_v28 }
  0x97   :  { %106 = vst [vmem:[#allocation2 + $0x30] sm:$0xff] %v98_v29 }
  0xf4   :  { %v208_v31 = vpop.f32.mrb[0].mxu0 }
  0xf5   :  { %v215_v32 = vadd.f32 %v214_v30, %v208_v31  ;;  %v3608_v33 = vpop.f32.mrb[1].mxu0 }
  0xf6   :  { %v211_v34 = vpop.f32.mrb[2].mxu0 }
  0xf7   :  { %4884 = vtanh.f32 %v215_v32  ;;  %v3609_v35 = vpop.f32.mrb[3].mxu0  ;;  %v522_v34 = vld [vmem:[#allocation2 + $0x7] sm:$0x1] }
 0x101   :  { %v4885_v36 = vpop.eup %4884 }
 0x102   :  { %v217_v37 = vpack.c.bf16 %v4885_v36, %v4885_v36 }
 0x104   :  { %3627 = vmatmul.mubr.bf16.vlgmr.msra.gmra.mrb[0].mxu1 %v217_v37 }
 0x105   :  { %3651 = vmatpush3.bf16.msra.mxu1 %v5097_v0  ;;  %3666 = vmatprep.mubr.msk.bf16.mxu1 %vm5061_vm0, %v5060_v1 }
 0x106   :  { %3652 = vmatprep.subr.bf16.mxu1 %v5060_v1 }
 0x109   :  { %3653 = vmatpush3.bf16.msra.mxu1 %v5105_v2 }
 0x10a   :  { %3654 = vmatprep.subr.bf16.mxu1 %v5060_v1 }
 0x10d   :  { %3655 = vmatpush3.bf16.msra.mxu1 %v5118_v4 }
 0x10e   :  { %3656 = vmatprep.subr.bf16.mxu1 %v5060_v1 }
 0x111   :  { %3657 = vmatpush3.bf16.msra.mxu1 %v5130_v6 }
 0x112   :  { %3658 = vmatprep.subr.bf16.mxu1 %v5060_v1 }
 0x115   :  { %3659 = vmatpush3.bf16.msra.mxu1 %v5142_v8 }
 0x116   :  { %3660 = vmatprep.subr.bf16.mxu1 %v5060_v1 }
 0x119   :  { %3661 = vmatpush3.bf16.msra.mxu1 %v5154_v10 }
 0x11a   :  { %3662 = vmatprep.subr.bf16.mxu1 %v5060_v1 }
 0x11d   :  { %3663 = vmatpush3.bf16.msra.mxu1 %v5166_v12 }
 0x11e   :  { %3664 = vmatprep.subr.bf16.mxu1 %v5060_v1 }
 0x121   :  { %3665 = vmatpush3.bf16.msra.mxu1 %v5175_v13 }
 0x122   :  { %3690 = vmatprep.subr.bf16.mxu1 %v5060_v1 }
 0x1d7   :  { %v252_v38 = vpop.f32.mrb[0].mxu1 }
 0x1d8   :  { %v259_v40 = vadd.f32 %v258_v39, %v252_v38  ;;  %v3628_v41 = vpop.f32.mrb[1].mxu1 }
 0x1d9   :  { %v255_v42 = vpop.f32.mrb[2].mxu1 }
 0x1da   :  { %4886 = vtanh.f32 %v259_v40  ;;  %v3629_v43 = vpop.f32.mrb[3].mxu1  ;;  %v566_v42 = vld [vmem:[#allocation2 + $0x8] sm:$0x1] }
 0x1e4   :  { %v4887_v44 = vpop.eup %4886 }
 0x1e5   :  { %v261_v45 = vpack.c.bf16 %v4887_v44, %v4887_v44 }
 0x1e7   :  { %3647 = vmatmul.mubr.bf16.vlgmr.msra.gmra.mrb[4].mxu0 %v261_v45 }
 0x1e8   :  { %3671 = vmatpush3.bf16.msra.mxu0 %v5097_v0  ;;  %3686 = vmatprep.mubr.msk.bf16.mxu0 %vm5061_vm0, %v5060_v1 }
 0x1e9   :  { %3672 = vmatprep.subr.bf16.mxu0 %v5060_v1 }
 0x1ec   :  { %3673 = vmatpush3.bf16.msra.mxu0 %v5105_v2 }
 0x1ed   :  { %3674 = vmatprep.subr.bf16.mxu0 %v5060_v1 }
 0x1f0   :  { %3675 = vmatpush3.bf16.msra.mxu0 %v5118_v4 }
 0x1f1   :  { %3676 = vmatprep.subr.bf16.mxu0 %v5060_v1 }
 0x1f4   :  { %3677 = vmatpush3.bf16.msra.mxu0 %v5130_v6 }
 0x1f5   :  { %3678 = vmatprep.subr.bf16.mxu0 %v5060_v1 }
 0x1f8   :  { %3679 = vmatpush3.bf16.msra.mxu0 %v5142_v8 }
 0x1f9   :  { %3680 = vmatprep.subr.bf16.mxu0 %v5060_v1 }
 0x1fc   :  { %3681 = vmatpush3.bf16.msra.mxu0 %v5154_v10 }
 0x1fd   :  { %3682 = vmatprep.subr.bf16.mxu0 %v5060_v1 }
 0x200   :  { %3683 = vmatpush3.bf16.msra.mxu0 %v5166_v12 }
 0x201   :  { %3684 = vmatprep.subr.bf16.mxu0 %v5060_v1 }
 0x204   :  { %3685 = vmatpush3.bf16.msra.mxu0 %v5175_v13 }
 0x205   :  { %3710 = vmatprep.subr.bf16.mxu0 %v5060_v1 }
 0x2ba   :  { %v296_v46 = vpop.f32.mrb[4].mxu0 }
 0x2bb   :  { %v303_v48 = vadd.f32 %v302_v47, %v296_v46  ;;  %v3648_v49 = vpop.f32.mrb[5].mxu0 }
 0x2bc   :  { %v299_v50 = vpop.f32.mrb[6].mxu0 }
 0x2bd   :  { %4888 = vtanh.f32 %v303_v48  ;;  %v3649_v51 = vpop.f32.mrb[7].mxu0  ;;  %v610_v50 = vld [vmem:[#allocation2 + $0x9] sm:$0x1] }
 0x2c7   :  { %v4889_v52 = vpop.eup %4888 }
 0x2c8   :  { %v305_v53 = vpack.c.bf16 %v4889_v52, %v4889_v52 }
 0x2ca   :  { %3667 = vmatmul.mubr.bf16.vlgmr.msra.gmra.mrb[4].mxu1 %v305_v53 }
 0x2cb   :  { %3691 = vmatpush3.bf16.msra.mxu1 %v5097_v0  ;;  %3706 = vmatprep.mubr.msk.bf16.mxu1 %vm5061_vm0, %v5060_v1 }
 0x2cc   :  { %3692 = vmatprep.subr.bf16.mxu1 %v5060_v1 }
 0x2cf   :  { %3693 = vmatpush3.bf16.msra.mxu1 %v5105_v2 }
 0x2d0   :  { %3694 = vmatprep.subr.bf16.mxu1 %v5060_v1 }
 0x2d3   :  { %3695 = vmatpush3.bf16.msra.mxu1 %v5118_v4 }
 0x2d4   :  { %3696 = vmatprep.subr.bf16.mxu1 %v5060_v1 }
 0x2d7   :  { %3697 = vmatpush3.bf16.msra.mxu1 %v5130_v6 }
 0x2d8   :  { %3698 = vmatprep.subr.bf16.mxu1 %v5060_v1 }
 0x2db   :  { %3699 = vmatpush3.bf16.msra.mxu1 %v5142_v8 }
 0x2dc   :  { %3700 = vmatprep.subr.bf16.mxu1 %v5060_v1 }
 0x2df   :  { %3701 = vmatpush3.bf16.msra.mxu1 %v5154_v10 }
 0x2e0   :  { %3702 = vmatprep.subr.bf16.mxu1 %v5060_v1 }
 0x2e3   :  { %3703 = vmatpush3.bf16.msra.mxu1 %v5166_v12 }
 0x2e4   :  { %3704 = vmatprep.subr.bf16.mxu1 %v5060_v1 }
 0x2e7   :  { %3705 = vmatpush3.bf16.msra.mxu1 %v5175_v13 }
 0x2e8   :  { %3730 = vmatprep.subr.bf16.mxu1 %v5060_v1 }
 0x39d   :  { %v340_v54 = vpop.f32.mrb[4].mxu1 }
 0x39e   :  { %v347_v56 = vadd.f32 %v346_v55, %v340_v54  ;;  %v3668_v57 = vpop.f32.mrb[5].mxu1 }
 0x39f   :  { %v343_v58 = vpop.f32.mrb[6].mxu1 }
 0x3a0   :  { %4890 = vtanh.f32 %v347_v56  ;;  %v3669_v59 = vpop.f32.mrb[7].mxu1  ;;  %v654_v58 = vld [vmem:[#allocation2 + $0xa] sm:$0x1] }
 0x3aa   :  { %v4891_v60 = vpop.eup %4890 }
 0x3ab   :  { %v349_v61 = vpack.c.bf16 %v4891_v60, %v4891_v60 }
 0x3ad   :  { %3687 = vmatmul.mubr.bf16.vlgmr.msra.gmra.mrb[8].mxu0 %v349_v61 }
 0x3ae   :  { %3711 = vmatpush3.bf16.msra.mxu0 %v5097_v0  ;;  %3726 = vmatprep.mubr.msk.bf16.mxu0 %vm5061_vm0, %v5060_v1 }
 0x3af   :  { %3712 = vmatprep.subr.bf16.mxu0 %v5060_v1 }
 0x3b2   :  { %3713 = vmatpush3.bf16.msra.mxu0 %v5105_v2 }
 0x3b3   :  { %3714 = vmatprep.subr.bf16.mxu0 %v5060_v1 }
 0x3b6   :  { %3715 = vmatpush3.bf16.msra.mxu0 %v5118_v4 }
 0x3b7   :  { %3716 = vmatprep.subr.bf16.mxu0 %v5060_v1 }
 0x3ba   :  { %3717 = vmatpush3.bf16.msra.mxu0 %v5130_v6 }
 0x3bb   :  { %3718 = vmatprep.subr.bf16.mxu0 %v5060_v1 }
 0x3be   :  { %3719 = vmatpush3.bf16.msra.mxu0 %v5142_v8 }
 0x3bf   :  { %3720 = vmatprep.subr.bf16.mxu0 %v5060_v1 }
 0x3c2   :  { %3721 = vmatpush3.bf16.msra.mxu0 %v5154_v10 }
 0x3c3   :  { %3722 = vmatprep.subr.bf16.mxu0 %v5060_v1 }
 0x3c6   :  { %3723 = vmatpush3.bf16.msra.mxu0 %v5166_v12 }
 0x3c7   :  { %3724 = vmatprep.subr.bf16.mxu0 %v5060_v1 }
 0x3ca   :  { %3725 = vmatpush3.bf16.msra.mxu0 %v5175_v13 }
 0x3cb   :  { %3750 = vmatprep.subr.bf16.mxu0 %v5060_v1 }
 0x480   :  { %v384_v62 = vpop.f32.mrb[8].mxu0 }
 0x481   :  { %v391_v3 = vadd.f32 %v390_v63, %v384_v62  ;;  %v3688_v5 = vpop.f32.mrb[9].mxu0 }
 0x482   :  { %v387_v7 = vpop.f32.mrb[10].mxu0 }
 0x483   :  { %4892 = vtanh.f32 %v391_v3  ;;  %v3689_v9 = vpop.f32.mrb[11].mxu0  ;;  %v698_v7 = vld [vmem:[#allocation2 + $0xb] sm:$0x1] }
 0x48d   :  { %v4893_v11 = vpop.eup %4892 }
 0x48e   :  { %v393_v14 = vpack.c.bf16 %v4893_v11, %v4893_v11 }
 0x490   :  { %3707 = vmatmul.mubr.bf16.vlgmr.msra.gmra.mrb[8].mxu1 %v393_v14 }
 0x491   :  { %3731 = vmatpush3.bf16.msra.mxu1 %v5097_v0  ;;  %3746 = vmatprep.mubr.msk.bf16.mxu1 %vm5061_vm0, %v5060_v1 }
 0x492   :  { %3732 = vmatprep.subr.bf16.mxu1 %v5060_v1 }
 0x495   :  { %3733 = vmatpush3.bf16.msra.mxu1 %v5105_v2 }
 0x496   :  { %3734 = vmatprep.subr.bf16.mxu1 %v5060_v1 }
 0x499   :  { %3735 = vmatpush3.bf16.msra.mxu1 %v5118_v4 }
 0x49a   :  { %3736 = vmatprep.subr.bf16.mxu1 %v5060_v1 }
 0x49d   :  { %3737 = vmatpush3.bf16.msra.mxu1 %v5130_v6 }
 0x49e   :  { %3738 = vmatprep.subr.bf16.mxu1 %v5060_v1 }
 0x4a1   :  { %3739 = vmatpush3.bf16.msra.mxu1 %v5142_v8 }
 0x4a2   :  { %3740 = vmatprep.subr.bf16.mxu1 %v5060_v1 }
 0x4a5   :  { %3741 = vmatpush3.bf16.msra.mxu1 %v5154_v10 }
 0x4a6   :  { %3742 = vmatprep.subr.bf16.mxu1 %v5060_v1 }
 0x4a9   :  { %3743 = vmatpush3.bf16.msra.mxu1 %v5166_v12 }
 0x4aa   :  { %3744 = vmatprep.subr.bf16.mxu1 %v5060_v1 }
 0x4ad   :  { %3745 = vmatpush3.bf16.msra.mxu1 %v5175_v13 }
 0x4ae   :  { %3770 = vmatprep.subr.bf16.mxu1 %v5060_v1 }
 0x563   :  { %v428_v15 = vpop.f32.mrb[8].mxu1 }
 0x564   :  { %v435_v19 = vadd.f32 %v434_v18, %v428_v15  ;;  %v3708_v20 = vpop.f32.mrb[9].mxu1 }
 0x565   :  { %v431_v21 = vpop.f32.mrb[10].mxu1 }
 0x566   :  { %4894 = vtanh.f32 %v435_v19  ;;  %v3709_v22 = vpop.f32.mrb[11].mxu1  ;;  %v742_v21 = vld [vmem:[#allocation2 + $0xc] sm:$0x1] }
 0x570   :  { %v4895_v23 = vpop.eup %4894 }
 0x571   :  { %v437_v24 = vpack.c.bf16 %v4895_v23, %v4895_v23 }
 0x573   :  { %3727 = vmatmul.mubr.bf16.vlgmr.msra.gmra.mrb[12].mxu0 %v437_v24 }
 0x574   :  { %3751 = vmatpush3.bf16.msra.mxu0 %v5097_v0  ;;  %3766 = vmatprep.mubr.msk.bf16.mxu0 %vm5061_vm0, %v5060_v1 }
 0x575   :  { %3752 = vmatprep.subr.bf16.mxu0 %v5060_v1 }
 0x578   :  { %3753 = vmatpush3.bf16.msra.mxu0 %v5105_v2 }
 0x579   :  { %3754 = vmatprep.subr.bf16.mxu0 %v5060_v1 }
 0x57c   :  { %3755 = vmatpush3.bf16.msra.mxu0 %v5118_v4 }
 0x57d   :  { %3756 = vmatprep.subr.bf16.mxu0 %v5060_v1 }
 0x580   :  { %3757 = vmatpush3.bf16.msra.mxu0 %v5130_v6 }
 0x581   :  { %3758 = vmatprep.subr.bf16.mxu0 %v5060_v1 }
 0x584   :  { %3759 = vmatpush3.bf16.msra.mxu0 %v5142_v8 }
 0x585   :  { %3760 = vmatprep.subr.bf16.mxu0 %v5060_v1 }
 0x588   :  { %3761 = vmatpush3.bf16.msra.mxu0 %v5154_v10 }
 0x589   :  { %3762 = vmatprep.subr.bf16.mxu0 %v5060_v1 }
 0x58c   :  { %3763 = vmatpush3.bf16.msra.mxu0 %v5166_v12 }
 0x58d   :  { %3764 = vmatprep.subr.bf16.mxu0 %v5060_v1 }
 0x590   :  { %3765 = vmatpush3.bf16.msra.mxu0 %v5175_v13 }
 0x591   :  { %3790 = vmatprep.subr.bf16.mxu0 %v5060_v1 }
 0x646   :  { %v472_v25 = vpop.f32.mrb[12].mxu0 }
 0x647   :  { %v479_v27 = vadd.f32 %v478_v26, %v472_v25  ;;  %v3728_v28 = vpop.f32.mrb[13].mxu0 }
 0x648   :  { %v475_v29 = vpop.f32.mrb[14].mxu0 }
 0x649   :  { %4896 = vtanh.f32 %v479_v27  ;;  %v3729_v30 = vpop.f32.mrb[15].mxu0  ;;  %v786_v29 = vld [vmem:[#allocation2 + $0xd] sm:$0x1] }
 0x653   :  { %v4897_v31 = vpop.eup %4896 }
 0x654   :  { %v481_v32 = vpack.c.bf16 %v4897_v31, %v4897_v31 }
 0x656   :  { %3747 = vmatmul.mubr.bf16.vlgmr.msra.gmra.mrb[12].mxu1 %v481_v32 }
 0x657   :  { %3771 = vmatpush3.bf16.msra.mxu1 %v5097_v0  ;;  %3786 = vmatprep.mubr.msk.bf16.mxu1 %vm5061_vm0, %v5060_v1 }
 0x658   :  { %3772 = vmatprep.subr.bf16.mxu1 %v5060_v1 }
 0x65b   :  { %3773 = vmatpush3.bf16.msra.mxu1 %v5105_v2 }
 0x65c   :  { %3774 = vmatprep.subr.bf16.mxu1 %v5060_v1 }
 0x65f   :  { %3775 = vmatpush3.bf16.msra.mxu1 %v5118_v4 }
 0x660   :  { %3776 = vmatprep.subr.bf16.mxu1 %v5060_v1 }
 0x663   :  { %3777 = vmatpush3.bf16.msra.mxu1 %v5130_v6 }
 0x664   :  { %3778 = vmatprep.subr.bf16.mxu1 %v5060_v1 }
 0x667   :  { %3779 = vmatpush3.bf16.msra.mxu1 %v5142_v8 }
 0x668   :  { %3780 = vmatprep.subr.bf16.mxu1 %v5060_v1 }
 0x66b   :  { %3781 = vmatpush3.bf16.msra.mxu1 %v5154_v10 }
 0x66c   :  { %3782 = vmatprep.subr.bf16.mxu1 %v5060_v1 }
 0x66f   :  { %3783 = vmatpush3.bf16.msra.mxu1 %v5166_v12 }
 0x670   :  { %3784 = vmatprep.subr.bf16.mxu1 %v5060_v1 }
 0x673   :  { %3785 = vmatpush3.bf16.msra.mxu1 %v5175_v13 }
 0x674   :  { %3810 = vmatprep.subr.bf16.mxu1 %v5060_v1 }
 0x729   :  { %v516_v33 = vpop.f32.mrb[12].mxu1 }
 0x72a   :  { %v523_v35 = vadd.f32 %v522_v34, %v516_v33  ;;  %v3748_v36 = vpop.f32.mrb[13].mxu1 }
 0x72b   :  { %v519_v37 = vpop.f32.mrb[14].mxu1 }
 0x72c   :  { %4898 = vtanh.f32 %v523_v35  ;;  %v3749_v38 = vpop.f32.mrb[15].mxu1  ;;  %v830_v37 = vld [vmem:[#allocation2 + $0xe] sm:$0x1] }
 0x736   :  { %v4899_v39 = vpop.eup %4898 }
 0x737   :  { %v525_v40 = vpack.c.bf16 %v4899_v39, %v4899_v39 }
 0x739   :  { %3767 = vmatmul.mubr.bf16.vlgmr.msra.gmra.mrb[16].mxu0 %v525_v40 }
 0x73a   :  { %3791 = vmatpush3.bf16.msra.mxu0 %v5097_v0  ;;  %3806 = vmatprep.mubr.msk.bf16.mxu0 %vm5061_vm0, %v5060_v1 }
 0x73b   :  { %3792 = vmatprep.subr.bf16.mxu0 %v5060_v1 }
 0x73e   :  { %3793 = vmatpush3.bf16.msra.mxu0 %v5105_v2 }
 0x73f   :  { %3794 = vmatprep.subr.bf16.mxu0 %v5060_v1 }
 0x742   :  { %3795 = vmatpush3.bf16.msra.mxu0 %v5118_v4 }
 0x743   :  { %3796 = vmatprep.subr.bf16.mxu0 %v5060_v1 }
 0x746   :  { %3797 = vmatpush3.bf16.msra.mxu0 %v5130_v6 }
 0x747   :  { %3798 = vmatprep.subr.bf16.mxu0 %v5060_v1 }
 0x74a   :  { %3799 = vmatpush3.bf16.msra.mxu0 %v5142_v8 }
 0x74b   :  { %3800 = vmatprep.subr.bf16.mxu0 %v5060_v1 }
 0x74e   :  { %3801 = vmatpush3.bf16.msra.mxu0 %v5154_v10 }
 0x74f   :  { %3802 = vmatprep.subr.bf16.mxu0 %v5060_v1 }
 0x752   :  { %3803 = vmatpush3.bf16.msra.mxu0 %v5166_v12 }
 0x753   :  { %3804 = vmatprep.subr.bf16.mxu0 %v5060_v1 }
 0x756   :  { %3805 = vmatpush3.bf16.msra.mxu0 %v5175_v13 }
 0x757   :  { %3830 = vmatprep.subr.bf16.mxu0 %v5060_v1 }
 0x80c   :  { %v560_v41 = vpop.f32.mrb[16].mxu0 }
 0x80d   :  { %v567_v43 = vadd.f32 %v566_v42, %v560_v41  ;;  %v3768_v44 = vpop.f32.mrb[17].mxu0 }
 0x80e   :  { %v563_v45 = vpop.f32.mrb[18].mxu0  ;;  %v874_v44 = vld [vmem:[#allocation2 + $0xf] sm:$0x1] }
 0x80f   :  { %4900 = vtanh.f32 %v567_v43  ;;  %v3769_v46 = vpop.f32.mrb[19].mxu0 }
 0x819   :  { %v4901_v47 = vpop.eup %4900 }
 0x81a   :  { %v569_v48 = vpack.c.bf16 %v4901_v47, %v4901_v47 }
 0x81c   :  { %3787 = vmatmul.mubr.bf16.vlgmr.msra.gmra.mrb[16].mxu1 %v569_v48 }
 0x81d   :  { %3811 = vmatpush3.bf16.msra.mxu1 %v5097_v0  ;;  %3826 = vmatprep.mubr.msk.bf16.mxu1 %vm5061_vm0, %v5060_v1 }
 0x81e   :  { %3812 = vmatprep.subr.bf16.mxu1 %v5060_v1 }
 0x821   :  { %3813 = vmatpush3.bf16.msra.mxu1 %v5105_v2 }
 0x822   :  { %3814 = vmatprep.subr.bf16.mxu1 %v5060_v1 }
 0x825   :  { %3815 = vmatpush3.bf16.msra.mxu1 %v5118_v4 }
 0x826   :  { %3816 = vmatprep.subr.bf16.mxu1 %v5060_v1 }
 0x829   :  { %3817 = vmatpush3.bf16.msra.mxu1 %v5130_v6 }
 0x82a   :  { %3818 = vmatprep.subr.bf16.mxu1 %v5060_v1 }
 0x82d   :  { %3819 = vmatpush3.bf16.msra.mxu1 %v5142_v8 }
 0x82e   :  { %3820 = vmatprep.subr.bf16.mxu1 %v5060_v1 }
 0x831   :  { %3821 = vmatpush3.bf16.msra.mxu1 %v5154_v10 }
 0x832   :  { %3822 = vmatprep.subr.bf16.mxu1 %v5060_v1 }
 0x835   :  { %3823 = vmatpush3.bf16.msra.mxu1 %v5166_v12 }
 0x836   :  { %3824 = vmatprep.subr.bf16.mxu1 %v5060_v1 }
 0x839   :  { %3825 = vmatpush3.bf16.msra.mxu1 %v5175_v13 }
 0x83a   :  { %3850 = vmatprep.subr.bf16.mxu1 %v5060_v1 }
 0x8ef   :  { %v604_v49 = vpop.f32.mrb[16].mxu1 }
 0x8f0   :  { %v611_v51 = vadd.f32 %v610_v50, %v604_v49  ;;  %v3788_v52 = vpop.f32.mrb[17].mxu1 }
 0x8f1   :  { %v607_v53 = vpop.f32.mrb[18].mxu1 }
 0x8f2   :  { %4902 = vtanh.f32 %v611_v51  ;;  %v3789_v54 = vpop.f32.mrb[19].mxu1  ;;  %v5509_v53 = vld [vmem:[%s6473_s2] sm:$0xff]  }
 0x8fc   :  { %v4903_v55 = vpop.eup %4902 }
 0x8fd   :  { %v613_v56 = vpack.c.bf16 %v4903_v55, %v4903_v55 }
 0x8ff   :  { %3807 = vmatmul.mubr.bf16.vlgmr.msra.gmra.mrb[20].mxu0 %v613_v56 }
 0x900   :  { %3831 = vmatpush3.bf16.msra.mxu0 %v5097_v0  ;;  %3846 = vmatprep.mubr.msk.bf16.mxu0 %vm5061_vm0, %v5060_v1 }
 0x901   :  { %3832 = vmatprep.subr.bf16.mxu0 %v5060_v1 }
 0x904   :  { %3833 = vmatpush3.bf16.msra.mxu0 %v5105_v2 }
 0x905   :  { %3834 = vmatprep.subr.bf16.mxu0 %v5060_v1 }
 0x908   :  { %3835 = vmatpush3.bf16.msra.mxu0 %v5118_v4 }
 0x909   :  { %3836 = vmatprep.subr.bf16.mxu0 %v5060_v1 }
 0x90c   :  { %3837 = vmatpush3.bf16.msra.mxu0 %v5130_v6 }
 0x90d   :  { %3838 = vmatprep.subr.bf16.mxu0 %v5060_v1 }
 0x910   :  { %3839 = vmatpush3.bf16.msra.mxu0 %v5142_v8 }
 0x911   :  { %3840 = vmatprep.subr.bf16.mxu0 %v5060_v1 }
 0x914   :  { %3841 = vmatpush3.bf16.msra.mxu0 %v5154_v10 }
 0x915   :  { %3842 = vmatprep.subr.bf16.mxu0 %v5060_v1 }
 0x918   :  { %3843 = vmatpush3.bf16.msra.mxu0 %v5166_v12 }
 0x919   :  { %3844 = vmatprep.subr.bf16.mxu0 %v5060_v1 }
 0x91c   :  { %3845 = vmatpush3.bf16.msra.mxu0 %v5175_v13 }
 0x91d   :  { %3870 = vmatprep.subr.bf16.mxu0 %v5060_v1 }
 0x9d2   :  { %v648_v57 = vpop.f32.mrb[20].mxu0 }
 0x9d3   :  { %v655_v59 = vadd.f32 %v654_v58, %v648_v57  ;;  %v3808_v60 = vpop.f32.mrb[21].mxu0  ;;  %v5520_v57 = vld [vmem:[%s6473_s2 + $0x8] sm:$0xff]  }
 0x9d4   :  { %v651_v61 = vpop.f32.mrb[22].mxu0 }
 0x9d5   :  { %4904 = vtanh.f32 %v655_v59  ;;  %v3809_v62 = vpop.f32.mrb[23].mxu0  ;;  %v5529_v61 = vld [vmem:[%s6473_s2 + $0x10] sm:$0xff]  }
 0x9df   :  { %v4905_v63 = vpop.eup %4904 }
 0x9e0   :  { %v657_v3 = vpack.c.bf16 %v4905_v63, %v4905_v63 }
 0x9e2   :  { %3827 = vmatmul.mubr.bf16.vlgmr.msra.gmra.mrb[20].mxu1 %v657_v3 }
 0x9e3   :  { %3851 = vmatpush3.bf16.msra.mxu1 %v5097_v0  ;;  %3866 = vmatprep.mubr.msk.bf16.mxu1 %vm5061_vm0, %v5060_v1 }
 0x9e4   :  { %3852 = vmatprep.subr.bf16.mxu1 %v5060_v1 }
 0x9e7   :  { %3853 = vmatpush3.bf16.msra.mxu1 %v5105_v2 }
 0x9e8   :  { %3854 = vmatprep.subr.bf16.mxu1 %v5060_v1 }
 0x9eb   :  { %3855 = vmatpush3.bf16.msra.mxu1 %v5118_v4 }
 0x9ec   :  { %3856 = vmatprep.subr.bf16.mxu1 %v5060_v1 }
 0x9ef   :  { %3857 = vmatpush3.bf16.msra.mxu1 %v5130_v6 }
 0x9f0   :  { %3858 = vmatprep.subr.bf16.mxu1 %v5060_v1 }
 0x9f3   :  { %3859 = vmatpush3.bf16.msra.mxu1 %v5142_v8 }
 0x9f4   :  { %3860 = vmatprep.subr.bf16.mxu1 %v5060_v1 }
 0x9f7   :  { %3861 = vmatpush3.bf16.msra.mxu1 %v5154_v10 }
 0x9f8   :  { %3862 = vmatprep.subr.bf16.mxu1 %v5060_v1 }
 0x9fb   :  { %3863 = vmatpush3.bf16.msra.mxu1 %v5166_v12 }
 0x9fc   :  { %3864 = vmatprep.subr.bf16.mxu1 %v5060_v1 }
 0x9ff   :  { %3865 = vmatpush3.bf16.msra.mxu1 %v5175_v13 }
 0xa00   :  { %3890 = vmatprep.subr.bf16.mxu1 %v5060_v1 }
 0xab5   :  { %v692_v5 = vpop.f32.mrb[20].mxu1 }
 0xab6   :  { %v699_v9 = vadd.f32 %v698_v7, %v692_v5  ;;  %v3828_v11 = vpop.f32.mrb[21].mxu1  ;;  %v5538_v5 = vld [vmem:[%s6473_s2 + $0x18] sm:$0xff]  }
 0xab7   :  { %v695_v14 = vpop.f32.mrb[22].mxu1 }
 0xab8   :  { %4906 = vtanh.f32 %v699_v9  ;;  %v3829_v15 = vpop.f32.mrb[23].mxu1  ;;  %v5546_v9 = vld [vmem:[%s6473_s2 + $0x20] sm:$0xff]  }
 0xac2   :  { %v4907_v18 = vpop.eup %4906 }
 0xac3   :  { %v701_v19 = vpack.c.bf16 %v4907_v18, %v4907_v18 }
 0xac5   :  { %3847 = vmatmul.mubr.bf16.vlgmr.msra.gmra.mrb[24].mxu0 %v701_v19 }
 0xac6   :  { %3871 = vmatpush3.bf16.msra.mxu0 %v5097_v0  ;;  %3886 = vmatprep.mubr.msk.bf16.mxu0 %vm5061_vm0, %v5060_v1 }
 0xac7   :  { %3872 = vmatprep.subr.bf16.mxu0 %v5060_v1 }
 0xaca   :  { %3873 = vmatpush3.bf16.msra.mxu0 %v5105_v2 }
 0xacb   :  { %3874 = vmatprep.subr.bf16.mxu0 %v5060_v1 }
 0xace   :  { %3875 = vmatpush3.bf16.msra.mxu0 %v5118_v4 }
 0xacf   :  { %3876 = vmatprep.subr.bf16.mxu0 %v5060_v1 }
 0xad2   :  { %3877 = vmatpush3.bf16.msra.mxu0 %v5130_v6 }
 0xad3   :  { %3878 = vmatprep.subr.bf16.mxu0 %v5060_v1 }
 0xad6   :  { %3879 = vmatpush3.bf16.msra.mxu0 %v5142_v8 }
 0xad7   :  { %3880 = vmatprep.subr.bf16.mxu0 %v5060_v1 }
 0xada   :  { %3881 = vmatpush3.bf16.msra.mxu0 %v5154_v10 }
 0xadb   :  { %3882 = vmatprep.subr.bf16.mxu0 %v5060_v1 }
 0xade   :  { %3883 = vmatpush3.bf16.msra.mxu0 %v5166_v12 }
 0xadf   :  { %3884 = vmatprep.subr.bf16.mxu0 %v5060_v1 }
 0xae2   :  { %3885 = vmatpush3.bf16.msra.mxu0 %v5175_v13 }
 0xae3   :  { %3910 = vmatprep.subr.bf16.mxu0 %v5060_v1 }
 0xb98   :  { %v736_v20 = vpop.f32.mrb[24].mxu0 }
 0xb99   :  { %v743_v22 = vadd.f32 %v742_v21, %v736_v20  ;;  %v3848_v23 = vpop.f32.mrb[25].mxu0 }
 0xb9a   :  { %v739_v24 = vpop.f32.mrb[26].mxu0 }
 0xb9b   :  { %4908 = vtanh.f32 %v743_v22  ;;  %v3849_v25 = vpop.f32.mrb[27].mxu0 }
 0xba5   :  { %v4909_v26 = vpop.eup %4908 }
 0xba6   :  { %v745_v27 = vpack.c.bf16 %v4909_v26, %v4909_v26 }
 0xba8   :  { %3867 = vmatmul.mubr.bf16.vlgmr.msra.gmra.mrb[24].mxu1 %v745_v27 }
 0xba9   :  { %3891 = vmatpush3.bf16.msra.mxu1 %v5097_v0  ;;  %3906 = vmatprep.mubr.msk.bf16.mxu1 %vm5061_vm0, %v5060_v1 }
 0xbaa   :  { %3892 = vmatprep.subr.bf16.mxu1 %v5060_v1 }
 0xbad   :  { %3893 = vmatpush3.bf16.msra.mxu1 %v5105_v2 }
 0xbae   :  { %3894 = vmatprep.subr.bf16.mxu1 %v5060_v1 }
 0xbb1   :  { %3895 = vmatpush3.bf16.msra.mxu1 %v5118_v4 }
 0xbb2   :  { %3896 = vmatprep.subr.bf16.mxu1 %v5060_v1 }
 0xbb5   :  { %3897 = vmatpush3.bf16.msra.mxu1 %v5130_v6 }
 0xbb6   :  { %3898 = vmatprep.subr.bf16.mxu1 %v5060_v1 }
 0xbb9   :  { %3899 = vmatpush3.bf16.msra.mxu1 %v5142_v8 }
 0xbba   :  { %3900 = vmatprep.subr.bf16.mxu1 %v5060_v1 }
 0xbbd   :  { %3901 = vmatpush3.bf16.msra.mxu1 %v5154_v10 }
 0xbbe   :  { %3902 = vmatprep.subr.bf16.mxu1 %v5060_v1 }
 0xbc1   :  { %3903 = vmatpush3.bf16.msra.mxu1 %v5166_v12 }
 0xbc2   :  { %3904 = vmatprep.subr.bf16.mxu1 %v5060_v1 }
 0xbc5   :  { %3905 = vmatpush3.bf16.msra.mxu1 %v5175_v13 }
 0xbc6   :  { %3930 = vmatprep.subr.bf16.mxu1 %v5060_v1 }
 0xc7b   :  { %v780_v28 = vpop.f32.mrb[24].mxu1 }
 0xc7c   :  { %v787_v30 = vadd.f32 %v786_v29, %v780_v28  ;;  %v3868_v31 = vpop.f32.mrb[25].mxu1 }
 0xc7d   :  { %v783_v32 = vpop.f32.mrb[26].mxu1 }
 0xc7e   :  { %4910 = vtanh.f32 %v787_v30  ;;  %v3869_v33 = vpop.f32.mrb[27].mxu1 }
 0xc88   :  { %v4911_v34 = vpop.eup %4910 }
 0xc89   :  { %v789_v35 = vpack.c.bf16 %v4911_v34, %v4911_v34 }
 0xc8b   :  { %3887 = vmatmul.mubr.bf16.vlgmr.msra.gmra.mrb[28].mxu0 %v789_v35 }
 0xc8c   :  { %3911 = vmatpush3.bf16.msra.mxu0 %v5097_v0  ;;  %3926 = vmatprep.mubr.msk.bf16.mxu0 %vm5061_vm0, %v5060_v1 }
 0xc8d   :  { %3912 = vmatprep.subr.bf16.mxu0 %v5060_v1 }
 0xc90   :  { %3913 = vmatpush3.bf16.msra.mxu0 %v5105_v2 }
 0xc91   :  { %3914 = vmatprep.subr.bf16.mxu0 %v5060_v1 }
 0xc94   :  { %3915 = vmatpush3.bf16.msra.mxu0 %v5118_v4 }
 0xc95   :  { %3916 = vmatprep.subr.bf16.mxu0 %v5060_v1 }
 0xc98   :  { %3917 = vmatpush3.bf16.msra.mxu0 %v5130_v6 }
 0xc99   :  { %3918 = vmatprep.subr.bf16.mxu0 %v5060_v1 }
 0xc9c   :  { %3919 = vmatpush3.bf16.msra.mxu0 %v5142_v8 }
 0xc9d   :  { %3920 = vmatprep.subr.bf16.mxu0 %v5060_v1 }
 0xca0   :  { %3921 = vmatpush3.bf16.msra.mxu0 %v5154_v10 }
 0xca1   :  { %3922 = vmatprep.subr.bf16.mxu0 %v5060_v1 }
 0xca4   :  { %3923 = vmatpush3.bf16.msra.mxu0 %v5166_v12 }
 0xca5   :  { %3924 = vmatprep.subr.bf16.mxu0 %v5060_v1 }
 0xca8   :  { %3925 = vmatpush3.bf16.msra.mxu0 %v5175_v13 }
 0xca9   :  { %3950 = vmatprep.subr.bf16.mxu0 %v5060_v1 }
 0xd5e   :  { %v824_v36 = vpop.f32.mrb[28].mxu0 }
 0xd5f   :  { %v831_v38 = vadd.f32 %v830_v37, %v824_v36  ;;  %v3888_v39 = vpop.f32.mrb[29].mxu0 }
 0xd60   :  { %v827_v40 = vpop.f32.mrb[30].mxu0 }
 0xd61   :  { %4912 = vtanh.f32 %v831_v38  ;;  %v3889_v41 = vpop.f32.mrb[31].mxu0 }
 0xd6b   :  { %v4913_v42 = vpop.eup %4912 }
 0xd6c   :  { %v833_v43 = vpack.c.bf16 %v4913_v42, %v4913_v42 }
 0xd6e   :  { %3907 = vmatmul.mubr.bf16.vlgmr.msra.gmra.mrb[28].mxu1 %v833_v43 }
 0xd6f   :  { %3931 = vmatpush3.bf16.msra.mxu1 %v5097_v0  ;;  %3946 = vmatprep.mubr.msk.bf16.mxu1 %vm5061_vm0, %v5060_v1  ;;  %v24_v0 = vld [vmem:[%s6471_s0 + $0x10] sm:$0xff] }
 0xd70   :  { %3932 = vmatprep.subr.bf16.mxu1 %v5060_v1  ;;  %43 = vperm.xlu1 %4875, %v24_v0  }
 0xd73   :  { %3933 = vmatpush3.bf16.msra.mxu1 %v5105_v2  ;;  %v25_v2 = vld [vmem:[%s6471_s0 + $0x18] sm:$0xff] }
 0xd74   :  { %3934 = vmatprep.subr.bf16.mxu1 %v5060_v1  ;;  %48 = vperm.xlu1 %4875, %v25_v2  }
 0xd77   :  { %3935 = vmatpush3.bf16.msra.mxu1 %v5118_v4  ;;  %v27_v4 = vld [vmem:[%s6471_s0 + $0x28] sm:$0xff] }
 0xd78   :  { %3936 = vmatprep.subr.bf16.mxu1 %v5060_v1  ;;  %58 = vperm.xlu1 %4875, %v27_v4  }
 0xd7b   :  { %3937 = vmatpush3.bf16.msra.mxu1 %v5130_v6  ;;  %v29_v6 = vld [vmem:[%s6471_s0 + $0x38] sm:$0xff] }
 0xd7c   :  { %3938 = vmatprep.subr.bf16.mxu1 %v5060_v1  ;;  %68 = vperm.xlu1 %4875, %v29_v6  }
 0xd7f   :  { %3939 = vmatpush3.bf16.msra.mxu1 %v5142_v8 }
 0xd80   :  { %3940 = vmatprep.subr.bf16.mxu1 %v5060_v1 }
 0xd83   :  { %3941 = vmatpush3.bf16.msra.mxu1 %v5154_v10 }
 0xd84   :  { %3942 = vmatprep.subr.bf16.mxu1 %v5060_v1 }
 0xd87   :  { %3943 = vmatpush3.bf16.msra.mxu1 %v5166_v12 }
 0xd88   :  { %3944 = vmatprep.subr.bf16.mxu1 %v5060_v1 }
 0xd8b   :  { %3945 = vmatpush3.bf16.msra.mxu1 %v5175_v13 }
 0xd8c   :  { %3970 = vmatprep.subr.bf16.mxu1 %v5060_v1 }
 0xdef   :  { %v44_v51 = vpop.permute.xlu1 %43 }
 0xdf0   :  { %v79_v52 = vmul.f32 %v5208_v16, %v44_v51 }
 0xdf2   :  { %v94_v54 = vadd.f32 %v5213_v17, %v79_v52 }
 0xdf3   :  { %v49_v55 = vpop.permute.xlu1 %48 }
 0xdf4   :  { %102 = vst [vmem:[#allocation2 + $0x10] sm:$0xff] %v94_v54  ;;  %v80_v56 = vmul.f32 %v5208_v16, %v49_v55 }
 0xdf6   :  { %v95_v58 = vadd.f32 %v5213_v17, %v80_v56 }
 0xdf7   :  { %v59_v59 = vpop.permute.xlu1 %58 }
 0xdf8   :  { %103 = vst [vmem:[#allocation2 + $0x18] sm:$0xff] %v95_v58  ;;  %v82_v60 = vmul.f32 %v5208_v16, %v59_v59 }
 0xdfa   :  { %v97_v62 = vadd.f32 %v5213_v17, %v82_v60 }
 0xdfb   :  { %v69_v63 = vpop.permute.xlu1 %68  ;;  %v962_v22 = vld [vmem:[#allocation2 + $0x11] sm:$0x1]  ;;  %v1006_v30 = vld [vmem:[#allocation2 + $0x12] sm:$0x1]  ;;  %v1050_v38 = vld [vmem:[#allocation2 + $0x13] sm:$0x1] }
 0xdfc   :  { %105 = vst [vmem:[#allocation2 + $0x28] sm:$0xff] %v97_v62  ;;  %v84_v3 = vmul.f32 %v5208_v16, %v69_v63  ;;  %v918_v16 = vld [vmem:[#allocation2 + $0x10] sm:$0x1]  ;;  %v1094_v4 = vld [vmem:[#allocation2 + $0x14] sm:$0x1] }
 0xdfd   :  { %v1182_v59 = vld [vmem:[#allocation2 + $0x16] sm:$0x1] }
 0xdfe   :  { %v99_v7 = vadd.f32 %v5213_v17, %v84_v3 }
 0xe00   :  { %107 = vst [vmem:[#allocation2 + $0x38] sm:$0xff] %v99_v7 }
 0xe41   :  { %v868_v8 = vpop.f32.mrb[28].mxu1 }
 0xe42   :  { %v875_v45 = vadd.f32 %v874_v44, %v868_v8  ;;  %v3908_v46 = vpop.f32.mrb[29].mxu1 }
 0xe43   :  { %v871_v47 = vpop.f32.mrb[30].mxu1 }
 0xe44   :  { %4914 = vtanh.f32 %v875_v45  ;;  %v3909_v48 = vpop.f32.mrb[31].mxu1 }
 0xe4e   :  { %v4915_v49 = vpop.eup %4914 }
 0xe4f   :  { %v877_v50 = vpack.c.bf16 %v4915_v49, %v4915_v49  ;;  %v1138_v49 = vld [vmem:[#allocation2 + $0x15] sm:$0x1] }
 0xe51   :  { %3927 = vmatmul.mubr.bf16.vlgmr.msra.gmra.mrb[32].mxu0 %v877_v50 }
 0xe52   :  { %3951 = vmatpush3.bf16.msra.mxu0 %v5509_v53  ;;  %3966 = vmatprep.mubr.msk.bf16.mxu0 %vm5061_vm0, %v5060_v1 }
 0xe53   :  { %3952 = vmatprep.subr.bf16.mxu0 %v5060_v1 }
 0xe56   :  { %3953 = vmatpush3.bf16.msra.mxu0 %v5520_v57 }
 0xe57   :  { %3954 = vmatprep.subr.bf16.mxu0 %v5060_v1 }
 0xe5a   :  { %3955 = vmatpush3.bf16.msra.mxu0 %v5529_v61 }
 0xe5b   :  { %3956 = vmatprep.subr.bf16.mxu0 %v5060_v1 }
 0xe5e   :  { %3957 = vmatpush3.bf16.msra.mxu0 %v5538_v5 }
 0xe5f   :  { %3958 = vmatprep.subr.bf16.mxu0 %v5060_v1 }
 0xe62   :  { %3959 = vmatpush3.bf16.msra.mxu0 %v5546_v9 }
 0xe63   :  { %3960 = vmatprep.subr.bf16.mxu0 %v5060_v1 }
 0xe66   :  { %3961 = vmatpush3.bf16.msra.mxu0 %v5154_v10  ;;  %v5571_v10 = vld [vmem:[%s6473_s2 + $0x28] sm:$0xff]  }
 0xe67   :  { %3962 = vmatprep.subr.bf16.mxu0 %v5060_v1 }
 0xe6a   :  { %3963 = vmatpush3.bf16.msra.mxu0 %v5166_v12  ;;  %v5578_v12 = vld [vmem:[%s6473_s2 + $0x30] sm:$0xff]  }
 0xe6b   :  { %3964 = vmatprep.subr.bf16.mxu0 %v5060_v1 }
 0xe6e   :  { %3965 = vmatpush3.bf16.msra.mxu0 %v5175_v13  ;;  %v5585_v13 = vld [vmem:[%s6473_s2 + $0x38] sm:$0xff]  }
 0xe6f   :  { %3990 = vmatprep.subr.bf16.mxu0 %v5060_v1 }
 0xf24   :  { %v912_v17 = vpop.f32.mrb[32].mxu0 }
 0xf25   :  { %v919_v11 = vadd.f32 %v918_v16, %v912_v17  ;;  %v3928_v14 = vpop.f32.mrb[33].mxu0 }
 0xf26   :  { %v915_v15 = vpop.f32.mrb[34].mxu0 }
 0xf27   :  { %4916 = vtanh.f32 %v919_v11  ;;  %v3929_v18 = vpop.f32.mrb[35].mxu0  ;;  %v1226_v11 = vld [vmem:[#allocation2 + $0x17] sm:$0x1] }
 0xf31   :  { %v4917_v19 = vpop.eup %4916 }
 0xf32   :  { %v921_v20 = vpack.c.bf16 %v4917_v19, %v4917_v19 }
 0xf34   :  { %3947 = vmatmul.mubr.bf16.vlgmr.msra.gmra.mrb[32].mxu1 %v921_v20 }
 0xf35   :  { %3971 = vmatpush3.bf16.msra.mxu1 %v5509_v53  ;;  %3986 = vmatprep.mubr.msk.bf16.mxu1 %vm5061_vm0, %v5060_v1 }
 0xf36   :  { %3972 = vmatprep.subr.bf16.mxu1 %v5060_v1 }
 0xf39   :  { %3973 = vmatpush3.bf16.msra.mxu1 %v5520_v57 }
 0xf3a   :  { %3974 = vmatprep.subr.bf16.mxu1 %v5060_v1 }
 0xf3d   :  { %3975 = vmatpush3.bf16.msra.mxu1 %v5529_v61 }
 0xf3e   :  { %3976 = vmatprep.subr.bf16.mxu1 %v5060_v1 }
 0xf41   :  { %3977 = vmatpush3.bf16.msra.mxu1 %v5538_v5 }
 0xf42   :  { %3978 = vmatprep.subr.bf16.mxu1 %v5060_v1 }
 0xf45   :  { %3979 = vmatpush3.bf16.msra.mxu1 %v5546_v9 }
 0xf46   :  { %3980 = vmatprep.subr.bf16.mxu1 %v5060_v1 }
 0xf49   :  { %3981 = vmatpush3.bf16.msra.mxu1 %v5571_v10 }
 0xf4a   :  { %3982 = vmatprep.subr.bf16.mxu1 %v5060_v1 }
 0xf4d   :  { %3983 = vmatpush3.bf16.msra.mxu1 %v5578_v12 }
 0xf4e   :  { %3984 = vmatprep.subr.bf16.mxu1 %v5060_v1 }
 0xf51   :  { %3985 = vmatpush3.bf16.msra.mxu1 %v5585_v13 }
 0xf52   :  { %4010 = vmatprep.subr.bf16.mxu1 %v5060_v1 }
0x1007   :  { %v956_v21 = vpop.f32.mrb[32].mxu1 }
0x1008   :  { %v963_v23 = vadd.f32 %v962_v22, %v956_v21  ;;  %v3948_v24 = vpop.f32.mrb[33].mxu1 }
0x1009   :  { %v959_v25 = vpop.f32.mrb[34].mxu1 }
0x100a   :  { %4918 = vtanh.f32 %v963_v23  ;;  %v3949_v26 = vpop.f32.mrb[35].mxu1  ;;  %v1270_v23 = vld [vmem:[#allocation2 + $0x18] sm:$0x1] }
0x1014   :  { %v4919_v27 = vpop.eup %4918 }
0x1015   :  { %v965_v28 = vpack.c.bf16 %v4919_v27, %v4919_v27 }
0x1017   :  { %3967 = vmatmul.mubr.bf16.vlgmr.msra.gmra.mrb[36].mxu0 %v965_v28 }
0x1018   :  { %3991 = vmatpush3.bf16.msra.mxu0 %v5509_v53  ;;  %4006 = vmatprep.mubr.msk.bf16.mxu0 %vm5061_vm0, %v5060_v1 }
0x1019   :  { %3992 = vmatprep.subr.bf16.mxu0 %v5060_v1 }
0x101c   :  { %3993 = vmatpush3.bf16.msra.mxu0 %v5520_v57 }
0x101d   :  { %3994 = vmatprep.subr.bf16.mxu0 %v5060_v1 }
0x1020   :  { %3995 = vmatpush3.bf16.msra.mxu0 %v5529_v61 }
0x1021   :  { %3996 = vmatprep.subr.bf16.mxu0 %v5060_v1 }
0x1024   :  { %3997 = vmatpush3.bf16.msra.mxu0 %v5538_v5 }
0x1025   :  { %3998 = vmatprep.subr.bf16.mxu0 %v5060_v1 }
0x1028   :  { %3999 = vmatpush3.bf16.msra.mxu0 %v5546_v9 }
0x1029   :  { %4000 = vmatprep.subr.bf16.mxu0 %v5060_v1 }
0x102c   :  { %4001 = vmatpush3.bf16.msra.mxu0 %v5571_v10 }
0x102d   :  { %4002 = vmatprep.subr.bf16.mxu0 %v5060_v1 }
0x1030   :  { %4003 = vmatpush3.bf16.msra.mxu0 %v5578_v12 }
0x1031   :  { %4004 = vmatprep.subr.bf16.mxu0 %v5060_v1 }
0x1034   :  { %4005 = vmatpush3.bf16.msra.mxu0 %v5585_v13 }
0x1035   :  { %4030 = vmatprep.subr.bf16.mxu0 %v5060_v1 }
0x10ea   :  { %v1000_v29 = vpop.f32.mrb[36].mxu0 }
0x10eb   :  { %v1007_v31 = vadd.f32 %v1006_v30, %v1000_v29  ;;  %v3968_v32 = vpop.f32.mrb[37].mxu0 }
0x10ec   :  { %v1003_v33 = vpop.f32.mrb[38].mxu0 }
0x10ed   :  { %4920 = vtanh.f32 %v1007_v31  ;;  %v3969_v34 = vpop.f32.mrb[39].mxu0  ;;  %v1314_v31 = vld [vmem:[#allocation2 + $0x19] sm:$0x1] }
0x10f7   :  { %v4921_v35 = vpop.eup %4920 }
0x10f8   :  { %v1009_v36 = vpack.c.bf16 %v4921_v35, %v4921_v35 }
0x10fa   :  { %3987 = vmatmul.mubr.bf16.vlgmr.msra.gmra.mrb[36].mxu1 %v1009_v36 }
0x10fb   :  { %4011 = vmatpush3.bf16.msra.mxu1 %v5509_v53  ;;  %4026 = vmatprep.mubr.msk.bf16.mxu1 %vm5061_vm0, %v5060_v1 }
0x10fc   :  { %4012 = vmatprep.subr.bf16.mxu1 %v5060_v1 }
0x10ff   :  { %4013 = vmatpush3.bf16.msra.mxu1 %v5520_v57 }
0x1100   :  { %4014 = vmatprep.subr.bf16.mxu1 %v5060_v1 }
0x1103   :  { %4015 = vmatpush3.bf16.msra.mxu1 %v5529_v61 }
0x1104   :  { %4016 = vmatprep.subr.bf16.mxu1 %v5060_v1 }
0x1107   :  { %4017 = vmatpush3.bf16.msra.mxu1 %v5538_v5 }
0x1108   :  { %4018 = vmatprep.subr.bf16.mxu1 %v5060_v1 }
0x110b   :  { %4019 = vmatpush3.bf16.msra.mxu1 %v5546_v9 }
0x110c   :  { %4020 = vmatprep.subr.bf16.mxu1 %v5060_v1 }
0x110f   :  { %4021 = vmatpush3.bf16.msra.mxu1 %v5571_v10 }
0x1110   :  { %4022 = vmatprep.subr.bf16.mxu1 %v5060_v1 }
0x1113   :  { %4023 = vmatpush3.bf16.msra.mxu1 %v5578_v12 }
0x1114   :  { %4024 = vmatprep.subr.bf16.mxu1 %v5060_v1 }
0x1117   :  { %4025 = vmatpush3.bf16.msra.mxu1 %v5585_v13 }
0x1118   :  { %4050 = vmatprep.subr.bf16.mxu1 %v5060_v1 }
0x11cd   :  { %v1044_v37 = vpop.f32.mrb[36].mxu1 }
0x11ce   :  { %v1051_v39 = vadd.f32 %v1050_v38, %v1044_v37  ;;  %v3988_v40 = vpop.f32.mrb[37].mxu1 }
0x11cf   :  { %v1047_v41 = vpop.f32.mrb[38].mxu1 }
0x11d0   :  { %4922 = vtanh.f32 %v1051_v39  ;;  %v3989_v42 = vpop.f32.mrb[39].mxu1  ;;  %v1358_v39 = vld [vmem:[#allocation2 + $0x1a] sm:$0x1] }
0x11da   :  { %v4923_v43 = vpop.eup %4922 }
0x11db   :  { %v1053_v0 = vpack.c.bf16 %v4923_v43, %v4923_v43 }
0x11dd   :  { %4007 = vmatmul.mubr.bf16.vlgmr.msra.gmra.mrb[40].mxu0 %v1053_v0 }
0x11de   :  { %4031 = vmatpush3.bf16.msra.mxu0 %v5509_v53  ;;  %4046 = vmatprep.mubr.msk.bf16.mxu0 %vm5061_vm0, %v5060_v1 }
0x11df   :  { %4032 = vmatprep.subr.bf16.mxu0 %v5060_v1 }
0x11e2   :  { %4033 = vmatpush3.bf16.msra.mxu0 %v5520_v57 }
0x11e3   :  { %4034 = vmatprep.subr.bf16.mxu0 %v5060_v1 }
0x11e6   :  { %4035 = vmatpush3.bf16.msra.mxu0 %v5529_v61 }
0x11e7   :  { %4036 = vmatprep.subr.bf16.mxu0 %v5060_v1 }
0x11ea   :  { %4037 = vmatpush3.bf16.msra.mxu0 %v5538_v5 }
0x11eb   :  { %4038 = vmatprep.subr.bf16.mxu0 %v5060_v1 }
0x11ee   :  { %4039 = vmatpush3.bf16.msra.mxu0 %v5546_v9 }
0x11ef   :  { %4040 = vmatprep.subr.bf16.mxu0 %v5060_v1 }
0x11f2   :  { %4041 = vmatpush3.bf16.msra.mxu0 %v5571_v10 }
0x11f3   :  { %4042 = vmatprep.subr.bf16.mxu0 %v5060_v1 }
0x11f6   :  { %4043 = vmatpush3.bf16.msra.mxu0 %v5578_v12 }
0x11f7   :  { %4044 = vmatprep.subr.bf16.mxu0 %v5060_v1 }
0x11fa   :  { %4045 = vmatpush3.bf16.msra.mxu0 %v5585_v13 }
0x11fb   :  { %4070 = vmatprep.subr.bf16.mxu0 %v5060_v1 }
0x12b0   :  { %v1088_v2 = vpop.f32.mrb[40].mxu0 }
0x12b1   :  { %v1095_v6 = vadd.f32 %v1094_v4, %v1088_v2  ;;  %v4008_v8 = vpop.f32.mrb[41].mxu0 }
0x12b2   :  { %v1091_v44 = vpop.f32.mrb[42].mxu0 }
0x12b3   :  { %4924 = vtanh.f32 %v1095_v6  ;;  %v4009_v45 = vpop.f32.mrb[43].mxu0  ;;  %v1402_v6 = vld [vmem:[#allocation2 + $0x1b] sm:$0x1] }
0x12bd   :  { %v4925_v46 = vpop.eup %4924 }
0x12be   :  { %v1097_v47 = vpack.c.bf16 %v4925_v46, %v4925_v46 }
0x12c0   :  { %4027 = vmatmul.mubr.bf16.vlgmr.msra.gmra.mrb[40].mxu1 %v1097_v47 }
0x12c1   :  { %4051 = vmatpush3.bf16.msra.mxu1 %v5509_v53  ;;  %4066 = vmatprep.mubr.msk.bf16.mxu1 %vm5061_vm0, %v5060_v1 }
0x12c2   :  { %4052 = vmatprep.subr.bf16.mxu1 %v5060_v1 }
0x12c5   :  { %4053 = vmatpush3.bf16.msra.mxu1 %v5520_v57 }
0x12c6   :  { %4054 = vmatprep.subr.bf16.mxu1 %v5060_v1 }
0x12c9   :  { %4055 = vmatpush3.bf16.msra.mxu1 %v5529_v61 }
0x12ca   :  { %4056 = vmatprep.subr.bf16.mxu1 %v5060_v1 }
0x12cd   :  { %4057 = vmatpush3.bf16.msra.mxu1 %v5538_v5 }
0x12ce   :  { %4058 = vmatprep.subr.bf16.mxu1 %v5060_v1 }
0x12d1   :  { %4059 = vmatpush3.bf16.msra.mxu1 %v5546_v9 }
0x12d2   :  { %4060 = vmatprep.subr.bf16.mxu1 %v5060_v1 }
0x12d5   :  { %4061 = vmatpush3.bf16.msra.mxu1 %v5571_v10 }
0x12d6   :  { %4062 = vmatprep.subr.bf16.mxu1 %v5060_v1 }
0x12d9   :  { %4063 = vmatpush3.bf16.msra.mxu1 %v5578_v12 }
0x12da   :  { %4064 = vmatprep.subr.bf16.mxu1 %v5060_v1 }
0x12dd   :  { %4065 = vmatpush3.bf16.msra.mxu1 %v5585_v13 }
0x12de   :  { %4090 = vmatprep.subr.bf16.mxu1 %v5060_v1 }
0x1393   :  { %v1132_v48 = vpop.f32.mrb[40].mxu1 }
0x1394   :  { %v1139_v50 = vadd.f32 %v1138_v49, %v1132_v48  ;;  %v4028_v51 = vpop.f32.mrb[41].mxu1 }
0x1395   :  { %v1135_v52 = vpop.f32.mrb[42].mxu1 }
0x1396   :  { %4926 = vtanh.f32 %v1139_v50  ;;  %v4029_v54 = vpop.f32.mrb[43].mxu1  ;;  %v1446_v50 = vld [vmem:[#allocation2 + $0x1c] sm:$0x1] }
0x13a0   :  { %v4927_v55 = vpop.eup %4926 }
0x13a1   :  { %v1141_v56 = vpack.c.bf16 %v4927_v55, %v4927_v55 }
0x13a3   :  { %4047 = vmatmul.mubr.bf16.vlgmr.msra.gmra.mrb[44].mxu0 %v1141_v56 }
0x13a4   :  { %4071 = vmatpush3.bf16.msra.mxu0 %v5509_v53  ;;  %4086 = vmatprep.mubr.msk.bf16.mxu0 %vm5061_vm0, %v5060_v1 }
0x13a5   :  { %4072 = vmatprep.subr.bf16.mxu0 %v5060_v1 }
0x13a8   :  { %4073 = vmatpush3.bf16.msra.mxu0 %v5520_v57 }
0x13a9   :  { %4074 = vmatprep.subr.bf16.mxu0 %v5060_v1 }
0x13ac   :  { %4075 = vmatpush3.bf16.msra.mxu0 %v5529_v61 }
0x13ad   :  { %4076 = vmatprep.subr.bf16.mxu0 %v5060_v1 }
0x13b0   :  { %4077 = vmatpush3.bf16.msra.mxu0 %v5538_v5 }
0x13b1   :  { %4078 = vmatprep.subr.bf16.mxu0 %v5060_v1 }
0x13b4   :  { %4079 = vmatpush3.bf16.msra.mxu0 %v5546_v9 }
0x13b5   :  { %4080 = vmatprep.subr.bf16.mxu0 %v5060_v1 }
0x13b8   :  { %4081 = vmatpush3.bf16.msra.mxu0 %v5571_v10 }
0x13b9   :  { %4082 = vmatprep.subr.bf16.mxu0 %v5060_v1 }
0x13bc   :  { %4083 = vmatpush3.bf16.msra.mxu0 %v5578_v12 }
0x13bd   :  { %4084 = vmatprep.subr.bf16.mxu0 %v5060_v1 }
0x13c0   :  { %4085 = vmatpush3.bf16.msra.mxu0 %v5585_v13 }
0x13c1   :  { %4110 = vmatprep.subr.bf16.mxu0 %v5060_v1 }
0x1476   :  { %v1176_v58 = vpop.f32.mrb[44].mxu0 }
0x1477   :  { %v1183_v60 = vadd.f32 %v1182_v59, %v1176_v58  ;;  %v4048_v62 = vpop.f32.mrb[45].mxu0 }
0x1478   :  { %v1179_v63 = vpop.f32.mrb[46].mxu0 }
0x1479   :  { %4928 = vtanh.f32 %v1183_v60  ;;  %v4049_v3 = vpop.f32.mrb[47].mxu0  ;;  %v1490_v60 = vld [vmem:[#allocation2 + $0x1d] sm:$0x1] }
0x1483   :  { %v4929_v7 = vpop.eup %4928 }
0x1484   :  { %v1185_v16 = vpack.c.bf16 %v4929_v7, %v4929_v7 }
0x1486   :  { %4067 = vmatmul.mubr.bf16.vlgmr.msra.gmra.mrb[44].mxu1 %v1185_v16 }
0x1487   :  { %4091 = vmatpush3.bf16.msra.mxu1 %v5509_v53  ;;  %4106 = vmatprep.mubr.msk.bf16.mxu1 %vm5061_vm0, %v5060_v1 }
0x1488   :  { %4092 = vmatprep.subr.bf16.mxu1 %v5060_v1 }
0x148b   :  { %4093 = vmatpush3.bf16.msra.mxu1 %v5520_v57 }
0x148c   :  { %4094 = vmatprep.subr.bf16.mxu1 %v5060_v1 }
0x148f   :  { %4095 = vmatpush3.bf16.msra.mxu1 %v5529_v61 }
0x1490   :  { %4096 = vmatprep.subr.bf16.mxu1 %v5060_v1 }
0x1493   :  { %4097 = vmatpush3.bf16.msra.mxu1 %v5538_v5 }
0x1494   :  { %4098 = vmatprep.subr.bf16.mxu1 %v5060_v1 }
0x1497   :  { %4099 = vmatpush3.bf16.msra.mxu1 %v5546_v9 }
0x1498   :  { %4100 = vmatprep.subr.bf16.mxu1 %v5060_v1 }
0x149b   :  { %4101 = vmatpush3.bf16.msra.mxu1 %v5571_v10 }
0x149c   :  { %4102 = vmatprep.subr.bf16.mxu1 %v5060_v1 }
0x149f   :  { %4103 = vmatpush3.bf16.msra.mxu1 %v5578_v12 }
0x14a0   :  { %4104 = vmatprep.subr.bf16.mxu1 %v5060_v1 }
0x14a3   :  { %4105 = vmatpush3.bf16.msra.mxu1 %v5585_v13 }
0x14a4   :  { %4130 = vmatprep.subr.bf16.mxu1 %v5060_v1 }
0x1559   :  { %v1220_v17 = vpop.f32.mrb[44].mxu1 }
0x155a   :  { %v1227_v14 = vadd.f32 %v1226_v11, %v1220_v17  ;;  %v4068_v15 = vpop.f32.mrb[45].mxu1 }
0x155b   :  { %v1223_v18 = vpop.f32.mrb[46].mxu1 }
0x155c   :  { %4930 = vtanh.f32 %v1227_v14  ;;  %v4069_v19 = vpop.f32.mrb[47].mxu1  ;;  %v1534_v14 = vld [vmem:[#allocation2 + $0x1e] sm:$0x1] }
0x1566   :  { %v4931_v20 = vpop.eup %4930 }
0x1567   :  { %v1229_v21 = vpack.c.bf16 %v4931_v20, %v4931_v20 }
0x1569   :  { %4087 = vmatmul.mubr.bf16.vlgmr.msra.gmra.mrb[48].mxu0 %v1229_v21 }
0x156a   :  { %4111 = vmatpush3.bf16.msra.mxu0 %v5509_v53  ;;  %4126 = vmatprep.mubr.msk.bf16.mxu0 %vm5061_vm0, %v5060_v1 }
0x156b   :  { %4112 = vmatprep.subr.bf16.mxu0 %v5060_v1 }
0x156e   :  { %4113 = vmatpush3.bf16.msra.mxu0 %v5520_v57 }
0x156f   :  { %4114 = vmatprep.subr.bf16.mxu0 %v5060_v1 }
0x1572   :  { %4115 = vmatpush3.bf16.msra.mxu0 %v5529_v61 }
0x1573   :  { %4116 = vmatprep.subr.bf16.mxu0 %v5060_v1 }
0x1576   :  { %4117 = vmatpush3.bf16.msra.mxu0 %v5538_v5 }
0x1577   :  { %4118 = vmatprep.subr.bf16.mxu0 %v5060_v1 }
0x157a   :  { %4119 = vmatpush3.bf16.msra.mxu0 %v5546_v9 }
0x157b   :  { %4120 = vmatprep.subr.bf16.mxu0 %v5060_v1 }
0x157e   :  { %4121 = vmatpush3.bf16.msra.mxu0 %v5571_v10 }
0x157f   :  { %4122 = vmatprep.subr.bf16.mxu0 %v5060_v1 }
0x1582   :  { %4123 = vmatpush3.bf16.msra.mxu0 %v5578_v12 }
0x1583   :  { %4124 = vmatprep.subr.bf16.mxu0 %v5060_v1 }
0x1586   :  { %4125 = vmatpush3.bf16.msra.mxu0 %v5585_v13 }
0x1587   :  { %4150 = vmatprep.subr.bf16.mxu0 %v5060_v1 }
0x163c   :  { %v1264_v22 = vpop.f32.mrb[48].mxu0 }
0x163d   :  { %v1271_v24 = vadd.f32 %v1270_v23, %v1264_v22  ;;  %v4088_v25 = vpop.f32.mrb[49].mxu0 }
0x163e   :  { %v1267_v26 = vpop.f32.mrb[50].mxu0 }
0x163f   :  { %4932 = vtanh.f32 %v1271_v24  ;;  %v4089_v27 = vpop.f32.mrb[51].mxu0  ;;  %v1578_v24 = vld [vmem:[#allocation2 + $0x1f] sm:$0x1] }
0x1649   :  { %v4933_v28 = vpop.eup %4932 }
0x164a   :  { %v1273_v29 = vpack.c.bf16 %v4933_v28, %v4933_v28 }
0x164c   :  { %4107 = vmatmul.mubr.bf16.vlgmr.msra.gmra.mrb[48].mxu1 %v1273_v29 }
0x164d   :  { %4131 = vmatpush3.bf16.msra.mxu1 %v5509_v53  ;;  %4146 = vmatprep.mubr.msk.bf16.mxu1 %vm5061_vm0, %v5060_v1 }
0x164e   :  { %4132 = vmatprep.subr.bf16.mxu1 %v5060_v1 }
0x1651   :  { %4133 = vmatpush3.bf16.msra.mxu1 %v5520_v57 }
0x1652   :  { %4134 = vmatprep.subr.bf16.mxu1 %v5060_v1 }
0x1655   :  { %4135 = vmatpush3.bf16.msra.mxu1 %v5529_v61 }
0x1656   :  { %4136 = vmatprep.subr.bf16.mxu1 %v5060_v1 }
0x1659   :  { %4137 = vmatpush3.bf16.msra.mxu1 %v5538_v5 }
0x165a   :  { %4138 = vmatprep.subr.bf16.mxu1 %v5060_v1 }
0x165d   :  { %4139 = vmatpush3.bf16.msra.mxu1 %v5546_v9 }
0x165e   :  { %4140 = vmatprep.subr.bf16.mxu1 %v5060_v1 }
0x1661   :  { %4141 = vmatpush3.bf16.msra.mxu1 %v5571_v10 }
0x1662   :  { %4142 = vmatprep.subr.bf16.mxu1 %v5060_v1 }
0x1665   :  { %4143 = vmatpush3.bf16.msra.mxu1 %v5578_v12 }
0x1666   :  { %4144 = vmatprep.subr.bf16.mxu1 %v5060_v1 }
0x1669   :  { %4145 = vmatpush3.bf16.msra.mxu1 %v5585_v13 }
0x166a   :  { %4170 = vmatprep.subr.bf16.mxu1 %v5060_v1 }
0x171f   :  { %v1308_v30 = vpop.f32.mrb[48].mxu1 }
0x1720   :  { %v1315_v32 = vadd.f32 %v1314_v31, %v1308_v30  ;;  %v4108_v33 = vpop.f32.mrb[49].mxu1 }
0x1721   :  { %v1311_v34 = vpop.f32.mrb[50].mxu1 }
0x1722   :  { %4934 = vtanh.f32 %v1315_v32  ;;  %v4109_v35 = vpop.f32.mrb[51].mxu1  ;;  %v1622_v32 = vld [vmem:[#allocation2 + $0x20] sm:$0x1] }
0x172c   :  { %v4935_v36 = vpop.eup %4934 }
0x172d   :  { %v1317_v37 = vpack.c.bf16 %v4935_v36, %v4935_v36 }
0x172f   :  { %4127 = vmatmul.mubr.bf16.vlgmr.msra.gmra.mrb[52].mxu0 %v1317_v37 }
0x1730   :  { %4151 = vmatpush3.bf16.msra.mxu0 %v5509_v53  ;;  %4166 = vmatprep.mubr.msk.bf16.mxu0 %vm5061_vm0, %v5060_v1 }
0x1731   :  { %4152 = vmatprep.subr.bf16.mxu0 %v5060_v1 }
0x1734   :  { %4153 = vmatpush3.bf16.msra.mxu0 %v5520_v57 }
0x1735   :  { %4154 = vmatprep.subr.bf16.mxu0 %v5060_v1 }
0x1738   :  { %4155 = vmatpush3.bf16.msra.mxu0 %v5529_v61 }
0x1739   :  { %4156 = vmatprep.subr.bf16.mxu0 %v5060_v1 }
0x173c   :  { %4157 = vmatpush3.bf16.msra.mxu0 %v5538_v5 }
0x173d   :  { %4158 = vmatprep.subr.bf16.mxu0 %v5060_v1 }
0x1740   :  { %4159 = vmatpush3.bf16.msra.mxu0 %v5546_v9 }
0x1741   :  { %4160 = vmatprep.subr.bf16.mxu0 %v5060_v1 }
0x1744   :  { %4161 = vmatpush3.bf16.msra.mxu0 %v5571_v10 }
0x1745   :  { %4162 = vmatprep.subr.bf16.mxu0 %v5060_v1 }
0x1748   :  { %4163 = vmatpush3.bf16.msra.mxu0 %v5578_v12 }
0x1749   :  { %4164 = vmatprep.subr.bf16.mxu0 %v5060_v1 }
0x174c   :  { %4165 = vmatpush3.bf16.msra.mxu0 %v5585_v13 }
0x174d   :  { %4190 = vmatprep.subr.bf16.mxu0 %v5060_v1 }
0x1802   :  { %v1352_v38 = vpop.f32.mrb[52].mxu0 }
0x1803   :  { %v1359_v40 = vadd.f32 %v1358_v39, %v1352_v38  ;;  %v4128_v41 = vpop.f32.mrb[53].mxu0 }
0x1804   :  { %v1355_v42 = vpop.f32.mrb[54].mxu0 }
0x1805   :  { %4936 = vtanh.f32 %v1359_v40  ;;  %v4129_v43 = vpop.f32.mrb[55].mxu0  ;;  %v1666_v40 = vld [vmem:[#allocation2 + $0x21] sm:$0x1] }
0x180f   :  { %v4937_v0 = vpop.eup %4936 }
0x1810   :  { %v1361_v2 = vpack.c.bf16 %v4937_v0, %v4937_v0 }
0x1812   :  { %4147 = vmatmul.mubr.bf16.vlgmr.msra.gmra.mrb[52].mxu1 %v1361_v2 }
0x1813   :  { %4171 = vmatpush3.bf16.msra.mxu1 %v5509_v53  ;;  %4186 = vmatprep.mubr.msk.bf16.mxu1 %vm5061_vm0, %v5060_v1 }
0x1814   :  { %4172 = vmatprep.subr.bf16.mxu1 %v5060_v1 }
0x1817   :  { %4173 = vmatpush3.bf16.msra.mxu1 %v5520_v57 }
0x1818   :  { %4174 = vmatprep.subr.bf16.mxu1 %v5060_v1 }
0x181b   :  { %4175 = vmatpush3.bf16.msra.mxu1 %v5529_v61 }
0x181c   :  { %4176 = vmatprep.subr.bf16.mxu1 %v5060_v1 }
0x181f   :  { %4177 = vmatpush3.bf16.msra.mxu1 %v5538_v5 }
0x1820   :  { %4178 = vmatprep.subr.bf16.mxu1 %v5060_v1 }
0x1823   :  { %4179 = vmatpush3.bf16.msra.mxu1 %v5546_v9 }
0x1824   :  { %4180 = vmatprep.subr.bf16.mxu1 %v5060_v1 }
0x1827   :  { %4181 = vmatpush3.bf16.msra.mxu1 %v5571_v10 }
0x1828   :  { %4182 = vmatprep.subr.bf16.mxu1 %v5060_v1 }
0x182b   :  { %4183 = vmatpush3.bf16.msra.mxu1 %v5578_v12 }
0x182c   :  { %4184 = vmatprep.subr.bf16.mxu1 %v5060_v1 }
0x182f   :  { %4185 = vmatpush3.bf16.msra.mxu1 %v5585_v13 }
0x1830   :  { %4210 = vmatprep.subr.bf16.mxu1 %v5060_v1 }
0x18e5   :  { %v1396_v4 = vpop.f32.mrb[52].mxu1 }
0x18e6   :  { %v1403_v8 = vadd.f32 %v1402_v6, %v1396_v4  ;;  %v4148_v44 = vpop.f32.mrb[53].mxu1 }
0x18e7   :  { %v1399_v45 = vpop.f32.mrb[54].mxu1 }
0x18e8   :  { %4938 = vtanh.f32 %v1403_v8  ;;  %v4149_v46 = vpop.f32.mrb[55].mxu1  ;;  %v5898_v45 = vld [vmem:[%s6473_s2] sm:$0xff]  }
0x18e9   :  { %v5907_v46 = vld [vmem:[%s6473_s2 + $0x8] sm:$0xff]  }
0x18f2   :  { %v4939_v47 = vpop.eup %4938 }
0x18f3   :  { %v1405_v48 = vpack.c.bf16 %v4939_v47, %v4939_v47  ;;  %v5914_v47 = vld [vmem:[%s6473_s2 + $0x10] sm:$0xff]  }
0x18f5   :  { %4167 = vmatmul.mubr.bf16.vlgmr.msra.gmra.mrb[56].mxu0 %v1405_v48  ;;  %v5921_v48 = vld [vmem:[%s6473_s2 + $0x18] sm:$0xff]  }
0x18f6   :  { %4191 = vmatpush3.bf16.msra.mxu0 %v5509_v53  ;;  %4206 = vmatprep.mubr.msk.bf16.mxu0 %vm5061_vm0, %v5060_v1 }
0x18f7   :  { %4192 = vmatprep.subr.bf16.mxu0 %v5060_v1 }
0x18fa   :  { %4193 = vmatpush3.bf16.msra.mxu0 %v5520_v57 }
0x18fb   :  { %4194 = vmatprep.subr.bf16.mxu0 %v5060_v1 }
0x18fe   :  { %4195 = vmatpush3.bf16.msra.mxu0 %v5529_v61 }
0x18ff   :  { %4196 = vmatprep.subr.bf16.mxu0 %v5060_v1 }
0x1902   :  { %4197 = vmatpush3.bf16.msra.mxu0 %v5538_v5 }
0x1903   :  { %4198 = vmatprep.subr.bf16.mxu0 %v5060_v1 }
0x1906   :  { %4199 = vmatpush3.bf16.msra.mxu0 %v5546_v9 }
0x1907   :  { %4200 = vmatprep.subr.bf16.mxu0 %v5060_v1 }
0x190a   :  { %4201 = vmatpush3.bf16.msra.mxu0 %v5571_v10 }
0x190b   :  { %4202 = vmatprep.subr.bf16.mxu0 %v5060_v1 }
0x190e   :  { %4203 = vmatpush3.bf16.msra.mxu0 %v5578_v12 }
0x190f   :  { %4204 = vmatprep.subr.bf16.mxu0 %v5060_v1 }
0x1912   :  { %4205 = vmatpush3.bf16.msra.mxu0 %v5585_v13 }
0x1913   :  { %4230 = vmatprep.subr.bf16.mxu0 %v5060_v1 }
0x19c8   :  { %v1440_v49 = vpop.f32.mrb[56].mxu0 }
0x19c9   :  { %v1447_v51 = vadd.f32 %v1446_v50, %v1440_v49  ;;  %v4168_v52 = vpop.f32.mrb[57].mxu0  ;;  %v5928_v49 = vld [vmem:[%s6473_s2 + $0x20] sm:$0xff]  }
0x19ca   :  { %v1443_v54 = vpop.f32.mrb[58].mxu0 }
0x19cb   :  { %4940 = vtanh.f32 %v1447_v51  ;;  %v4169_v55 = vpop.f32.mrb[59].mxu0  ;;  %v1754_v51 = vld [vmem:[#allocation2 + $0x23] sm:$0x1] }
0x19d5   :  { %v4941_v56 = vpop.eup %4940 }
0x19d6   :  { %v1449_v58 = vpack.c.bf16 %v4941_v56, %v4941_v56 }
0x19d8   :  { %4187 = vmatmul.mubr.bf16.vlgmr.msra.gmra.mrb[56].mxu1 %v1449_v58 }
0x19d9   :  { %4211 = vmatpush3.bf16.msra.mxu1 %v5509_v53  ;;  %4226 = vmatprep.mubr.msk.bf16.mxu1 %vm5061_vm0, %v5060_v1 }
0x19da   :  { %4212 = vmatprep.subr.bf16.mxu1 %v5060_v1 }
0x19dd   :  { %4213 = vmatpush3.bf16.msra.mxu1 %v5520_v57 }
0x19de   :  { %4214 = vmatprep.subr.bf16.mxu1 %v5060_v1 }
0x19e1   :  { %4215 = vmatpush3.bf16.msra.mxu1 %v5529_v61 }
0x19e2   :  { %4216 = vmatprep.subr.bf16.mxu1 %v5060_v1 }
0x19e5   :  { %4217 = vmatpush3.bf16.msra.mxu1 %v5538_v5 }
0x19e6   :  { %4218 = vmatprep.subr.bf16.mxu1 %v5060_v1 }
0x19e9   :  { %4219 = vmatpush3.bf16.msra.mxu1 %v5546_v9 }
0x19ea   :  { %4220 = vmatprep.subr.bf16.mxu1 %v5060_v1 }
0x19ed   :  { %4221 = vmatpush3.bf16.msra.mxu1 %v5571_v10 }
0x19ee   :  { %4222 = vmatprep.subr.bf16.mxu1 %v5060_v1 }
0x19f1   :  { %4223 = vmatpush3.bf16.msra.mxu1 %v5578_v12 }
0x19f2   :  { %4224 = vmatprep.subr.bf16.mxu1 %v5060_v1 }
0x19f5   :  { %4225 = vmatpush3.bf16.msra.mxu1 %v5585_v13 }
0x19f6   :  { %4250 = vmatprep.subr.bf16.mxu1 %v5060_v1 }
0x1aab   :  { %v1484_v59 = vpop.f32.mrb[56].mxu1 }
0x1aac   :  { %v1491_v62 = vadd.f32 %v1490_v60, %v1484_v59  ;;  %v4188_v63 = vpop.f32.mrb[57].mxu1 }
0x1aad   :  { %v1487_v3 = vpop.f32.mrb[58].mxu1 }
0x1aae   :  { %4942 = vtanh.f32 %v1491_v62  ;;  %v4189_v7 = vpop.f32.mrb[59].mxu1  ;;  %v1798_v62 = vld [vmem:[#allocation2 + $0x24] sm:$0x1] }
0x1ab8   :  { %v4943_v16 = vpop.eup %4942 }
0x1ab9   :  { %v1493_v17 = vpack.c.bf16 %v4943_v16, %v4943_v16 }
0x1abb   :  { %4207 = vmatmul.mubr.bf16.vlgmr.msra.gmra.mrb[60].mxu0 %v1493_v17 }
0x1abc   :  { %4231 = vmatpush3.bf16.msra.mxu0 %v5509_v53  ;;  %4246 = vmatprep.mubr.msk.bf16.mxu0 %vm5061_vm0, %v5060_v1 }
0x1abd   :  { %4232 = vmatprep.subr.bf16.mxu0 %v5060_v1 }
0x1ac0   :  { %4233 = vmatpush3.bf16.msra.mxu0 %v5520_v57 }
0x1ac1   :  { %4234 = vmatprep.subr.bf16.mxu0 %v5060_v1 }
0x1ac4   :  { %4235 = vmatpush3.bf16.msra.mxu0 %v5529_v61 }
0x1ac5   :  { %4236 = vmatprep.subr.bf16.mxu0 %v5060_v1 }
0x1ac8   :  { %4237 = vmatpush3.bf16.msra.mxu0 %v5538_v5 }
0x1ac9   :  { %4238 = vmatprep.subr.bf16.mxu0 %v5060_v1 }
0x1acc   :  { %4239 = vmatpush3.bf16.msra.mxu0 %v5546_v9 }
0x1acd   :  { %4240 = vmatprep.subr.bf16.mxu0 %v5060_v1 }
0x1ad0   :  { %4241 = vmatpush3.bf16.msra.mxu0 %v5571_v10 }
0x1ad1   :  { %4242 = vmatprep.subr.bf16.mxu0 %v5060_v1 }
0x1ad4   :  { %4243 = vmatpush3.bf16.msra.mxu0 %v5578_v12 }
0x1ad5   :  { %4244 = vmatprep.subr.bf16.mxu0 %v5060_v1 }
0x1ad8   :  { %4245 = vmatpush3.bf16.msra.mxu0 %v5585_v13 }
0x1ad9   :  { %4270 = vmatprep.subr.bf16.mxu0 %v5060_v1 }
0x1b8e   :  { %v1528_v11 = vpop.f32.mrb[60].mxu0 }
0x1b8f   :  { %v1535_v15 = vadd.f32 %v1534_v14, %v1528_v11  ;;  %v4208_v18 = vpop.f32.mrb[61].mxu0 }
0x1b90   :  { %v1531_v19 = vpop.f32.mrb[62].mxu0 }
0x1b91   :  { %4944 = vtanh.f32 %v1535_v15  ;;  %v4209_v20 = vpop.f32.mrb[63].mxu0  ;;  %v1842_v15 = vld [vmem:[#allocation2 + $0x25] sm:$0x1] }
0x1b9b   :  { %v4945_v21 = vpop.eup %4944 }
0x1b9c   :  { %v1537_v22 = vpack.c.bf16 %v4945_v21, %v4945_v21 }
0x1b9e   :  { %4227 = vmatmul.mubr.bf16.vlgmr.msra.gmra.mrb[60].mxu1 %v1537_v22 }
0x1b9f   :  { %4251 = vmatpush3.bf16.msra.mxu1 %v5509_v53  ;;  %4266 = vmatprep.mubr.msk.bf16.mxu1 %vm5061_vm0, %v5060_v1 }
0x1ba0   :  { %4252 = vmatprep.subr.bf16.mxu1 %v5060_v1 }
0x1ba3   :  { %4253 = vmatpush3.bf16.msra.mxu1 %v5520_v57 }
0x1ba4   :  { %4254 = vmatprep.subr.bf16.mxu1 %v5060_v1 }
0x1ba7   :  { %4255 = vmatpush3.bf16.msra.mxu1 %v5529_v61 }
0x1ba8   :  { %4256 = vmatprep.subr.bf16.mxu1 %v5060_v1 }
0x1bab   :  { %4257 = vmatpush3.bf16.msra.mxu1 %v5538_v5 }
0x1bac   :  { %4258 = vmatprep.subr.bf16.mxu1 %v5060_v1 }
0x1baf   :  { %4259 = vmatpush3.bf16.msra.mxu1 %v5546_v9 }
0x1bb0   :  { %4260 = vmatprep.subr.bf16.mxu1 %v5060_v1 }
0x1bb3   :  { %4261 = vmatpush3.bf16.msra.mxu1 %v5571_v10 }
0x1bb4   :  { %4262 = vmatprep.subr.bf16.mxu1 %v5060_v1 }
0x1bb7   :  { %4263 = vmatpush3.bf16.msra.mxu1 %v5578_v12 }
0x1bb8   :  { %4264 = vmatprep.subr.bf16.mxu1 %v5060_v1 }
0x1bbb   :  { %4265 = vmatpush3.bf16.msra.mxu1 %v5585_v13 }
0x1bbc   :  { %4290 = vmatprep.subr.bf16.mxu1 %v5060_v1 }
0x1c71   :  { %v1572_v23 = vpop.f32.mrb[60].mxu1 }
0x1c72   :  { %v1579_v25 = vadd.f32 %v1578_v24, %v1572_v23  ;;  %v4228_v26 = vpop.f32.mrb[61].mxu1 }
0x1c73   :  { %v1575_v27 = vpop.f32.mrb[62].mxu1 }
0x1c74   :  { %4946 = vtanh.f32 %v1579_v25  ;;  %v4229_v28 = vpop.f32.mrb[63].mxu1  ;;  %v1886_v25 = vld [vmem:[#allocation2 + $0x26] sm:$0x1] }
0x1c7e   :  { %v4947_v29 = vpop.eup %4946 }
0x1c7f   :  { %v1581_v30 = vpack.c.bf16 %v4947_v29, %v4947_v29 }
0x1c81   :  { %4247 = vmatmul.mubr.bf16.vlgmr.msra.gmra.mrb[64].mxu0 %v1581_v30 }
0x1c82   :  { %4271 = vmatpush3.bf16.msra.mxu0 %v5509_v53  ;;  %4286 = vmatprep.mubr.msk.bf16.mxu0 %vm5061_vm0, %v5060_v1 }
0x1c83   :  { %4272 = vmatprep.subr.bf16.mxu0 %v5060_v1 }
0x1c86   :  { %4273 = vmatpush3.bf16.msra.mxu0 %v5520_v57 }
0x1c87   :  { %4274 = vmatprep.subr.bf16.mxu0 %v5060_v1 }
0x1c8a   :  { %4275 = vmatpush3.bf16.msra.mxu0 %v5529_v61 }
0x1c8b   :  { %4276 = vmatprep.subr.bf16.mxu0 %v5060_v1 }
0x1c8e   :  { %4277 = vmatpush3.bf16.msra.mxu0 %v5538_v5 }
0x1c8f   :  { %4278 = vmatprep.subr.bf16.mxu0 %v5060_v1 }
0x1c92   :  { %4279 = vmatpush3.bf16.msra.mxu0 %v5546_v9 }
0x1c93   :  { %4280 = vmatprep.subr.bf16.mxu0 %v5060_v1 }
0x1c96   :  { %4281 = vmatpush3.bf16.msra.mxu0 %v5571_v10 }
0x1c97   :  { %4282 = vmatprep.subr.bf16.mxu0 %v5060_v1 }
0x1c9a   :  { %4283 = vmatpush3.bf16.msra.mxu0 %v5578_v12 }
0x1c9b   :  { %4284 = vmatprep.subr.bf16.mxu0 %v5060_v1 }
0x1c9e   :  { %4285 = vmatpush3.bf16.msra.mxu0 %v5585_v13 }
0x1c9f   :  { %4310 = vmatprep.subr.bf16.mxu0 %v5060_v1 }
0x1d54   :  { %v1616_v31 = vpop.f32.mrb[64].mxu0 }
0x1d55   :  { %v1623_v33 = vadd.f32 %v1622_v32, %v1616_v31  ;;  %v4248_v34 = vpop.f32.mrb[65].mxu0 }
0x1d56   :  { %v1619_v35 = vpop.f32.mrb[66].mxu0 }
0x1d57   :  { %4948 = vtanh.f32 %v1623_v33  ;;  %v4249_v36 = vpop.f32.mrb[67].mxu0  ;;  %v1930_v33 = vld [vmem:[#allocation2 + $0x27] sm:$0x1] }
0x1d61   :  { %v4949_v37 = vpop.eup %4948 }
0x1d62   :  { %v1625_v38 = vpack.c.bf16 %v4949_v37, %v4949_v37 }
0x1d64   :  { %4267 = vmatmul.mubr.bf16.vlgmr.msra.gmra.mrb[64].mxu1 %v1625_v38 }
0x1d65   :  { %4291 = vmatpush3.bf16.msra.mxu1 %v5509_v53  ;;  %4306 = vmatprep.mubr.msk.bf16.mxu1 %vm5061_vm0, %v5060_v1 }
0x1d66   :  { %4292 = vmatprep.subr.bf16.mxu1 %v5060_v1 }
0x1d69   :  { %4293 = vmatpush3.bf16.msra.mxu1 %v5520_v57 }
0x1d6a   :  { %4294 = vmatprep.subr.bf16.mxu1 %v5060_v1 }
0x1d6d   :  { %4295 = vmatpush3.bf16.msra.mxu1 %v5529_v61 }
0x1d6e   :  { %4296 = vmatprep.subr.bf16.mxu1 %v5060_v1 }
0x1d71   :  { %4297 = vmatpush3.bf16.msra.mxu1 %v5538_v5 }
0x1d72   :  { %4298 = vmatprep.subr.bf16.mxu1 %v5060_v1 }
0x1d75   :  { %4299 = vmatpush3.bf16.msra.mxu1 %v5546_v9 }
0x1d76   :  { %4300 = vmatprep.subr.bf16.mxu1 %v5060_v1 }
0x1d79   :  { %4301 = vmatpush3.bf16.msra.mxu1 %v5571_v10 }
0x1d7a   :  { %4302 = vmatprep.subr.bf16.mxu1 %v5060_v1 }
0x1d7d   :  { %4303 = vmatpush3.bf16.msra.mxu1 %v5578_v12 }
0x1d7e   :  { %4304 = vmatprep.subr.bf16.mxu1 %v5060_v1 }
0x1d81   :  { %4305 = vmatpush3.bf16.msra.mxu1 %v5585_v13 }
0x1d82   :  { %4330 = vmatprep.subr.bf16.mxu1 %v5060_v1 }
0x1e37   :  { %v1660_v39 = vpop.f32.mrb[64].mxu1 }
0x1e38   :  { %v1667_v41 = vadd.f32 %v1666_v40, %v1660_v39  ;;  %v4268_v42 = vpop.f32.mrb[65].mxu1 }
0x1e39   :  { %v1663_v43 = vpop.f32.mrb[66].mxu1 }
0x1e3a   :  { %4950 = vtanh.f32 %v1667_v41  ;;  %v4269_v0 = vpop.f32.mrb[67].mxu1  ;;  %v1974_v41 = vld [vmem:[#allocation2 + $0x28] sm:$0x1] }
0x1e44   :  { %v4951_v2 = vpop.eup %4950 }
0x1e45   :  { %v1669_v4 = vpack.c.bf16 %v4951_v2, %v4951_v2 }
0x1e47   :  { %4287 = vmatmul.mubr.bf16.vlgmr.msra.gmra.mrb[68].mxu0 %v1669_v4 }
0x1e48   :  { %4311 = vmatpush3.bf16.msra.mxu0 %v5509_v53  ;;  %4326 = vmatprep.mubr.msk.bf16.mxu0 %vm5061_vm0, %v5060_v1 }
0x1e49   :  { %4312 = vmatprep.subr.bf16.mxu0 %v5060_v1 }
0x1e4c   :  { %4313 = vmatpush3.bf16.msra.mxu0 %v5520_v57  ;;  %v1710_v57 = vld [vmem:[#allocation2 + $0x22] sm:$0x1] }
0x1e4d   :  { %4314 = vmatprep.subr.bf16.mxu0 %v5060_v1 }
0x1e50   :  { %4315 = vmatpush3.bf16.msra.mxu0 %v5529_v61 }
0x1e51   :  { %4316 = vmatprep.subr.bf16.mxu0 %v5060_v1 }
0x1e54   :  { %4317 = vmatpush3.bf16.msra.mxu0 %v5538_v5 }
0x1e55   :  { %4318 = vmatprep.subr.bf16.mxu0 %v5060_v1 }
0x1e58   :  { %4319 = vmatpush3.bf16.msra.mxu0 %v5546_v9 }
0x1e59   :  { %4320 = vmatprep.subr.bf16.mxu0 %v5060_v1 }
0x1e5c   :  { %4321 = vmatpush3.bf16.msra.mxu0 %v5571_v10 }
0x1e5d   :  { %4322 = vmatprep.subr.bf16.mxu0 %v5060_v1 }
0x1e60   :  { %4323 = vmatpush3.bf16.msra.mxu0 %v5578_v12 }
0x1e61   :  { %4324 = vmatprep.subr.bf16.mxu0 %v5060_v1 }
0x1e64   :  { %4325 = vmatpush3.bf16.msra.mxu0 %v5585_v13 }
0x1e65   :  { %4350 = vmatprep.subr.bf16.mxu0 %v5060_v1 }
0x1f1a   :  { %v1704_v53 = vpop.f32.mrb[68].mxu0 }
0x1f1b   :  { %v1711_v61 = vadd.f32 %v1710_v57, %v1704_v53  ;;  %v4288_v5 = vpop.f32.mrb[69].mxu0 }
0x1f1c   :  { %v1707_v6 = vpop.f32.mrb[70].mxu0 }
0x1f1d   :  { %4952 = vtanh.f32 %v1711_v61  ;;  %v4289_v9 = vpop.f32.mrb[71].mxu0  ;;  %v2018_v61 = vld [vmem:[#allocation2 + $0x29] sm:$0x1] }
0x1f27   :  { %v4953_v8 = vpop.eup %4952 }
0x1f28   :  { %v1713_v44 = vpack.c.bf16 %v4953_v8, %v4953_v8 }
0x1f2a   :  { %4307 = vmatmul.mubr.bf16.vlgmr.msra.gmra.mrb[68].mxu1 %v1713_v44 }
0x1f2b   :  { %4331 = vmatpush3.bf16.msra.mxu1 %v5898_v45  ;;  %4346 = vmatprep.mubr.msk.bf16.mxu1 %vm5061_vm0, %v5060_v1 }
0x1f2c   :  { %4332 = vmatprep.subr.bf16.mxu1 %v5060_v1 }
0x1f2f   :  { %4333 = vmatpush3.bf16.msra.mxu1 %v5907_v46 }
0x1f30   :  { %4334 = vmatprep.subr.bf16.mxu1 %v5060_v1 }
0x1f33   :  { %4335 = vmatpush3.bf16.msra.mxu1 %v5914_v47 }
0x1f34   :  { %4336 = vmatprep.subr.bf16.mxu1 %v5060_v1 }
0x1f37   :  { %4337 = vmatpush3.bf16.msra.mxu1 %v5921_v48 }
0x1f38   :  { %4338 = vmatprep.subr.bf16.mxu1 %v5060_v1 }
0x1f3b   :  { %4339 = vmatpush3.bf16.msra.mxu1 %v5928_v49 }
0x1f3c   :  { %4340 = vmatprep.subr.bf16.mxu1 %v5060_v1 }
0x1f3f   :  { %4341 = vmatpush3.bf16.msra.mxu1 %v5571_v10  ;;  %v5953_v10 = vld [vmem:[%s6473_s2 + $0x28] sm:$0xff]  }
0x1f40   :  { %4342 = vmatprep.subr.bf16.mxu1 %v5060_v1 }
0x1f43   :  { %4343 = vmatpush3.bf16.msra.mxu1 %v5578_v12  ;;  %v5960_v12 = vld [vmem:[%s6473_s2 + $0x30] sm:$0xff]  }
0x1f44   :  { %4344 = vmatprep.subr.bf16.mxu1 %v5060_v1 }
0x1f47   :  { %4345 = vmatpush3.bf16.msra.mxu1 %v5585_v13  ;;  %v5967_v13 = vld [vmem:[%s6473_s2 + $0x38] sm:$0xff]  }
0x1f48   :  { %4370 = vmatprep.subr.bf16.mxu1 %v5060_v1 }
0x1ffd   :  { %v1748_v50 = vpop.f32.mrb[68].mxu1 }
0x1ffe   :  { %v1755_v52 = vadd.f32 %v1754_v51, %v1748_v50  ;;  %v4308_v54 = vpop.f32.mrb[69].mxu1 }
0x1fff   :  { %v1751_v55 = vpop.f32.mrb[70].mxu1 }
0x2000   :  { %4954 = vtanh.f32 %v1755_v52  ;;  %v4309_v56 = vpop.f32.mrb[71].mxu1  ;;  %v2062_v52 = vld [vmem:[#allocation2 + $0x2a] sm:$0x1] }
0x200a   :  { %v4955_v58 = vpop.eup %4954 }
0x200b   :  { %v1757_v59 = vpack.c.bf16 %v4955_v58, %v4955_v58 }
0x200d   :  { %4327 = vmatmul.mubr.bf16.vlgmr.msra.gmra.mrb[72].mxu0 %v1757_v59 }
0x200e   :  { %4351 = vmatpush3.bf16.msra.mxu0 %v5898_v45  ;;  %4366 = vmatprep.mubr.msk.bf16.mxu0 %vm5061_vm0, %v5060_v1 }
0x200f   :  { %4352 = vmatprep.subr.bf16.mxu0 %v5060_v1 }
0x2012   :  { %4353 = vmatpush3.bf16.msra.mxu0 %v5907_v46 }
0x2013   :  { %4354 = vmatprep.subr.bf16.mxu0 %v5060_v1 }
0x2016   :  { %4355 = vmatpush3.bf16.msra.mxu0 %v5914_v47 }
0x2017   :  { %4356 = vmatprep.subr.bf16.mxu0 %v5060_v1 }
0x201a   :  { %4357 = vmatpush3.bf16.msra.mxu0 %v5921_v48 }
0x201b   :  { %4358 = vmatprep.subr.bf16.mxu0 %v5060_v1 }
0x201e   :  { %4359 = vmatpush3.bf16.msra.mxu0 %v5928_v49 }
0x201f   :  { %4360 = vmatprep.subr.bf16.mxu0 %v5060_v1 }
0x2022   :  { %4361 = vmatpush3.bf16.msra.mxu0 %v5953_v10 }
0x2023   :  { %4362 = vmatprep.subr.bf16.mxu0 %v5060_v1 }
0x2026   :  { %4363 = vmatpush3.bf16.msra.mxu0 %v5960_v12 }
0x2027   :  { %4364 = vmatprep.subr.bf16.mxu0 %v5060_v1 }
0x202a   :  { %4365 = vmatpush3.bf16.msra.mxu0 %v5967_v13 }
0x202b   :  { %4390 = vmatprep.subr.bf16.mxu0 %v5060_v1 }
0x20e0   :  { %v1792_v60 = vpop.f32.mrb[72].mxu0 }
0x20e1   :  { %v1799_v63 = vadd.f32 %v1798_v62, %v1792_v60  ;;  %v4328_v3 = vpop.f32.mrb[73].mxu0 }
0x20e2   :  { %v1795_v7 = vpop.f32.mrb[74].mxu0 }
0x20e3   :  { %4956 = vtanh.f32 %v1799_v63  ;;  %v4329_v16 = vpop.f32.mrb[75].mxu0  ;;  %v2106_v63 = vld [vmem:[#allocation2 + $0x2b] sm:$0x1] }
0x20ed   :  { %v4957_v17 = vpop.eup %4956 }
0x20ee   :  { %v1801_v11 = vpack.c.bf16 %v4957_v17, %v4957_v17 }
0x20f0   :  { %4347 = vmatmul.mubr.bf16.vlgmr.msra.gmra.mrb[72].mxu1 %v1801_v11 }
0x20f1   :  { %4371 = vmatpush3.bf16.msra.mxu1 %v5898_v45  ;;  %4386 = vmatprep.mubr.msk.bf16.mxu1 %vm5061_vm0, %v5060_v1 }
0x20f2   :  { %4372 = vmatprep.subr.bf16.mxu1 %v5060_v1 }
0x20f5   :  { %4373 = vmatpush3.bf16.msra.mxu1 %v5907_v46 }
0x20f6   :  { %4374 = vmatprep.subr.bf16.mxu1 %v5060_v1 }
0x20f9   :  { %4375 = vmatpush3.bf16.msra.mxu1 %v5914_v47 }
0x20fa   :  { %4376 = vmatprep.subr.bf16.mxu1 %v5060_v1 }
0x20fd   :  { %4377 = vmatpush3.bf16.msra.mxu1 %v5921_v48 }
0x20fe   :  { %4378 = vmatprep.subr.bf16.mxu1 %v5060_v1 }
0x2101   :  { %4379 = vmatpush3.bf16.msra.mxu1 %v5928_v49 }
0x2102   :  { %4380 = vmatprep.subr.bf16.mxu1 %v5060_v1 }
0x2105   :  { %4381 = vmatpush3.bf16.msra.mxu1 %v5953_v10 }
0x2106   :  { %4382 = vmatprep.subr.bf16.mxu1 %v5060_v1 }
0x2109   :  { %4383 = vmatpush3.bf16.msra.mxu1 %v5960_v12 }
0x210a   :  { %4384 = vmatprep.subr.bf16.mxu1 %v5060_v1 }
0x210d   :  { %4385 = vmatpush3.bf16.msra.mxu1 %v5967_v13 }
0x210e   :  { %4410 = vmatprep.subr.bf16.mxu1 %v5060_v1 }
0x21c3   :  { %v1836_v14 = vpop.f32.mrb[72].mxu1 }
0x21c4   :  { %v1843_v18 = vadd.f32 %v1842_v15, %v1836_v14  ;;  %v4348_v19 = vpop.f32.mrb[73].mxu1 }
0x21c5   :  { %v1839_v20 = vpop.f32.mrb[74].mxu1 }
0x21c6   :  { %4958 = vtanh.f32 %v1843_v18  ;;  %v4349_v21 = vpop.f32.mrb[75].mxu1  ;;  %v2150_v18 = vld [vmem:[#allocation2 + $0x2c] sm:$0x1] }
0x21d0   :  { %v4959_v22 = vpop.eup %4958 }
0x21d1   :  { %v1845_v23 = vpack.c.bf16 %v4959_v22, %v4959_v22 }
0x21d3   :  { %4367 = vmatmul.mubr.bf16.vlgmr.msra.gmra.mrb[76].mxu0 %v1845_v23 }
0x21d4   :  { %4391 = vmatpush3.bf16.msra.mxu0 %v5898_v45  ;;  %4406 = vmatprep.mubr.msk.bf16.mxu0 %vm5061_vm0, %v5060_v1 }
0x21d5   :  { %4392 = vmatprep.subr.bf16.mxu0 %v5060_v1 }
0x21d8   :  { %4393 = vmatpush3.bf16.msra.mxu0 %v5907_v46 }
0x21d9   :  { %4394 = vmatprep.subr.bf16.mxu0 %v5060_v1 }
0x21dc   :  { %4395 = vmatpush3.bf16.msra.mxu0 %v5914_v47 }
0x21dd   :  { %4396 = vmatprep.subr.bf16.mxu0 %v5060_v1 }
0x21e0   :  { %4397 = vmatpush3.bf16.msra.mxu0 %v5921_v48 }
0x21e1   :  { %4398 = vmatprep.subr.bf16.mxu0 %v5060_v1 }
0x21e4   :  { %4399 = vmatpush3.bf16.msra.mxu0 %v5928_v49 }
0x21e5   :  { %4400 = vmatprep.subr.bf16.mxu0 %v5060_v1 }
0x21e8   :  { %4401 = vmatpush3.bf16.msra.mxu0 %v5953_v10 }
0x21e9   :  { %4402 = vmatprep.subr.bf16.mxu0 %v5060_v1 }
0x21ec   :  { %4403 = vmatpush3.bf16.msra.mxu0 %v5960_v12 }
0x21ed   :  { %4404 = vmatprep.subr.bf16.mxu0 %v5060_v1 }
0x21f0   :  { %4405 = vmatpush3.bf16.msra.mxu0 %v5967_v13 }
0x21f1   :  { %4430 = vmatprep.subr.bf16.mxu0 %v5060_v1 }
0x22a6   :  { %v1880_v24 = vpop.f32.mrb[76].mxu0 }
0x22a7   :  { %v1887_v26 = vadd.f32 %v1886_v25, %v1880_v24  ;;  %v4368_v27 = vpop.f32.mrb[77].mxu0 }
0x22a8   :  { %v1883_v28 = vpop.f32.mrb[78].mxu0 }
0x22a9   :  { %4960 = vtanh.f32 %v1887_v26  ;;  %v4369_v29 = vpop.f32.mrb[79].mxu0  ;;  %v2194_v26 = vld [vmem:[#allocation2 + $0x2d] sm:$0x1] }
0x22b3   :  { %v4961_v30 = vpop.eup %4960 }
0x22b4   :  { %v1889_v31 = vpack.c.bf16 %v4961_v30, %v4961_v30 }
0x22b6   :  { %4387 = vmatmul.mubr.bf16.vlgmr.msra.gmra.mrb[76].mxu1 %v1889_v31 }
0x22b7   :  { %4411 = vmatpush3.bf16.msra.mxu1 %v5898_v45  ;;  %4426 = vmatprep.mubr.msk.bf16.mxu1 %vm5061_vm0, %v5060_v1 }
0x22b8   :  { %4412 = vmatprep.subr.bf16.mxu1 %v5060_v1 }
0x22bb   :  { %4413 = vmatpush3.bf16.msra.mxu1 %v5907_v46 }
0x22bc   :  { %4414 = vmatprep.subr.bf16.mxu1 %v5060_v1 }
0x22bf   :  { %4415 = vmatpush3.bf16.msra.mxu1 %v5914_v47 }
0x22c0   :  { %4416 = vmatprep.subr.bf16.mxu1 %v5060_v1 }
0x22c3   :  { %4417 = vmatpush3.bf16.msra.mxu1 %v5921_v48 }
0x22c4   :  { %4418 = vmatprep.subr.bf16.mxu1 %v5060_v1 }
0x22c7   :  { %4419 = vmatpush3.bf16.msra.mxu1 %v5928_v49 }
0x22c8   :  { %4420 = vmatprep.subr.bf16.mxu1 %v5060_v1 }
0x22cb   :  { %4421 = vmatpush3.bf16.msra.mxu1 %v5953_v10 }
0x22cc   :  { %4422 = vmatprep.subr.bf16.mxu1 %v5060_v1 }
0x22cf   :  { %4423 = vmatpush3.bf16.msra.mxu1 %v5960_v12 }
0x22d0   :  { %4424 = vmatprep.subr.bf16.mxu1 %v5060_v1 }
0x22d3   :  { %4425 = vmatpush3.bf16.msra.mxu1 %v5967_v13 }
0x22d4   :  { %4450 = vmatprep.subr.bf16.mxu1 %v5060_v1 }
0x2389   :  { %v1924_v32 = vpop.f32.mrb[76].mxu1 }
0x238a   :  { %v1931_v34 = vadd.f32 %v1930_v33, %v1924_v32  ;;  %v4388_v35 = vpop.f32.mrb[77].mxu1 }
0x238b   :  { %v1927_v36 = vpop.f32.mrb[78].mxu1 }
0x238c   :  { %4962 = vtanh.f32 %v1931_v34  ;;  %v4389_v37 = vpop.f32.mrb[79].mxu1  ;;  %v2238_v34 = vld [vmem:[#allocation2 + $0x2e] sm:$0x1] }
0x2396   :  { %v4963_v38 = vpop.eup %4962 }
0x2397   :  { %v1933_v39 = vpack.c.bf16 %v4963_v38, %v4963_v38 }
0x2399   :  { %4407 = vmatmul.mubr.bf16.vlgmr.msra.gmra.mrb[80].mxu0 %v1933_v39 }
0x239a   :  { %4431 = vmatpush3.bf16.msra.mxu0 %v5898_v45  ;;  %4446 = vmatprep.mubr.msk.bf16.mxu0 %vm5061_vm0, %v5060_v1 }
0x239b   :  { %4432 = vmatprep.subr.bf16.mxu0 %v5060_v1 }
0x239e   :  { %4433 = vmatpush3.bf16.msra.mxu0 %v5907_v46 }
0x239f   :  { %4434 = vmatprep.subr.bf16.mxu0 %v5060_v1 }
0x23a2   :  { %4435 = vmatpush3.bf16.msra.mxu0 %v5914_v47 }
0x23a3   :  { %4436 = vmatprep.subr.bf16.mxu0 %v5060_v1 }
0x23a6   :  { %4437 = vmatpush3.bf16.msra.mxu0 %v5921_v48 }
0x23a7   :  { %4438 = vmatprep.subr.bf16.mxu0 %v5060_v1 }
0x23aa   :  { %4439 = vmatpush3.bf16.msra.mxu0 %v5928_v49 }
0x23ab   :  { %4440 = vmatprep.subr.bf16.mxu0 %v5060_v1 }
0x23ae   :  { %4441 = vmatpush3.bf16.msra.mxu0 %v5953_v10 }
0x23af   :  { %4442 = vmatprep.subr.bf16.mxu0 %v5060_v1 }
0x23b2   :  { %4443 = vmatpush3.bf16.msra.mxu0 %v5960_v12 }
0x23b3   :  { %4444 = vmatprep.subr.bf16.mxu0 %v5060_v1 }
0x23b6   :  { %4445 = vmatpush3.bf16.msra.mxu0 %v5967_v13 }
0x23b7   :  { %4470 = vmatprep.subr.bf16.mxu0 %v5060_v1 }
0x246c   :  { %v1968_v40 = vpop.f32.mrb[80].mxu0 }
0x246d   :  { %v1975_v42 = vadd.f32 %v1974_v41, %v1968_v40  ;;  %v4408_v43 = vpop.f32.mrb[81].mxu0 }
0x246e   :  { %v1971_v0 = vpop.f32.mrb[82].mxu0 }
0x246f   :  { %4964 = vtanh.f32 %v1975_v42  ;;  %v4409_v2 = vpop.f32.mrb[83].mxu0  ;;  %v2282_v42 = vld [vmem:[#allocation2 + $0x2f] sm:$0x1] }
0x2479   :  { %v4965_v4 = vpop.eup %4964 }
0x247a   :  { %v1977_v53 = vpack.c.bf16 %v4965_v4, %v4965_v4 }
0x247c   :  { %4427 = vmatmul.mubr.bf16.vlgmr.msra.gmra.mrb[80].mxu1 %v1977_v53 }
0x247d   :  { %4451 = vmatpush3.bf16.msra.mxu1 %v5898_v45  ;;  %4466 = vmatprep.mubr.msk.bf16.mxu1 %vm5061_vm0, %v5060_v1 }
0x247e   :  { %4452 = vmatprep.subr.bf16.mxu1 %v5060_v1 }
0x2481   :  { %4453 = vmatpush3.bf16.msra.mxu1 %v5907_v46 }
0x2482   :  { %4454 = vmatprep.subr.bf16.mxu1 %v5060_v1 }
0x2485   :  { %4455 = vmatpush3.bf16.msra.mxu1 %v5914_v47 }
0x2486   :  { %4456 = vmatprep.subr.bf16.mxu1 %v5060_v1 }
0x2489   :  { %4457 = vmatpush3.bf16.msra.mxu1 %v5921_v48 }
0x248a   :  { %4458 = vmatprep.subr.bf16.mxu1 %v5060_v1 }
0x248d   :  { %4459 = vmatpush3.bf16.msra.mxu1 %v5928_v49 }
0x248e   :  { %4460 = vmatprep.subr.bf16.mxu1 %v5060_v1 }
0x2491   :  { %4461 = vmatpush3.bf16.msra.mxu1 %v5953_v10 }
0x2492   :  { %4462 = vmatprep.subr.bf16.mxu1 %v5060_v1 }
0x2495   :  { %4463 = vmatpush3.bf16.msra.mxu1 %v5960_v12 }
0x2496   :  { %4464 = vmatprep.subr.bf16.mxu1 %v5060_v1 }
0x2499   :  { %4465 = vmatpush3.bf16.msra.mxu1 %v5967_v13 }
0x249a   :  { %4490 = vmatprep.subr.bf16.mxu1 %v5060_v1 }
0x254f   :  { %v2012_v57 = vpop.f32.mrb[80].mxu1 }
0x2550   :  { %v2019_v5 = vadd.f32 %v2018_v61, %v2012_v57  ;;  %v4428_v6 = vpop.f32.mrb[81].mxu1 }
0x2551   :  { %v2015_v9 = vpop.f32.mrb[82].mxu1 }
0x2552   :  { %4966 = vtanh.f32 %v2019_v5  ;;  %v4429_v8 = vpop.f32.mrb[83].mxu1  ;;  %v2326_v5 = vld [vmem:[#allocation2 + $0x30] sm:$0x1] }
0x255c   :  { %v4967_v44 = vpop.eup %4966 }
0x255d   :  { %v2021_v50 = vpack.c.bf16 %v4967_v44, %v4967_v44 }
0x255f   :  { %4447 = vmatmul.mubr.bf16.vlgmr.msra.gmra.mrb[84].mxu0 %v2021_v50 }
0x2560   :  { %4471 = vmatpush3.bf16.msra.mxu0 %v5898_v45  ;;  %4486 = vmatprep.mubr.msk.bf16.mxu0 %vm5061_vm0, %v5060_v1 }
0x2561   :  { %4472 = vmatprep.subr.bf16.mxu0 %v5060_v1 }
0x2564   :  { %4473 = vmatpush3.bf16.msra.mxu0 %v5907_v46 }
0x2565   :  { %4474 = vmatprep.subr.bf16.mxu0 %v5060_v1 }
0x2568   :  { %4475 = vmatpush3.bf16.msra.mxu0 %v5914_v47 }
0x2569   :  { %4476 = vmatprep.subr.bf16.mxu0 %v5060_v1 }
0x256c   :  { %4477 = vmatpush3.bf16.msra.mxu0 %v5921_v48 }
0x256d   :  { %4478 = vmatprep.subr.bf16.mxu0 %v5060_v1 }
0x2570   :  { %4479 = vmatpush3.bf16.msra.mxu0 %v5928_v49 }
0x2571   :  { %4480 = vmatprep.subr.bf16.mxu0 %v5060_v1 }
0x2574   :  { %4481 = vmatpush3.bf16.msra.mxu0 %v5953_v10 }
0x2575   :  { %4482 = vmatprep.subr.bf16.mxu0 %v5060_v1 }
0x2578   :  { %4483 = vmatpush3.bf16.msra.mxu0 %v5960_v12 }
0x2579   :  { %4484 = vmatprep.subr.bf16.mxu0 %v5060_v1 }
0x257c   :  { %4485 = vmatpush3.bf16.msra.mxu0 %v5967_v13 }
0x257d   :  { %4510 = vmatprep.subr.bf16.mxu0 %v5060_v1 }
0x2632   :  { %v2056_v51 = vpop.f32.mrb[84].mxu0 }
0x2633   :  { %v2063_v54 = vadd.f32 %v2062_v52, %v2056_v51  ;;  %v4448_v55 = vpop.f32.mrb[85].mxu0 }
0x2634   :  { %v2059_v56 = vpop.f32.mrb[86].mxu0 }
0x2635   :  { %4968 = vtanh.f32 %v2063_v54  ;;  %v4449_v58 = vpop.f32.mrb[87].mxu0  ;;  %v2370_v54 = vld [vmem:[#allocation2 + $0x31] sm:$0x1] }
0x263f   :  { %v4969_v59 = vpop.eup %4968 }
0x2640   :  { %v2065_v60 = vpack.c.bf16 %v4969_v59, %v4969_v59 }
0x2642   :  { %4467 = vmatmul.mubr.bf16.vlgmr.msra.gmra.mrb[84].mxu1 %v2065_v60 }
0x2643   :  { %4491 = vmatpush3.bf16.msra.mxu1 %v5898_v45  ;;  %4506 = vmatprep.mubr.msk.bf16.mxu1 %vm5061_vm0, %v5060_v1 }
0x2644   :  { %4492 = vmatprep.subr.bf16.mxu1 %v5060_v1 }
0x2647   :  { %4493 = vmatpush3.bf16.msra.mxu1 %v5907_v46 }
0x2648   :  { %4494 = vmatprep.subr.bf16.mxu1 %v5060_v1 }
0x264b   :  { %4495 = vmatpush3.bf16.msra.mxu1 %v5914_v47 }
0x264c   :  { %4496 = vmatprep.subr.bf16.mxu1 %v5060_v1 }
0x264f   :  { %4497 = vmatpush3.bf16.msra.mxu1 %v5921_v48 }
0x2650   :  { %4498 = vmatprep.subr.bf16.mxu1 %v5060_v1 }
0x2653   :  { %4499 = vmatpush3.bf16.msra.mxu1 %v5928_v49 }
0x2654   :  { %4500 = vmatprep.subr.bf16.mxu1 %v5060_v1 }
0x2657   :  { %4501 = vmatpush3.bf16.msra.mxu1 %v5953_v10 }
0x2658   :  { %4502 = vmatprep.subr.bf16.mxu1 %v5060_v1 }
0x265b   :  { %4503 = vmatpush3.bf16.msra.mxu1 %v5960_v12 }
0x265c   :  { %4504 = vmatprep.subr.bf16.mxu1 %v5060_v1 }
0x265f   :  { %4505 = vmatpush3.bf16.msra.mxu1 %v5967_v13 }
0x2660   :  { %4530 = vmatprep.subr.bf16.mxu1 %v5060_v1 }
0x2715   :  { %v2100_v62 = vpop.f32.mrb[84].mxu1 }
0x2716   :  { %v2107_v3 = vadd.f32 %v2106_v63, %v2100_v62  ;;  %v4468_v7 = vpop.f32.mrb[85].mxu1 }
0x2717   :  { %v2103_v16 = vpop.f32.mrb[86].mxu1 }
0x2718   :  { %4970 = vtanh.f32 %v2107_v3  ;;  %v4469_v17 = vpop.f32.mrb[87].mxu1  ;;  %v2414_v3 = vld [vmem:[#allocation2 + $0x32] sm:$0x1] }
0x2722   :  { %v4971_v11 = vpop.eup %4970 }
0x2723   :  { %v2109_v14 = vpack.c.bf16 %v4971_v11, %v4971_v11 }
0x2725   :  { %4487 = vmatmul.mubr.bf16.vlgmr.msra.gmra.mrb[88].mxu0 %v2109_v14 }
0x2726   :  { %4511 = vmatpush3.bf16.msra.mxu0 %v5898_v45  ;;  %4526 = vmatprep.mubr.msk.bf16.mxu0 %vm5061_vm0, %v5060_v1 }
0x2727   :  { %4512 = vmatprep.subr.bf16.mxu0 %v5060_v1 }
0x272a   :  { %4513 = vmatpush3.bf16.msra.mxu0 %v5907_v46 }
0x272b   :  { %4514 = vmatprep.subr.bf16.mxu0 %v5060_v1 }
0x272e   :  { %4515 = vmatpush3.bf16.msra.mxu0 %v5914_v47 }
0x272f   :  { %4516 = vmatprep.subr.bf16.mxu0 %v5060_v1 }
0x2732   :  { %4517 = vmatpush3.bf16.msra.mxu0 %v5921_v48 }
0x2733   :  { %4518 = vmatprep.subr.bf16.mxu0 %v5060_v1 }
0x2736   :  { %4519 = vmatpush3.bf16.msra.mxu0 %v5928_v49 }
0x2737   :  { %4520 = vmatprep.subr.bf16.mxu0 %v5060_v1 }
0x273a   :  { %4521 = vmatpush3.bf16.msra.mxu0 %v5953_v10 }
0x273b   :  { %4522 = vmatprep.subr.bf16.mxu0 %v5060_v1 }
0x273e   :  { %4523 = vmatpush3.bf16.msra.mxu0 %v5960_v12 }
0x273f   :  { %4524 = vmatprep.subr.bf16.mxu0 %v5060_v1 }
0x2742   :  { %4525 = vmatpush3.bf16.msra.mxu0 %v5967_v13 }
0x2743   :  { %4550 = vmatprep.subr.bf16.mxu0 %v5060_v1 }
0x27f8   :  { %v2144_v15 = vpop.f32.mrb[88].mxu0 }
0x27f9   :  { %v2151_v19 = vadd.f32 %v2150_v18, %v2144_v15  ;;  %v4488_v20 = vpop.f32.mrb[89].mxu0 }
0x27fa   :  { %v2147_v21 = vpop.f32.mrb[90].mxu0 }
0x27fb   :  { %4972 = vtanh.f32 %v2151_v19  ;;  %v4489_v22 = vpop.f32.mrb[91].mxu0  ;;  %v2458_v19 = vld [vmem:[#allocation2 + $0x33] sm:$0x1] }
0x2805   :  { %v4973_v23 = vpop.eup %4972 }
0x2806   :  { %v2153_v24 = vpack.c.bf16 %v4973_v23, %v4973_v23 }
0x2808   :  { %4507 = vmatmul.mubr.bf16.vlgmr.msra.gmra.mrb[88].mxu1 %v2153_v24 }
0x2809   :  { %4531 = vmatpush3.bf16.msra.mxu1 %v5898_v45  ;;  %4546 = vmatprep.mubr.msk.bf16.mxu1 %vm5061_vm0, %v5060_v1 }
0x280a   :  { %4532 = vmatprep.subr.bf16.mxu1 %v5060_v1 }
0x280d   :  { %4533 = vmatpush3.bf16.msra.mxu1 %v5907_v46 }
0x280e   :  { %4534 = vmatprep.subr.bf16.mxu1 %v5060_v1 }
0x2811   :  { %4535 = vmatpush3.bf16.msra.mxu1 %v5914_v47 }
0x2812   :  { %4536 = vmatprep.subr.bf16.mxu1 %v5060_v1 }
0x2815   :  { %4537 = vmatpush3.bf16.msra.mxu1 %v5921_v48 }
0x2816   :  { %4538 = vmatprep.subr.bf16.mxu1 %v5060_v1 }
0x2819   :  { %4539 = vmatpush3.bf16.msra.mxu1 %v5928_v49 }
0x281a   :  { %4540 = vmatprep.subr.bf16.mxu1 %v5060_v1 }
0x281d   :  { %4541 = vmatpush3.bf16.msra.mxu1 %v5953_v10 }
0x281e   :  { %4542 = vmatprep.subr.bf16.mxu1 %v5060_v1 }
0x2821   :  { %4543 = vmatpush3.bf16.msra.mxu1 %v5960_v12 }
0x2822   :  { %4544 = vmatprep.subr.bf16.mxu1 %v5060_v1 }
0x2825   :  { %4545 = vmatpush3.bf16.msra.mxu1 %v5967_v13 }
0x2826   :  { %4570 = vmatprep.subr.bf16.mxu1 %v5060_v1 }
0x28db   :  { %v2188_v25 = vpop.f32.mrb[88].mxu1 }
0x28dc   :  { %v2195_v27 = vadd.f32 %v2194_v26, %v2188_v25  ;;  %v4508_v28 = vpop.f32.mrb[89].mxu1 }
0x28dd   :  { %v2191_v29 = vpop.f32.mrb[90].mxu1 }
0x28de   :  { %4974 = vtanh.f32 %v2195_v27  ;;  %v4509_v30 = vpop.f32.mrb[91].mxu1  ;;  %v2502_v27 = vld [vmem:[#allocation2 + $0x34] sm:$0x1] }
0x28e8   :  { %v4975_v31 = vpop.eup %4974 }
0x28e9   :  { %v2197_v32 = vpack.c.bf16 %v4975_v31, %v4975_v31 }
0x28eb   :  { %4527 = vmatmul.mubr.bf16.vlgmr.msra.gmra.mrb[92].mxu0 %v2197_v32 }
0x28ec   :  { %4551 = vmatpush3.bf16.msra.mxu0 %v5898_v45  ;;  %4566 = vmatprep.mubr.msk.bf16.mxu0 %vm5061_vm0, %v5060_v1 }
0x28ed   :  { %4552 = vmatprep.subr.bf16.mxu0 %v5060_v1 }
0x28f0   :  { %4553 = vmatpush3.bf16.msra.mxu0 %v5907_v46 }
0x28f1   :  { %4554 = vmatprep.subr.bf16.mxu0 %v5060_v1 }
0x28f4   :  { %4555 = vmatpush3.bf16.msra.mxu0 %v5914_v47 }
0x28f5   :  { %4556 = vmatprep.subr.bf16.mxu0 %v5060_v1 }
0x28f8   :  { %4557 = vmatpush3.bf16.msra.mxu0 %v5921_v48 }
0x28f9   :  { %4558 = vmatprep.subr.bf16.mxu0 %v5060_v1 }
0x28fc   :  { %4559 = vmatpush3.bf16.msra.mxu0 %v5928_v49 }
0x28fd   :  { %4560 = vmatprep.subr.bf16.mxu0 %v5060_v1 }
0x2900   :  { %4561 = vmatpush3.bf16.msra.mxu0 %v5953_v10 }
0x2901   :  { %4562 = vmatprep.subr.bf16.mxu0 %v5060_v1 }
0x2904   :  { %4563 = vmatpush3.bf16.msra.mxu0 %v5960_v12 }
0x2905   :  { %4564 = vmatprep.subr.bf16.mxu0 %v5060_v1 }
0x2908   :  { %4565 = vmatpush3.bf16.msra.mxu0 %v5967_v13 }
0x2909   :  { %4590 = vmatprep.subr.bf16.mxu0 %v5060_v1 }
0x29be   :  { %v2232_v33 = vpop.f32.mrb[92].mxu0 }
0x29bf   :  { %v2239_v35 = vadd.f32 %v2238_v34, %v2232_v33  ;;  %v4528_v36 = vpop.f32.mrb[93].mxu0 }
0x29c0   :  { %v2235_v37 = vpop.f32.mrb[94].mxu0 }
0x29c1   :  { %4976 = vtanh.f32 %v2239_v35  ;;  %v4529_v38 = vpop.f32.mrb[95].mxu0  ;;  %v6280_v37 = vld [vmem:[%s6473_s2] sm:$0xff]  }
0x29c2   :  { %v6289_v38 = vld [vmem:[%s6473_s2 + $0x8] sm:$0xff]  }
0x29cb   :  { %v4977_v39 = vpop.eup %4976 }
0x29cc   :  { %v2241_v40 = vpack.c.bf16 %v4977_v39, %v4977_v39  ;;  %v6296_v39 = vld [vmem:[%s6473_s2 + $0x10] sm:$0xff]  }
0x29ce   :  { %4547 = vmatmul.mubr.bf16.vlgmr.msra.gmra.mrb[92].mxu1 %v2241_v40  ;;  %v6303_v40 = vld [vmem:[%s6473_s2 + $0x18] sm:$0xff]  }
0x29cf   :  { %4571 = vmatpush3.bf16.msra.mxu1 %v5898_v45  ;;  %4586 = vmatprep.mubr.msk.bf16.mxu1 %vm5061_vm0, %v5060_v1 }
0x29d0   :  { %4572 = vmatprep.subr.bf16.mxu1 %v5060_v1 }
0x29d3   :  { %4573 = vmatpush3.bf16.msra.mxu1 %v5907_v46 }
0x29d4   :  { %4574 = vmatprep.subr.bf16.mxu1 %v5060_v1 }
0x29d7   :  { %4575 = vmatpush3.bf16.msra.mxu1 %v5914_v47 }
0x29d8   :  { %4576 = vmatprep.subr.bf16.mxu1 %v5060_v1 }
0x29db   :  { %4577 = vmatpush3.bf16.msra.mxu1 %v5921_v48 }
0x29dc   :  { %4578 = vmatprep.subr.bf16.mxu1 %v5060_v1 }
0x29df   :  { %4579 = vmatpush3.bf16.msra.mxu1 %v5928_v49 }
0x29e0   :  { %4580 = vmatprep.subr.bf16.mxu1 %v5060_v1 }
0x29e3   :  { %4581 = vmatpush3.bf16.msra.mxu1 %v5953_v10 }
0x29e4   :  { %4582 = vmatprep.subr.bf16.mxu1 %v5060_v1 }
0x29e7   :  { %4583 = vmatpush3.bf16.msra.mxu1 %v5960_v12 }
0x29e8   :  { %4584 = vmatprep.subr.bf16.mxu1 %v5060_v1 }
0x29eb   :  { %4585 = vmatpush3.bf16.msra.mxu1 %v5967_v13 }
0x29ec   :  { %4610 = vmatprep.subr.bf16.mxu1 %v5060_v1 }
0x2aa1   :  { %v2276_v41 = vpop.f32.mrb[92].mxu1 }
0x2aa2   :  { %v2283_v43 = vadd.f32 %v2282_v42, %v2276_v41  ;;  %v4548_v0 = vpop.f32.mrb[93].mxu1  ;;  %v6310_v41 = vld [vmem:[%s6473_s2 + $0x20] sm:$0xff]  }
0x2aa3   :  { %v2279_v2 = vpop.f32.mrb[94].mxu1 }
0x2aa4   :  { %4978 = vtanh.f32 %v2283_v43  ;;  %v4549_v4 = vpop.f32.mrb[95].mxu1  ;;  %v2590_v43 = vld [vmem:[#allocation2 + $0x36] sm:$0x1] }
0x2aae   :  { %v4979_v53 = vpop.eup %4978 }
0x2aaf   :  { %v2285_v57 = vpack.c.bf16 %v4979_v53, %v4979_v53 }
0x2ab1   :  { %4567 = vmatmul.mubr.bf16.vlgmr.msra.gmra.mrb[96].mxu0 %v2285_v57 }
0x2ab2   :  { %4591 = vmatpush3.bf16.msra.mxu0 %v5898_v45  ;;  %4606 = vmatprep.mubr.msk.bf16.mxu0 %vm5061_vm0, %v5060_v1 }
0x2ab3   :  { %4592 = vmatprep.subr.bf16.mxu0 %v5060_v1 }
0x2ab6   :  { %4593 = vmatpush3.bf16.msra.mxu0 %v5907_v46 }
0x2ab7   :  { %4594 = vmatprep.subr.bf16.mxu0 %v5060_v1 }
0x2aba   :  { %4595 = vmatpush3.bf16.msra.mxu0 %v5914_v47 }
0x2abb   :  { %4596 = vmatprep.subr.bf16.mxu0 %v5060_v1 }
0x2abe   :  { %4597 = vmatpush3.bf16.msra.mxu0 %v5921_v48 }
0x2abf   :  { %4598 = vmatprep.subr.bf16.mxu0 %v5060_v1 }
0x2ac2   :  { %4599 = vmatpush3.bf16.msra.mxu0 %v5928_v49 }
0x2ac3   :  { %4600 = vmatprep.subr.bf16.mxu0 %v5060_v1 }
0x2ac6   :  { %4601 = vmatpush3.bf16.msra.mxu0 %v5953_v10 }
0x2ac7   :  { %4602 = vmatprep.subr.bf16.mxu0 %v5060_v1 }
0x2aca   :  { %4603 = vmatpush3.bf16.msra.mxu0 %v5960_v12 }
0x2acb   :  { %4604 = vmatprep.subr.bf16.mxu0 %v5060_v1 }
0x2ace   :  { %4605 = vmatpush3.bf16.msra.mxu0 %v5967_v13 }
0x2acf   :  { %4630 = vmatprep.subr.bf16.mxu0 %v5060_v1 }
0x2b84   :  { %v2320_v61 = vpop.f32.mrb[96].mxu0 }
0x2b85   :  { %v2327_v6 = vadd.f32 %v2326_v5, %v2320_v61  ;;  %v4568_v9 = vpop.f32.mrb[97].mxu0 }
0x2b86   :  { %v2323_v8 = vpop.f32.mrb[98].mxu0 }
0x2b87   :  { %4980 = vtanh.f32 %v2327_v6  ;;  %v4569_v44 = vpop.f32.mrb[99].mxu0  ;;  %v2634_v6 = vld [vmem:[#allocation2 + $0x37] sm:$0x1] }
0x2b91   :  { %v4981_v50 = vpop.eup %4980 }
0x2b92   :  { %v2329_v51 = vpack.c.bf16 %v4981_v50, %v4981_v50 }
0x2b94   :  { %4587 = vmatmul.mubr.bf16.vlgmr.msra.gmra.mrb[96].mxu1 %v2329_v51 }
0x2b95   :  { %4611 = vmatpush3.bf16.msra.mxu1 %v5898_v45  ;;  %4626 = vmatprep.mubr.msk.bf16.mxu1 %vm5061_vm0, %v5060_v1 }
0x2b96   :  { %4612 = vmatprep.subr.bf16.mxu1 %v5060_v1 }
0x2b99   :  { %4613 = vmatpush3.bf16.msra.mxu1 %v5907_v46 }
0x2b9a   :  { %4614 = vmatprep.subr.bf16.mxu1 %v5060_v1 }
0x2b9d   :  { %4615 = vmatpush3.bf16.msra.mxu1 %v5914_v47 }
0x2b9e   :  { %4616 = vmatprep.subr.bf16.mxu1 %v5060_v1 }
0x2ba1   :  { %4617 = vmatpush3.bf16.msra.mxu1 %v5921_v48 }
0x2ba2   :  { %4618 = vmatprep.subr.bf16.mxu1 %v5060_v1 }
0x2ba5   :  { %4619 = vmatpush3.bf16.msra.mxu1 %v5928_v49 }
0x2ba6   :  { %4620 = vmatprep.subr.bf16.mxu1 %v5060_v1 }
0x2ba9   :  { %4621 = vmatpush3.bf16.msra.mxu1 %v5953_v10 }
0x2baa   :  { %4622 = vmatprep.subr.bf16.mxu1 %v5060_v1 }
0x2bad   :  { %4623 = vmatpush3.bf16.msra.mxu1 %v5960_v12 }
0x2bae   :  { %4624 = vmatprep.subr.bf16.mxu1 %v5060_v1 }
0x2bb1   :  { %4625 = vmatpush3.bf16.msra.mxu1 %v5967_v13 }
0x2bb2   :  { %4650 = vmatprep.subr.bf16.mxu1 %v5060_v1 }
0x2c67   :  { %v2364_v52 = vpop.f32.mrb[96].mxu1 }
0x2c68   :  { %v2371_v55 = vadd.f32 %v2370_v54, %v2364_v52  ;;  %v4588_v56 = vpop.f32.mrb[97].mxu1 }
0x2c69   :  { %v2367_v58 = vpop.f32.mrb[98].mxu1 }
0x2c6a   :  { %4982 = vtanh.f32 %v2371_v55  ;;  %v4589_v59 = vpop.f32.mrb[99].mxu1  ;;  %v2678_v55 = vld [vmem:[#allocation2 + $0x38] sm:$0x1] }
0x2c74   :  { %v4983_v60 = vpop.eup %4982 }
0x2c75   :  { %v2373_v62 = vpack.c.bf16 %v4983_v60, %v4983_v60 }
0x2c77   :  { %4607 = vmatmul.mubr.bf16.vlgmr.msra.gmra.mrb[100].mxu0 %v2373_v62 }
0x2c78   :  { %4631 = vmatpush3.bf16.msra.mxu0 %v5898_v45  ;;  %4646 = vmatprep.mubr.msk.bf16.mxu0 %vm5061_vm0, %v5060_v1 }
0x2c79   :  { %4632 = vmatprep.subr.bf16.mxu0 %v5060_v1 }
0x2c7c   :  { %4633 = vmatpush3.bf16.msra.mxu0 %v5907_v46 }
0x2c7d   :  { %4634 = vmatprep.subr.bf16.mxu0 %v5060_v1 }
0x2c80   :  { %4635 = vmatpush3.bf16.msra.mxu0 %v5914_v47 }
0x2c81   :  { %4636 = vmatprep.subr.bf16.mxu0 %v5060_v1 }
0x2c84   :  { %4637 = vmatpush3.bf16.msra.mxu0 %v5921_v48 }
0x2c85   :  { %4638 = vmatprep.subr.bf16.mxu0 %v5060_v1 }
0x2c88   :  { %4639 = vmatpush3.bf16.msra.mxu0 %v5928_v49 }
0x2c89   :  { %4640 = vmatprep.subr.bf16.mxu0 %v5060_v1 }
0x2c8c   :  { %4641 = vmatpush3.bf16.msra.mxu0 %v5953_v10 }
0x2c8d   :  { %4642 = vmatprep.subr.bf16.mxu0 %v5060_v1 }
0x2c90   :  { %4643 = vmatpush3.bf16.msra.mxu0 %v5960_v12 }
0x2c91   :  { %4644 = vmatprep.subr.bf16.mxu0 %v5060_v1 }
0x2c94   :  { %4645 = vmatpush3.bf16.msra.mxu0 %v5967_v13 }
0x2c95   :  { %4670 = vmatprep.subr.bf16.mxu0 %v5060_v1 }
0x2d4a   :  { %v2408_v63 = vpop.f32.mrb[100].mxu0 }
0x2d4b   :  { %v2415_v7 = vadd.f32 %v2414_v3, %v2408_v63  ;;  %v4608_v16 = vpop.f32.mrb[101].mxu0 }
0x2d4c   :  { %v2411_v17 = vpop.f32.mrb[102].mxu0 }
0x2d4d   :  { %4984 = vtanh.f32 %v2415_v7  ;;  %v4609_v11 = vpop.f32.mrb[103].mxu0  ;;  %v2722_v7 = vld [vmem:[#allocation2 + $0x39] sm:$0x1] }
0x2d57   :  { %v4985_v14 = vpop.eup %4984 }
0x2d58   :  { %v2417_v15 = vpack.c.bf16 %v4985_v14, %v4985_v14 }
0x2d5a   :  { %4627 = vmatmul.mubr.bf16.vlgmr.msra.gmra.mrb[100].mxu1 %v2417_v15 }
0x2d5b   :  { %4651 = vmatpush3.bf16.msra.mxu1 %v5898_v45  ;;  %4666 = vmatprep.mubr.msk.bf16.mxu1 %vm5061_vm0, %v5060_v1 }
0x2d5c   :  { %4652 = vmatprep.subr.bf16.mxu1 %v5060_v1 }
0x2d5f   :  { %4653 = vmatpush3.bf16.msra.mxu1 %v5907_v46 }
0x2d60   :  { %4654 = vmatprep.subr.bf16.mxu1 %v5060_v1 }
0x2d63   :  { %4655 = vmatpush3.bf16.msra.mxu1 %v5914_v47 }
0x2d64   :  { %4656 = vmatprep.subr.bf16.mxu1 %v5060_v1 }
0x2d67   :  { %4657 = vmatpush3.bf16.msra.mxu1 %v5921_v48 }
0x2d68   :  { %4658 = vmatprep.subr.bf16.mxu1 %v5060_v1 }
0x2d6b   :  { %4659 = vmatpush3.bf16.msra.mxu1 %v5928_v49 }
0x2d6c   :  { %4660 = vmatprep.subr.bf16.mxu1 %v5060_v1 }
0x2d6f   :  { %4661 = vmatpush3.bf16.msra.mxu1 %v5953_v10 }
0x2d70   :  { %4662 = vmatprep.subr.bf16.mxu1 %v5060_v1 }
0x2d73   :  { %4663 = vmatpush3.bf16.msra.mxu1 %v5960_v12 }
0x2d74   :  { %4664 = vmatprep.subr.bf16.mxu1 %v5060_v1 }
0x2d77   :  { %4665 = vmatpush3.bf16.msra.mxu1 %v5967_v13 }
0x2d78   :  { %4690 = vmatprep.subr.bf16.mxu1 %v5060_v1 }
0x2e2d   :  { %v2452_v18 = vpop.f32.mrb[100].mxu1 }
0x2e2e   :  { %v2459_v20 = vadd.f32 %v2458_v19, %v2452_v18  ;;  %v4628_v21 = vpop.f32.mrb[101].mxu1 }
0x2e2f   :  { %v2455_v22 = vpop.f32.mrb[102].mxu1 }
0x2e30   :  { %4986 = vtanh.f32 %v2459_v20  ;;  %v4629_v23 = vpop.f32.mrb[103].mxu1  ;;  %v2766_v20 = vld [vmem:[#allocation2 + $0x3a] sm:$0x1] }
0x2e3a   :  { %v4987_v24 = vpop.eup %4986 }
0x2e3b   :  { %v2461_v25 = vpack.c.bf16 %v4987_v24, %v4987_v24 }
0x2e3d   :  { %4647 = vmatmul.mubr.bf16.vlgmr.msra.gmra.mrb[104].mxu0 %v2461_v25 }
0x2e3e   :  { %4671 = vmatpush3.bf16.msra.mxu0 %v5898_v45  ;;  %4686 = vmatprep.mubr.msk.bf16.mxu0 %vm5061_vm0, %v5060_v1 }
0x2e3f   :  { %4672 = vmatprep.subr.bf16.mxu0 %v5060_v1 }
0x2e42   :  { %4673 = vmatpush3.bf16.msra.mxu0 %v5907_v46 }
0x2e43   :  { %4674 = vmatprep.subr.bf16.mxu0 %v5060_v1 }
0x2e46   :  { %4675 = vmatpush3.bf16.msra.mxu0 %v5914_v47 }
0x2e47   :  { %4676 = vmatprep.subr.bf16.mxu0 %v5060_v1 }
0x2e4a   :  { %4677 = vmatpush3.bf16.msra.mxu0 %v5921_v48 }
0x2e4b   :  { %4678 = vmatprep.subr.bf16.mxu0 %v5060_v1 }
0x2e4e   :  { %4679 = vmatpush3.bf16.msra.mxu0 %v5928_v49 }
0x2e4f   :  { %4680 = vmatprep.subr.bf16.mxu0 %v5060_v1 }
0x2e52   :  { %4681 = vmatpush3.bf16.msra.mxu0 %v5953_v10 }
0x2e53   :  { %4682 = vmatprep.subr.bf16.mxu0 %v5060_v1 }
0x2e56   :  { %4683 = vmatpush3.bf16.msra.mxu0 %v5960_v12 }
0x2e57   :  { %4684 = vmatprep.subr.bf16.mxu0 %v5060_v1 }
0x2e5a   :  { %4685 = vmatpush3.bf16.msra.mxu0 %v5967_v13 }
0x2e5b   :  { %4710 = vmatprep.subr.bf16.mxu0 %v5060_v1 }
0x2f10   :  { %v2496_v26 = vpop.f32.mrb[104].mxu0 }
0x2f11   :  { %v2503_v28 = vadd.f32 %v2502_v27, %v2496_v26  ;;  %v4648_v29 = vpop.f32.mrb[105].mxu0 }
0x2f12   :  { %v2499_v30 = vpop.f32.mrb[106].mxu0 }
0x2f13   :  { %4988 = vtanh.f32 %v2503_v28  ;;  %v4649_v31 = vpop.f32.mrb[107].mxu0  ;;  %v2810_v28 = vld [vmem:[#allocation2 + $0x3b] sm:$0x1] }
0x2f1d   :  { %v4989_v32 = vpop.eup %4988 }
0x2f1e   :  { %v2505_v33 = vpack.c.bf16 %v4989_v32, %v4989_v32 }
0x2f20   :  { %4667 = vmatmul.mubr.bf16.vlgmr.msra.gmra.mrb[104].mxu1 %v2505_v33 }
0x2f21   :  { %4691 = vmatpush3.bf16.msra.mxu1 %v5898_v45  ;;  %4706 = vmatprep.mubr.msk.bf16.mxu1 %vm5061_vm0, %v5060_v1 }
0x2f22   :  { %4692 = vmatprep.subr.bf16.mxu1 %v5060_v1 }
0x2f25   :  { %4693 = vmatpush3.bf16.msra.mxu1 %v5907_v46  ;;  %v2546_v46 = vld [vmem:[#allocation2 + $0x35] sm:$0x1] }
0x2f26   :  { %4694 = vmatprep.subr.bf16.mxu1 %v5060_v1 }
0x2f29   :  { %4695 = vmatpush3.bf16.msra.mxu1 %v5914_v47 }
0x2f2a   :  { %4696 = vmatprep.subr.bf16.mxu1 %v5060_v1 }
0x2f2d   :  { %4697 = vmatpush3.bf16.msra.mxu1 %v5921_v48 }
0x2f2e   :  { %4698 = vmatprep.subr.bf16.mxu1 %v5060_v1 }
0x2f31   :  { %4699 = vmatpush3.bf16.msra.mxu1 %v5928_v49 }
0x2f32   :  { %4700 = vmatprep.subr.bf16.mxu1 %v5060_v1 }
0x2f35   :  { %4701 = vmatpush3.bf16.msra.mxu1 %v5953_v10 }
0x2f36   :  { %4702 = vmatprep.subr.bf16.mxu1 %v5060_v1 }
0x2f39   :  { %4703 = vmatpush3.bf16.msra.mxu1 %v5960_v12 }
0x2f3a   :  { %4704 = vmatprep.subr.bf16.mxu1 %v5060_v1 }
0x2f3d   :  { %4705 = vmatpush3.bf16.msra.mxu1 %v5967_v13 }
0x2f3e   :  { %4730 = vmatprep.subr.bf16.mxu1 %v5060_v1 }
0x2ff3   :  { %v2540_v45 = vpop.f32.mrb[104].mxu1 }
0x2ff4   :  { %v2547_v47 = vadd.f32 %v2546_v46, %v2540_v45  ;;  %v4668_v48 = vpop.f32.mrb[105].mxu1 }
0x2ff5   :  { %v2543_v34 = vpop.f32.mrb[106].mxu1 }
0x2ff6   :  { %4990 = vtanh.f32 %v2547_v47  ;;  %v4669_v49 = vpop.f32.mrb[107].mxu1  ;;  %v2854_v47 = vld [vmem:[#allocation2 + $0x3c] sm:$0x1] }
0x3000   :  { %v4991_v35 = vpop.eup %4990 }
0x3001   :  { %v2549_v36 = vpack.c.bf16 %v4991_v35, %v4991_v35 }
0x3003   :  { %4687 = vmatmul.mubr.bf16.vlgmr.msra.gmra.mrb[108].mxu0 %v2549_v36 }
0x3004   :  { %4711 = vmatpush3.bf16.msra.mxu0 %v6280_v37  ;;  %4726 = vmatprep.mubr.msk.bf16.mxu0 %vm5061_vm0, %v5060_v1 }
0x3005   :  { %4712 = vmatprep.subr.bf16.mxu0 %v5060_v1 }
0x3008   :  { %4713 = vmatpush3.bf16.msra.mxu0 %v6289_v38 }
0x3009   :  { %4714 = vmatprep.subr.bf16.mxu0 %v5060_v1 }
0x300c   :  { %4715 = vmatpush3.bf16.msra.mxu0 %v6296_v39 }
0x300d   :  { %4716 = vmatprep.subr.bf16.mxu0 %v5060_v1 }
0x3010   :  { %4717 = vmatpush3.bf16.msra.mxu0 %v6303_v40 }
0x3011   :  { %4718 = vmatprep.subr.bf16.mxu0 %v5060_v1 }
0x3014   :  { %4719 = vmatpush3.bf16.msra.mxu0 %v6310_v41 }
0x3015   :  { %4720 = vmatprep.subr.bf16.mxu0 %v5060_v1 }
0x3018   :  { %4721 = vmatpush3.bf16.msra.mxu0 %v5953_v10  ;;  %v6335_v10 = vld [vmem:[%s6473_s2 + $0x28] sm:$0xff]  }
0x3019   :  { %4722 = vmatprep.subr.bf16.mxu0 %v5060_v1 }
0x301c   :  { %4723 = vmatpush3.bf16.msra.mxu0 %v5960_v12  ;;  %v6342_v12 = vld [vmem:[%s6473_s2 + $0x30] sm:$0xff]  }
0x301d   :  { %4724 = vmatprep.subr.bf16.mxu0 %v5060_v1 }
0x3020   :  { %4725 = vmatpush3.bf16.msra.mxu0 %v5967_v13  ;;  %v6349_v13 = vld [vmem:[%s6473_s2 + $0x38] sm:$0xff]   ;;  %s5063_s2 = smov [#allocation3]  }
0x3021   :  { %4750 = vmatprep.subr.bf16.mxu0 %v5060_v1  ;;  %s2996_s20 = sshll.u32 %s5063_s2, 4  ;;  %s2997_s20 = int_to_ptr.vmem [resolvable:$true] %s2996_s20 }
0x3022   :  { %s5036_s21 = scalar_lea.vmem %s2997_s20, 16  ;;  %s5040_s1 = scalar_lea.vmem %s2997_s20, 32 }
0x3023   :  { %p5037_p0 = scmp.ne.s32.totalorder %s2997_s20, %s5036_s21  ;;  %p5041_p1 = scmp.lt.s32.totalorder %s2997_s20, %s2997_s20 }
0x3024   :  { %p5042_p2 = scmp.lt.s32.totalorder %s5040_s1, %s5036_s21 }
0x3026   :  { %p5043_p3 = por %p5042_p2, %p5041_p1 }
0x3028   :  { %p5044_p4 = pnand %p5043_p3, %p5037_p0 }
0x30d6   :  { %v2584_v42 = vpop.f32.mrb[108].mxu0 }
0x30d7   :  { %v2591_v0 = vadd.f32 %v2590_v43, %v2584_v42  ;;  %v4688_v2 = vpop.f32.mrb[109].mxu0 }
0x30d8   :  { %v2587_v4 = vpop.f32.mrb[110].mxu0 }
0x30d9   :  { %4992 = vtanh.f32 %v2591_v0  ;;  %v4689_v53 = vpop.f32.mrb[111].mxu0 }
0x30da   :  { %v2942_v53 = vld [vmem:[#allocation2 + $0x3e] sm:$0x1] }
0x30e3   :  { %v4993_v57 = vpop.eup %4992 }
0x30e4   :  { %v2593_v61 = vpack.c.bf16 %v4993_v57, %v4993_v57 }
0x30e6   :  { %4707 = vmatmul.mubr.bf16.vlgmr.msra.gmra.mrb[108].mxu1 %v2593_v61 }
0x30e7   :  { %4731 = vmatpush3.bf16.msra.mxu1 %v6280_v37  ;;  %4746 = vmatprep.mubr.msk.bf16.mxu1 %vm5061_vm0, %v5060_v1 }
0x30e8   :  { %4732 = vmatprep.subr.bf16.mxu1 %v5060_v1 }
0x30eb   :  { %4733 = vmatpush3.bf16.msra.mxu1 %v6289_v38 }
0x30ec   :  { %4734 = vmatprep.subr.bf16.mxu1 %v5060_v1 }
0x30ef   :  { %4735 = vmatpush3.bf16.msra.mxu1 %v6296_v39 }
0x30f0   :  { %4736 = vmatprep.subr.bf16.mxu1 %v5060_v1 }
0x30f3   :  { %4737 = vmatpush3.bf16.msra.mxu1 %v6303_v40 }
0x30f4   :  { %4738 = vmatprep.subr.bf16.mxu1 %v5060_v1 }
0x30f7   :  { %4739 = vmatpush3.bf16.msra.mxu1 %v6310_v41 }
0x30f8   :  { %4740 = vmatprep.subr.bf16.mxu1 %v5060_v1 }
0x30fb   :  { %4741 = vmatpush3.bf16.msra.mxu1 %v6335_v10 }
0x30fc   :  { %4742 = vmatprep.subr.bf16.mxu1 %v5060_v1 }
0x30ff   :  { %4743 = vmatpush3.bf16.msra.mxu1 %v6342_v12 }
0x3100   :  { %4744 = vmatprep.subr.bf16.mxu1 %v5060_v1 }
0x3103   :  { %4745 = vmatpush3.bf16.msra.mxu1 %v6349_v13 }
0x3104   :  { %4770 = vmatprep.subr.bf16.mxu1 %v5060_v1 }
0x31b9   :  { %v2628_v5 = vpop.f32.mrb[108].mxu1 }
0x31ba   :  { %v2635_v9 = vadd.f32 %v2634_v6, %v2628_v5  ;;  %v4708_v8 = vpop.f32.mrb[109].mxu1  ;;  %v2986_v6 = vld [vmem:[#allocation2 + $0x3f] sm:$0x1] }
0x31bb   :  { %v2631_v44 = vpop.f32.mrb[110].mxu1 }
0x31bc   :  { %4994 = vtanh.f32 %v2635_v9  ;;  %v4709_v50 = vpop.f32.mrb[111].mxu1 }
0x31c6   :  { %v4995_v51 = vpop.eup %4994 }
0x31c7   :  { %v2637_v52 = vpack.c.bf16 %v4995_v51, %v4995_v51 }
0x31c9   :  { %4727 = vmatmul.mubr.bf16.vlgmr.msra.gmra.mrb[112].mxu0 %v2637_v52 }
0x31ca   :  { %4751 = vmatpush3.bf16.msra.mxu0 %v6280_v37  ;;  %4766 = vmatprep.mubr.msk.bf16.mxu0 %vm5061_vm0, %v5060_v1 }
0x31cb   :  { %4752 = vmatprep.subr.bf16.mxu0 %v5060_v1 }
0x31ce   :  { %4753 = vmatpush3.bf16.msra.mxu0 %v6289_v38 }
0x31cf   :  { %4754 = vmatprep.subr.bf16.mxu0 %v5060_v1 }
0x31d2   :  { %4755 = vmatpush3.bf16.msra.mxu0 %v6296_v39 }
0x31d3   :  { %4756 = vmatprep.subr.bf16.mxu0 %v5060_v1 }
0x31d6   :  { %4757 = vmatpush3.bf16.msra.mxu0 %v6303_v40 }
0x31d7   :  { %4758 = vmatprep.subr.bf16.mxu0 %v5060_v1 }
0x31da   :  { %4759 = vmatpush3.bf16.msra.mxu0 %v6310_v41 }
0x31db   :  { %4760 = vmatprep.subr.bf16.mxu0 %v5060_v1 }
0x31de   :  { %4761 = vmatpush3.bf16.msra.mxu0 %v6335_v10 }
0x31df   :  { %4762 = vmatprep.subr.bf16.mxu0 %v5060_v1 }
0x31e2   :  { %4763 = vmatpush3.bf16.msra.mxu0 %v6342_v12 }
0x31e3   :  { %4764 = vmatprep.subr.bf16.mxu0 %v5060_v1 }
0x31e6   :  { %4765 = vmatpush3.bf16.msra.mxu0 %v6349_v13 }
0x31e7   :  { %4790 = vmatprep.subr.bf16.mxu0 %v5060_v1 }
0x329c   :  { %v2672_v54 = vpop.f32.mrb[112].mxu0 }
0x329d   :  { %v2679_v56 = vadd.f32 %v2678_v55, %v2672_v54  ;;  %v4728_v58 = vpop.f32.mrb[113].mxu0 }
0x329e   :  { %v2675_v59 = vpop.f32.mrb[114].mxu0 }
0x329f   :  { %4996 = vtanh.f32 %v2679_v56  ;;  %v4729_v60 = vpop.f32.mrb[115].mxu0 }
0x32a9   :  { %v4997_v62 = vpop.eup %4996 }
0x32aa   :  { %v2681_v63 = vpack.c.bf16 %v4997_v62, %v4997_v62 }
0x32ac   :  { %4747 = vmatmul.mubr.bf16.vlgmr.msra.gmra.mrb[112].mxu1 %v2681_v63 }
0x32ad   :  { %4771 = vmatpush3.bf16.msra.mxu1 %v6280_v37  ;;  %4786 = vmatprep.mubr.msk.bf16.mxu1 %vm5061_vm0, %v5060_v1 }
0x32ae   :  { %4772 = vmatprep.subr.bf16.mxu1 %v5060_v1 }
0x32b1   :  { %4773 = vmatpush3.bf16.msra.mxu1 %v6289_v38 }
0x32b2   :  { %4774 = vmatprep.subr.bf16.mxu1 %v5060_v1 }
0x32b5   :  { %4775 = vmatpush3.bf16.msra.mxu1 %v6296_v39 }
0x32b6   :  { %4776 = vmatprep.subr.bf16.mxu1 %v5060_v1 }
0x32b9   :  { %4777 = vmatpush3.bf16.msra.mxu1 %v6303_v40 }
0x32ba   :  { %4778 = vmatprep.subr.bf16.mxu1 %v5060_v1 }
0x32bd   :  { %4779 = vmatpush3.bf16.msra.mxu1 %v6310_v41 }
0x32be   :  { %4780 = vmatprep.subr.bf16.mxu1 %v5060_v1 }
0x32c1   :  { %4781 = vmatpush3.bf16.msra.mxu1 %v6335_v10 }
0x32c2   :  { %4782 = vmatprep.subr.bf16.mxu1 %v5060_v1 }
0x32c5   :  { %4783 = vmatpush3.bf16.msra.mxu1 %v6342_v12 }
0x32c6   :  { %4784 = vmatprep.subr.bf16.mxu1 %v5060_v1 }
0x32c9   :  { %4785 = vmatpush3.bf16.msra.mxu1 %v6349_v13 }
0x32ca   :  { %4810 = vmatprep.subr.bf16.mxu1 %v5060_v1 }
0x337f   :  { %v2716_v3 = vpop.f32.mrb[112].mxu1 }
0x3380   :  { %v2723_v16 = vadd.f32 %v2722_v7, %v2716_v3  ;;  %v4748_v17 = vpop.f32.mrb[113].mxu1 }
0x3381   :  { %v2719_v11 = vpop.f32.mrb[114].mxu1 }
0x3382   :  { %4998 = vtanh.f32 %v2723_v16  ;;  %v4749_v14 = vpop.f32.mrb[115].mxu1 }
0x338c   :  { %v4999_v15 = vpop.eup %4998 }
0x338d   :  { %v2725_v18 = vpack.c.bf16 %v4999_v15, %v4999_v15 }
0x338f   :  { %4767 = vmatmul.mubr.bf16.vlgmr.msra.gmra.mrb[116].mxu0 %v2725_v18 }
0x3390   :  { %4791 = vmatpush3.bf16.msra.mxu0 %v6280_v37  ;;  %4806 = vmatprep.mubr.msk.bf16.mxu0 %vm5061_vm0, %v5060_v1 }
0x3391   :  { %4792 = vmatprep.subr.bf16.mxu0 %v5060_v1 }
0x3394   :  { %4793 = vmatpush3.bf16.msra.mxu0 %v6289_v38 }
0x3395   :  { %4794 = vmatprep.subr.bf16.mxu0 %v5060_v1 }
0x3398   :  { %4795 = vmatpush3.bf16.msra.mxu0 %v6296_v39 }
0x3399   :  { %4796 = vmatprep.subr.bf16.mxu0 %v5060_v1 }
0x339c   :  { %4797 = vmatpush3.bf16.msra.mxu0 %v6303_v40 }
0x339d   :  { %4798 = vmatprep.subr.bf16.mxu0 %v5060_v1 }
0x33a0   :  { %4799 = vmatpush3.bf16.msra.mxu0 %v6310_v41 }
0x33a1   :  { %4800 = vmatprep.subr.bf16.mxu0 %v5060_v1 }
0x33a4   :  { %4801 = vmatpush3.bf16.msra.mxu0 %v6335_v10 }
0x33a5   :  { %4802 = vmatprep.subr.bf16.mxu0 %v5060_v1 }
0x33a8   :  { %4803 = vmatpush3.bf16.msra.mxu0 %v6342_v12 }
0x33a9   :  { %4804 = vmatprep.subr.bf16.mxu0 %v5060_v1 }
0x33ac   :  { %4805 = vmatpush3.bf16.msra.mxu0 %v6349_v13 }
0x33ad   :  { %4830 = vmatprep.subr.bf16.mxu0 %v5060_v1 }
0x3462   :  { %v2760_v19 = vpop.f32.mrb[116].mxu0 }
0x3463   :  { %v2767_v21 = vadd.f32 %v2766_v20, %v2760_v19  ;;  %v4768_v22 = vpop.f32.mrb[117].mxu0 }
0x3464   :  { %v2763_v23 = vpop.f32.mrb[118].mxu0 }
0x3465   :  { %5000 = vtanh.f32 %v2767_v21  ;;  %v4769_v24 = vpop.f32.mrb[119].mxu0 }
0x346f   :  { %v5001_v25 = vpop.eup %5000 }
0x3470   :  { %v2769_v26 = vpack.c.bf16 %v5001_v25, %v5001_v25 }
0x3472   :  { %4787 = vmatmul.mubr.bf16.vlgmr.msra.gmra.mrb[116].mxu1 %v2769_v26 }
0x3473   :  { %4811 = vmatpush3.bf16.msra.mxu1 %v6280_v37  ;;  %4826 = vmatprep.mubr.msk.bf16.mxu1 %vm5061_vm0, %v5060_v1 }
0x3474   :  { %4812 = vmatprep.subr.bf16.mxu1 %v5060_v1 }
0x3477   :  { %4813 = vmatpush3.bf16.msra.mxu1 %v6289_v38 }
0x3478   :  { %4814 = vmatprep.subr.bf16.mxu1 %v5060_v1 }
0x347b   :  { %4815 = vmatpush3.bf16.msra.mxu1 %v6296_v39 }
0x347c   :  { %4816 = vmatprep.subr.bf16.mxu1 %v5060_v1 }
0x347f   :  { %4817 = vmatpush3.bf16.msra.mxu1 %v6303_v40 }
0x3480   :  { %4818 = vmatprep.subr.bf16.mxu1 %v5060_v1 }
0x3483   :  { %4819 = vmatpush3.bf16.msra.mxu1 %v6310_v41 }
0x3484   :  { %4820 = vmatprep.subr.bf16.mxu1 %v5060_v1 }
0x3487   :  { %4821 = vmatpush3.bf16.msra.mxu1 %v6335_v10 }
0x3488   :  { %4822 = vmatprep.subr.bf16.mxu1 %v5060_v1 }
0x348b   :  { %4823 = vmatpush3.bf16.msra.mxu1 %v6342_v12 }
0x348c   :  { %4824 = vmatprep.subr.bf16.mxu1 %v5060_v1 }
0x348f   :  { %4825 = vmatpush3.bf16.msra.mxu1 %v6349_v13 }
0x3490   :  { %4850 = vmatprep.subr.bf16.mxu1 %v5060_v1 }
0x3545   :  { %v2804_v27 = vpop.f32.mrb[116].mxu1 }
0x3546   :  { %v2811_v29 = vadd.f32 %v2810_v28, %v2804_v27  ;;  %v4788_v30 = vpop.f32.mrb[117].mxu1 }
0x3547   :  { %v2807_v31 = vpop.f32.mrb[118].mxu1 }
0x3548   :  { %5002 = vtanh.f32 %v2811_v29  ;;  %v4789_v32 = vpop.f32.mrb[119].mxu1 }
0x3552   :  { %v5003_v33 = vpop.eup %5002 }
0x3553   :  { %v2813_v45 = vpack.c.bf16 %v5003_v33, %v5003_v33 }
0x3555   :  { %4807 = vmatmul.mubr.bf16.vlgmr.msra.gmra.mrb[120].mxu0 %v2813_v45 }
0x3556   :  { %4831 = vmatpush3.bf16.msra.mxu0 %v6280_v37  ;;  %4846 = vmatprep.mubr.msk.bf16.mxu0 %vm5061_vm0, %v5060_v1 }
0x3557   :  { %4832 = vmatprep.subr.bf16.mxu0 %v5060_v1 }
0x355a   :  { %4833 = vmatpush3.bf16.msra.mxu0 %v6289_v38 }
0x355b   :  { %4834 = vmatprep.subr.bf16.mxu0 %v5060_v1 }
0x355e   :  { %4835 = vmatpush3.bf16.msra.mxu0 %v6296_v39 }
0x355f   :  { %4836 = vmatprep.subr.bf16.mxu0 %v5060_v1 }
0x3562   :  { %4837 = vmatpush3.bf16.msra.mxu0 %v6303_v40 }
0x3563   :  { %4838 = vmatprep.subr.bf16.mxu0 %v5060_v1 }
0x3566   :  { %4839 = vmatpush3.bf16.msra.mxu0 %v6310_v41 }
0x3567   :  { %4840 = vmatprep.subr.bf16.mxu0 %v5060_v1 }
0x356a   :  { %4841 = vmatpush3.bf16.msra.mxu0 %v6335_v10 }
0x356b   :  { %4842 = vmatprep.subr.bf16.mxu0 %v5060_v1 }
0x356e   :  { %4843 = vmatpush3.bf16.msra.mxu0 %v6342_v12 }
0x356f   :  { %4844 = vmatprep.subr.bf16.mxu0 %v5060_v1 }
0x3572   :  { %4845 = vmatpush3.bf16.msra.mxu0 %v6349_v13 }
0x3628   :  { %v2848_v46 = vpop.f32.mrb[120].mxu0 }
0x3629   :  { %v2855_v48 = vadd.f32 %v2854_v47, %v2848_v46  ;;  %v4808_v34 = vpop.f32.mrb[121].mxu0 }
0x362a   :  { %v2851_v49 = vpop.f32.mrb[122].mxu0 }
0x362b   :  { %5004 = vtanh.f32 %v2855_v48  ;;  %v4809_v35 = vpop.f32.mrb[123].mxu0 }
0x3635   :  { %v5005_v36 = vpop.eup %5004 }
0x3636   :  { %v2857_v42 = vpack.c.bf16 %v5005_v36, %v5005_v36 }
0x3638   :  { %4827 = vmatmul.mubr.bf16.vlgmr.msra.gmra.mrb[120].mxu1 %v2857_v42 }
0x3639   :  { %4851 = vmatpush3.bf16.msra.mxu1 %v6280_v37  ;;  %4866 = vmatprep.mubr.msk.bf16.mxu1 %vm5061_vm0, %v5060_v1 }
0x363a   :  { %4852 = vmatprep.subr.bf16.mxu1 %v5060_v1 }
0x363d   :  { %4853 = vmatpush3.bf16.msra.mxu1 %v6289_v38  ;;  %v2898_v38 = vld [vmem:[#allocation2 + $0x3d] sm:$0x1] }
0x363e   :  { %4854 = vmatprep.subr.bf16.mxu1 %v5060_v1 }
0x3641   :  { %4855 = vmatpush3.bf16.msra.mxu1 %v6296_v39 }
0x3642   :  { %4856 = vmatprep.subr.bf16.mxu1 %v5060_v1 }
0x3645   :  { %4857 = vmatpush3.bf16.msra.mxu1 %v6303_v40 }
0x3646   :  { %4858 = vmatprep.subr.bf16.mxu1 %v5060_v1 }
0x3649   :  { %4859 = vmatpush3.bf16.msra.mxu1 %v6310_v41 }
0x364a   :  { %4860 = vmatprep.subr.bf16.mxu1 %v5060_v1 }
0x364d   :  { %4861 = vmatpush3.bf16.msra.mxu1 %v6335_v10 }
0x364e   :  { %4862 = vmatprep.subr.bf16.mxu1 %v5060_v1 }
0x3651   :  { %4863 = vmatpush3.bf16.msra.mxu1 %v6342_v12 }
0x3652   :  { %4864 = vmatprep.subr.bf16.mxu1 %v5060_v1 }
0x3655   :  { %4865 = vmatpush3.bf16.msra.mxu1 %v6349_v13 }
0x370b   :  { %v2892_v37 = vpop.f32.mrb[120].mxu1 }
0x370c   :  { %v2899_v39 = vadd.f32 %v2898_v38, %v2892_v37  ;;  %v4828_v40 = vpop.f32.mrb[121].mxu1 }
0x370d   :  { %v2895_v43 = vpop.f32.mrb[122].mxu1 }
0x370e   :  { %5006 = vtanh.f32 %v2899_v39  ;;  %v4829_v0 = vpop.f32.mrb[123].mxu1 }
0x3718   :  { %v5007_v41 = vpop.eup %5006 }
0x3719   :  { %v2901_v2 = vpack.c.bf16 %v5007_v41, %v5007_v41 }
0x371b   :  { %4847 = vmatmul.mubr.bf16.vlgmr.msra.gmra.mrb[124].mxu0 %v2901_v2 }
0x37ee   :  { %v2936_v4 = vpop.f32.mrb[124].mxu0 }
0x37ef   :  { %v2943_v57 = vadd.f32 %v2942_v53, %v2936_v4  ;;  %v4848_v61 = vpop.f32.mrb[125].mxu0 }
0x37f0   :  { %v2939_v10 = vpop.f32.mrb[126].mxu0 }
0x37f1   :  { %5008 = vtanh.f32 %v2943_v57  ;;  %v4849_v12 = vpop.f32.mrb[127].mxu0 }
0x37fb   :  { %v5009_v1 = vpop.eup %5008 }
0x37fc   :  { %v2945_v5 = vpack.c.bf16 %v5009_v1, %v5009_v1 }
0x37fe   :  { %4867 = vmatmul.mubr.bf16.vlgmr.msra.gmra.mrb[124].mxu1 %v2945_v5 }
0x38d1   :  { %v2980_v13 = vpop.f32.mrb[124].mxu1 }
0x38d2   :  { %v2987_v9 = vadd.f32 %v2986_v6, %v2980_v13  ;;  %v4868_v8 = vpop.f32.mrb[125].mxu1 }
0x38d3   :  { %v2983_v44 = vpop.f32.mrb[126].mxu1 }
0x38d4   :  { %5010 = vtanh.f32 %v2987_v9  ;;  %v4869_v50 = vpop.f32.mrb[127].mxu1 }
0x38de   :  { %v5011_v51 = vpop.eup %5010 }
0x38df   :  { %2989 = vst [vmem:[#allocation3] sm:$0x1] %v5011_v51 }
0x38e0   :  { %5047 = shalt.err (!%p5044_p4)
}
0x38e1   :  { %s5048_s23 = scalar_lea.hbm %s6476_s5, 16 }
0x38e2   :  { %p5049_p5 = scmp.ne.s32.totalorder %s6476_s5, %s5048_s23  ;;  %p5052_p6 = scmp.lt.u32.totalorder %s5048_s23, %s6476_s5 }
0x38e4   :  { %p5054_p7 = pnand %p5052_p6, %p5049_p5 }
0x38e6   :  { %5057 = shalt.err (!%p5054_p7)
}
0x38e7   :  { %2999 = dma.vmem_to_hbm [thread:$0]  %s2997_s20, 16, %s6476_s5, [#allocation4]  }
0x38e8   :  { %5058 = dma.done.wait [#allocation4], 16  }
0x38e9   :  { %5059 = vsyncadd [#allocation4], 4294967280 }
0x38ea   :  { %3003 = vsyncpa [#allocation4], 1 }

</bundles_post_ra>
